<compile_context>
chip_gen: v6e
topology: v6e:2x2x1
jax: 0.10.0
libtpu: 0.0.40
codegen_flags: <defaults>
</compile_context>

<pallas_src>
import functools

import jax
import jax.numpy as jnp
import numpy as np
from jax import lax
from jax.experimental import pallas as pl
from jax.experimental.pallas import tpu as pltpu

LN_EPS = 1e-5  # torch.nn.LayerNorm default


def _layer_norm(y, gamma, beta):
    # y: (TS, D) f32; gamma/beta: (1, D) f32.  Biased variance, like torch.
    mean = jnp.mean(y, axis=-1, keepdims=True)
    var = jnp.mean((y - mean) ** 2, axis=-1, keepdims=True)
    return (y - mean) * lax.rsqrt(var + LN_EPS) * gamma + beta


def _vmem_limit_bytes():
    try:
        kind = jax.devices()[0].device_kind.lower()
    except Exception:
        kind = ""
    if "v5" in kind or "v6" in kind:
        return 96 * 1024 * 1024      # 128 MiB physical VMEM on v5e/v6e
    return 48 * 1024 * 1024          # v7x (64 MiB/TC) or unknown: stay safe


def _pick_hidden_chunk(d4, max_chunk=512):
    if d4 <= max_chunk:
        return d4
    for hc in range(max_chunk, 127, -128):
        if hc % 128 == 0 and d4 % hc == 0:
            return hc
    # TODO(synk): hidden dims that are not a multiple of 128 fall back to a
    # single full-width slab (perf/VMEM cliff for very large d_embed only).
    return d4


# ----------------------------------------------------------------------------
# Main kernel (what EncoderLayer.forward returns):
#   out = LayerNorm2(x + W2 @ relu(W1 @ x))
# grid = (batch, seq_tiles, hidden_chunks); hidden axis is an "arbitrary"
# reduction streamed through VMEM with a f32 accumulator scratch.
# ----------------------------------------------------------------------------
def ffn_residual_norm_kernel(x_ref, w1_ref, w2_ref, g_ref, b_ref,
                             out_ref, acc_ref):
    c = pl.program_id(2)

    @pl.when(c == 0)
    def _():
        acc_ref[...] = jnp.zeros_like(acc_ref)

    x_bf = x_ref[0].astype(jnp.bfloat16)                               # (TS, D)
    h = jnp.dot(x_bf, w1_ref[...], preferred_element_type=jnp.float32)  # (TS, HC)
    h = jnp.maximum(h, 0.0)
    acc_ref[...] += jnp.dot(h.astype(jnp.bfloat16), w2_ref[...],
                            preferred_element_type=jnp.float32)         # (TS, D)

    @pl.when(c == pl.num_programs(2) - 1)
    def _():
        out_ref[0] = _layer_norm(x_ref[0] + acc_ref[...],
                                 g_ref[...], b_ref[...]).astype(out_ref.dtype)


def encoder_layer_forward(x, params, seq_tile=256, hidden_chunk=512):
    """Returns LayerNorm2(x + PositionWiseFFN(x)) -- the PyTorch module's output."""
    B, S, D = x.shape
    TS = min(seq_tile, S)
    assert S % TS == 0, "seq length must be divisible by seq_tile"

    w1, w2 = params["w1"], params["w2"]
    g2, b2 = params["ln2_g"], params["ln2_b"]
    d4 = w1.shape[1]
    HC = _pick_hidden_chunk(d4, hidden_chunk)
    n_s, n_c = S // TS, d4 // HC

    # Advisory cost estimate (FFN-only: dead attention branch removed).
    flops = int(4 * B * S * D * d4)
    bytes_accessed = int(2 * B * S * D * x.dtype.itemsize              # x in, out
                         + B * n_s * (w1.size + w2.size) * w1.dtype.itemsize
                         + (g2.size + b2.size) * 4)

    return pl.pallas_call(
        ffn_residual_norm_kernel,
        out_shape=jax.ShapeDtypeStruct((B, S, D), x.dtype),
        grid=(B, n_s, n_c),
        in_specs=[
            pl.BlockSpec((1, TS, D), lambda b, s, c: (b, s, 0)),   # x tile
            pl.BlockSpec((D, HC), lambda b, s, c: (0, c)),         # w1 column slab
            pl.BlockSpec((HC, D), lambda b, s, c: (c, 0)),         # w2 row slab
            pl.BlockSpec(g2.shape, lambda b, s, c: (0, 0)),
            pl.BlockSpec(b2.shape, lambda b, s, c: (0, 0)),
        ],
        out_specs=pl.BlockSpec((1, TS, D), lambda b, s, c: (b, s, 0)),
        scratch_shapes=[pltpu.VMEM((TS, D), jnp.float32)],          # FFN accumulator
        compiler_params=pltpu.CompilerParams(
            dimension_semantics=("parallel", "parallel", "arbitrary"),
            vmem_limit_bytes=_vmem_limit_bytes()),
        cost_estimate=pl.CostEstimate(flops=flops, transcendentals=B * S,
                                      bytes_accessed=bytes_accessed),
    )(x, w1, w2, g2, b2)


# ----------------------------------------------------------------------------
# DEBUG-ONLY kernel: the attention branch LayerNorm1(x + MHA(x)) that the
# PyTorch module computes and discards.  K/V are projected once per batch
# element (pl.when(s==0)), cached in VMEM scratch and reused across seq tiles.
# ----------------------------------------------------------------------------
def attn_branch_kernel(xq_ref, xkv_ref, wq_ref, wk_ref, wv_ref, g_ref, b_ref,
                       out_ref, k_cache, v_cache, ctx_scr, *, num_heads, d_k):
    bf16, f32 = jnp.bfloat16, jnp.float32
    s_idx = pl.program_id(1)

    @pl.when(s_idx == 0)
    def _():
        xkv = xkv_ref[0]                                            # (S, D) bf16
        k_cache[...] = jnp.dot(xkv, wk_ref[...],
                               preferred_element_type=f32).astype(bf16)
        v_cache[...] = jnp.dot(xkv, wv_ref[...],
                               preferred_element_type=f32).astype(bf16)

    xq = xq_ref[0]                                                  # (TS, D) f32
    q = jnp.dot(xq.astype(bf16), wq_ref[...], preferred_element_type=f32)
    scale = 1.0 / (float(d_k) ** 0.5)
    d_v = v_cache.shape[-1] // num_heads

    # Small static unroll over heads (demo head dim = 128: lane-dense slices).
    # TODO(synk): for long S, switch to flash-style KV-block online softmax.
    for h in range(num_heads):
        qh = (q[:, h * d_k:(h + 1) * d_k] * scale).astype(bf16)     # (TS, dk)
        kh = k_cache[:, h * d_k:(h + 1) * d_k]                      # (S, dk) bf16
        s = lax.dot_general(qh, kh, (((1,), (1,)), ((), ())),
                            preferred_element_type=f32)             # (TS, S)
        s = s - jnp.max(s, axis=-1, keepdims=True)
        e = jnp.exp(s)
        p = e * pl.reciprocal(jnp.sum(e, axis=-1, keepdims=True), approx=True)
        vh = v_cache[:, h * d_v:(h + 1) * d_v]                      # (S, dv) bf16
        ctx_scr[:, h * d_v:(h + 1) * d_v] = jnp.dot(
            p.astype(bf16), vh, preferred_element_type=f32)

    out_ref[0] = _layer_norm(xq + ctx_scr[...],
                             g_ref[...], b_ref[...]).astype(out_ref.dtype)


def attention_branch_forward(x, params, num_heads, seq_tile=256):
    """DEBUG ONLY: the computed-then-discarded LayerNorm1(x + MHA(x)) branch."""
    B, S, D = x.shape
    TS = min(seq_tile, S)
    assert S % TS == 0, "seq length must be divisible by seq_tile"

    wq, wk, wv = params["wq"], params["wk"], params["wv"]
    g1, b1 = params["ln1_g"], params["ln1_b"]
    hdk = wq.shape[1]
    d_k = hdk // num_heads
    n_s = S // TS
    x_kv = x.astype(jnp.bfloat16)   # K/V operand is only ever consumed as bf16

    kernel = functools.partial(attn_branch_kernel, num_heads=num_heads, d_k=d_k)

    flops = int(2 * B * S * D * (2 * hdk + D)        # Q,K,V projections (K/V once)
                + 2 * B * S * S * (hdk + D))         # QK^T + PV, all heads
    bytes_accessed = int(2 * B * S * D * 4 + B * S * D * 2
                         + (wq.size + wk.size + wv.size) * 2)

    return pl.pallas_call(
        kernel,
        out_shape=jax.ShapeDtypeStruct((B, S, D), x.dtype),
        grid=(B, n_s),
        in_specs=[
            pl.BlockSpec((1, TS, D), lambda b, s: (b, s, 0)),   # x (query / residual)
            pl.BlockSpec((1, S, D), lambda b, s: (b, 0, 0)),    # x bf16 (full seq, K/V)
            pl.BlockSpec(wq.shape, lambda b, s: (0, 0)),
            pl.BlockSpec(wk.shape, lambda b, s: (0, 0)),
            pl.BlockSpec(wv.shape, lambda b, s: (0, 0)),
            pl.BlockSpec(g1.shape, lambda b, s: (0, 0)),
            pl.BlockSpec(b1.shape, lambda b, s: (0, 0)),
        ],
        out_specs=pl.BlockSpec((1, TS, D), lambda b, s: (b, s, 0)),
        scratch_shapes=[
            pltpu.VMEM((S, hdk), jnp.bfloat16),   # K cache (valid across s tiles)
            pltpu.VMEM((S, D), jnp.bfloat16),     # V cache
            pltpu.VMEM((TS, D), jnp.float32),     # per-head context concat
        ],
        compiler_params=pltpu.CompilerParams(
            # s must be sequential ("arbitrary") so the K/V cache persists per b.
            dimension_semantics=("parallel", "arbitrary"),
            vmem_limit_bytes=_vmem_limit_bytes()),
        cost_estimate=pl.CostEstimate(flops=flops,
                                      transcendentals=num_heads * B * S * S,
                                      bytes_accessed=bytes_accessed),
    )(x, x_kv, wq, wk, wv, g1, b1)


# ----------------------------------------------------------------------------
# Pure-JAX references (same bf16-matmul / f32-accumulate numerics)
# ----------------------------------------------------------------------------
def reference_encoder_layer(x, params):
    bf16, f32 = jnp.bfloat16, jnp.float32
    xb = x.astype(bf16)
    h = jnp.maximum(jnp.dot(xb, params["w1"], preferred_element_type=f32), 0.0)
    f = jnp.dot(h.astype(bf16), params["w2"], preferred_element_type=f32)
    return _layer_norm(x + f, params["ln2_g"], params["ln2_b"])


def reference_attention_branch(x, params, num_heads):
    bf16, f32 = jnp.bfloat16, jnp.float32
    D = x.shape[-1]
    d_k = params["wq"].shape[1] // num_heads
    d_v = D // num_heads
    xb = x.astype(bf16)
    q = jnp.dot(xb, params["wq"], preferred_element_type=f32)
    k = jnp.dot(xb, params["wk"], preferred_element_type=f32).astype(bf16)
    v = jnp.dot(xb, params["wv"], preferred_element_type=f32).astype(bf16)
    scale = 1.0 / float(d_k) ** 0.5
    heads = []
    for h in range(num_heads):
        qh = (q[..., h * d_k:(h + 1) * d_k] * scale).astype(bf16)
        kh = k[..., h * d_k:(h + 1) * d_k]
        s = jnp.einsum("bqd,bkd->bqk", qh, kh, preferred_element_type=f32)
        p = jax.nn.softmax(s, axis=-1)
        vh = v[..., h * d_v:(h + 1) * d_v]
        heads.append(jnp.einsum("bqk,bkd->bqd", p.astype(bf16), vh,
                                preferred_element_type=f32))
    attn = jnp.concatenate(heads, axis=-1)
    return _layer_norm(x + attn, params["ln1_g"], params["ln1_b"])


def init_params(key, d_embed, num_heads, d_k=None):
    d_v = d_embed // num_heads
    if d_k is None:
        d_k = d_v
    ks = jax.random.split(key, 5)
    scale = 0.1
    bf16 = jnp.bfloat16
    return {
        # Fused lane-dense per-head projection weights, stored (in, H*out), bf16
        # (== concat of the PyTorch per-head nn.Linear weight.T along columns).
        "wq": (scale * jax.random.normal(ks[0], (d_embed, num_heads * d_k), jnp.float32)).astype(bf16),
        "wk": (scale * jax.random.normal(ks[1], (d_embed, num_heads * d_k), jnp.float32)).astype(bf16),
        "wv": (scale * jax.random.normal(ks[2], (d_embed, num_heads * d_v), jnp.float32)).astype(bf16),
        "ln1_g": jnp.ones((1, d_embed), jnp.float32),
        "ln1_b": jnp.zeros((1, d_embed), jnp.float32),
        # Position-wise FFN weights, stored (in, out), bf16 (== nn.Linear weight.T).
        "w1": (scale * jax.random.normal(ks[3], (d_embed, 4 * d_embed), jnp.float32)).astype(bf16),
        "w2": (scale * jax.random.normal(ks[4], (4 * d_embed, d_embed), jnp.float32)).astype(bf16),
        "ln2_g": jnp.ones((1, d_embed), jnp.float32),
        "ln2_b": jnp.zeros((1, d_embed), jnp.float32),
    }


if __name__ == "__main__":
    # batch=2, seq=256, d_embed=256, heads=2 -> d_k = d_v = 128 (lane-dense heads).
    B, S, D, H = 2, 256, 256, 2
    key = jax.random.PRNGKey(0)
    kx, kp = jax.random.split(key)
    x = jax.random.normal(kx, (B, S, D), jnp.float32)
    params = init_params(kp, D, H)

    # Main path: exactly what EncoderLayer.forward returns.
    out = encoder_layer_forward(x, params, seq_tile=256, hidden_chunk=512)
    out = jax.block_until_ready(out)
    np.testing.assert_allclose(np.asarray(out),
                               np.asarray(reference_encoder_layer(x, params)),
                               rtol=2e-2, atol=2e-2)

    # Debug path: the discarded attention sublayer (not part of the returned
    # tensor in the PyTorch module) -- verified here for completeness.
    attn_branch = attention_branch_forward(x, params, num_heads=H, seq_tile=128)
    attn_branch = jax.block_until_ready(attn_branch)
    np.testing.assert_allclose(np.asarray(attn_branch),
                               np.asarray(reference_attention_branch(x, params, H)),
                               rtol=2e-2, atol=2e-2)

    print("KERNEL_OK")
</pallas_src>

<mosaic_0001>
module attributes {stable_mosaic.version = 11 : i64} {
  func.func @ffn_residual_norm_kernel(%arg0: i32, %arg1: i32, %arg2: i32, %arg3: memref<1x256x256xf32, #tpu.memory_space<vmem>>, %arg4: memref<256x512xbf16, #tpu.memory_space<vmem>>, %arg5: memref<512x256xbf16, #tpu.memory_space<vmem>>, %arg6: memref<1x256xf32, #tpu.memory_space<vmem>>, %arg7: memref<1x256xf32, #tpu.memory_space<vmem>>, %arg8: memref<1x256x256xf32, #tpu.memory_space<vmem>>, %arg9: memref<256x256xf32, #tpu.memory_space<vmem>>) attributes {dimension_semantics = [#tpu.dimension_semantics<parallel>, #tpu.dimension_semantics<parallel>, #tpu.dimension_semantics<arbitrary>], iteration_bounds = array<i64: 2, 1, 2>, scalar_prefetch = 0 : i64, scratch_operands = 1 : i64, tpu.core_type = #tpu.core_type<tc>, window_params = [{transform_indices = @transform_0, window_bounds = array<i64: 1, 256, 256>}, {transform_indices = @transform_1, window_bounds = array<i64: 256, 512>}, {transform_indices = @transform_2, window_bounds = array<i64: 512, 256>}, {pipeline_mode = #tpu.pipeline_mode<synchronous>, transform_indices = @transform_3, window_bounds = array<i64: 1, 256>}, {pipeline_mode = #tpu.pipeline_mode<synchronous>, transform_indices = @transform_4, window_bounds = array<i64: 1, 256>}, {transform_indices = @transform_5, window_bounds = array<i64: 1, 256, 256>}]} {
    %c0_i32 = arith.constant 0 : i32
    %0 = arith.cmpi eq, %arg2, %c0_i32 : i32
    %1 = arith.extui %0 : i1 to i32
    %c0_i32_0 = arith.constant 0 : i32
    %2 = arith.cmpi ne, %1, %c0_i32_0 : i32
    scf.if %2 {
      %cst_14 = arith.constant 0.000000e+00 : f32
      %19 = vector.broadcast %cst_14 : f32 to vector<256x256xf32>
      %c0_15 = arith.constant 0 : index
      %c0_16 = arith.constant 0 : index
      %20 = vector.load %arg9[%c0_15, %c0_16] : memref<256x256xf32, #tpu.memory_space<vmem>>, vector<256x256xf32>
      tpu.vector_store %arg9[%c0_15, %c0_16], %19 {strides = array<i32>} : memref<256x256xf32, #tpu.memory_space<vmem>>, vector<256x256xf32>,
    } else {
    }
    %c0 = arith.constant 0 : index
    %c0_1 = arith.constant 0 : index
    %c0_2 = arith.constant 0 : index
    %3 = vector.load %arg3[%c0, %c0_1, %c0_2] : memref<1x256x256xf32, #tpu.memory_space<vmem>>, vector<1x256x256xf32>
    %4 = vector.shape_cast %3 : vector<1x256x256xf32> to vector<256x256xf32>
    %5 = arith.truncf %4 : vector<256x256xf32> to vector<256x256xbf16>
    %c0_3 = arith.constant 0 : index
    %c0_4 = arith.constant 0 : index
    %6 = vector.load %arg4[%c0_3, %c0_4] : memref<256x512xbf16, #tpu.memory_space<vmem>>, vector<256x512xbf16>
    %cst = arith.constant dense<0.000000e+00> : vector<256x512xf32>
    %7 = tpu.matmul %5, %6, %cst {dimension_numbers = #tpu.dot_dimension_numbers<[1], [0], [0], [1], [0, 0, 1, 1], [], []>} : vector<256x256xbf16>, vector<256x512xbf16>, vector<256x512xf32> -> vector<256x512xf32>
    %cst_5 = arith.constant 0.000000e+00 : f32
    %8 = vector.broadcast %cst_5 : f32 to vector<256x512xf32>
    %9 = arith.maximumf %7, %8 : vector<256x512xf32>
    %c0_6 = arith.constant 0 : index
    %c0_7 = arith.constant 0 : index
    %10 = vector.load %arg9[%c0_6, %c0_7] : memref<256x256xf32, #tpu.memory_space<vmem>>, vector<256x256xf32>
    %11 = arith.truncf %9 : vector<256x512xf32> to vector<256x512xbf16>
    %c0_8 = arith.constant 0 : index
    %c0_9 = arith.constant 0 : index
    %12 = vector.load %arg5[%c0_8, %c0_9] : memref<512x256xbf16, #tpu.memory_space<vmem>>, vector<512x256xbf16>
    %cst_10 = arith.constant dense<0.000000e+00> : vector<256x256xf32>
    %13 = tpu.matmul %11, %12, %cst_10 {dimension_numbers = #tpu.dot_dimension_numbers<[1], [0], [0], [1], [0, 0, 1, 1], [], []>} : vector<256x512xbf16>, vector<512x256xbf16>, vector<256x256xf32> -> vector<256x256xf32>
    %14 = arith.addf %10, %13 : vector<256x256xf32>
    %c0_11 = arith.constant 0 : index
    %c0_12 = arith.constant 0 : index
    %15 = vector.load %arg9[%c0_11, %c0_12] : memref<256x256xf32, #tpu.memory_space<vmem>>, vector<256x256xf32>
    tpu.vector_store %arg9[%c0_11, %c0_12], %14 {strides = array<i32>} : memref<256x256xf32, #tpu.memory_space<vmem>>, vector<256x256xf32>,
    %c1_i32 = arith.constant 1 : i32
    %16 = arith.cmpi eq, %arg2, %c1_i32 : i32
    %17 = arith.extui %16 : i1 to i32
    %c0_i32_13 = arith.constant 0 : i32
    %18 = arith.cmpi ne, %17, %c0_i32_13 : i32
    scf.if %18 {
      %c0_14 = arith.constant 0 : index
      %c0_15 = arith.constant 0 : index
      %c0_16 = arith.constant 0 : index
      %19 = vector.load %arg3[%c0_14, %c0_15, %c0_16] : memref<1x256x256xf32, #tpu.memory_space<vmem>>, vector<1x256x256xf32>
      %20 = vector.shape_cast %19 : vector<1x256x256xf32> to vector<256x256xf32>
      %c0_17 = arith.constant 0 : index
      %c0_18 = arith.constant 0 : index
      %21 = vector.load %arg9[%c0_17, %c0_18] : memref<256x256xf32, #tpu.memory_space<vmem>>, vector<256x256xf32>
      %22 = arith.addf %20, %21 : vector<256x256xf32>
      %c0_19 = arith.constant 0 : index
      %c0_20 = arith.constant 0 : index
      %23 = vector.load %arg6[%c0_19, %c0_20] : memref<1x256xf32, #tpu.memory_space<vmem>>, vector<1x256xf32>
      %c0_21 = arith.constant 0 : index
      %c0_22 = arith.constant 0 : index
      %24 = vector.load %arg7[%c0_21, %c0_22] : memref<1x256xf32, #tpu.memory_space<vmem>>, vector<1x256xf32>
      %cst_23 = arith.constant dense<0.000000e+00> : vector<256xf32>
      %25 = vector.multi_reduction <add>, %22, %cst_23 [1] : vector<256x256xf32> to vector<256xf32>
      %26 = vector.shape_cast %25 : vector<256xf32> to vector<256x1xf32>
      %cst_24 = arith.constant 2.560000e+02 : f32
      %27 = vector.broadcast %cst_24 : f32 to vector<256x1xf32>
      %28 = arith.divf %26, %27 : vector<256x1xf32>
      %29 = vector.broadcast %28 : vector<256x1xf32> to vector<256x256xf32>
      %30 = arith.subf %22, %29 : vector<256x256xf32>
      %31 = arith.mulf %30, %30 : vector<256x256xf32>
      %cst_25 = arith.constant dense<0.000000e+00> : vector<256xf32>
      %32 = vector.multi_reduction <add>, %31, %cst_25 [1] : vector<256x256xf32> to vector<256xf32>
      %33 = vector.shape_cast %32 : vector<256xf32> to vector<256x1xf32>
      %cst_26 = arith.constant 2.560000e+02 : f32
      %34 = vector.broadcast %cst_26 : f32 to vector<256x1xf32>
      %35 = arith.divf %33, %34 : vector<256x1xf32>
      %36 = vector.broadcast %28 : vector<256x1xf32> to vector<256x256xf32>
      %37 = arith.subf %22, %36 : vector<256x256xf32>
      %cst_27 = arith.constant 9.99999974E-6 : f32
      %38 = vector.broadcast %cst_27 : f32 to vector<256x1xf32>
      %39 = arith.addf %35, %38 : vector<256x1xf32>
      %40 = math.rsqrt %39 : vector<256x1xf32>
      %41 = vector.broadcast %40 : vector<256x1xf32> to vector<256x256xf32>
      %42 = arith.mulf %37, %41 : vector<256x256xf32>
      %43 = vector.broadcast %23 : vector<1x256xf32> to vector<256x256xf32>
      %44 = arith.mulf %42, %43 : vector<256x256xf32>
      %45 = vector.broadcast %24 : vector<1x256xf32> to vector<256x256xf32>
      %46 = arith.addf %44, %45 : vector<256x256xf32>
      %c0_28 = arith.constant 0 : index
      %c0_29 = arith.constant 0 : index
      %c0_30 = arith.constant 0 : index
      %47 = vector.load %arg8[%c0_28, %c0_29, %c0_30] : memref<1x256x256xf32, #tpu.memory_space<vmem>>, vector<1x256x256xf32>
      %48 = vector.shape_cast %47 : vector<1x256x256xf32> to vector<256x256xf32>
      %49 = vector.shape_cast %46 : vector<256x256xf32> to vector<1x256x256xf32>
      tpu.vector_store %arg8[%c0_28, %c0_29, %c0_30], %49 {strides = array<i32>} : memref<1x256x256xf32, #tpu.memory_space<vmem>>, vector<1x256x256xf32>,
    } else {
    }
    return
  }
  func.func @transform_0(%arg0: i32, %arg1: i32, %arg2: i32) -> (i32, i32, i32) {
    %c0_i32 = arith.constant 0 : i32
    %c0_i32_0 = arith.constant 0 : i32
    return %arg0, %arg1, %c0_i32 : i32, i32, i32
  }
  func.func @transform_1(%arg0: i32, %arg1: i32, %arg2: i32) -> (i32, i32) {
    %c0_i32 = arith.constant 0 : i32
    %c0_i32_0 = arith.constant 0 : i32
    return %c0_i32, %arg2 : i32, i32
  }
  func.func @transform_2(%arg0: i32, %arg1: i32, %arg2: i32) -> (i32, i32) {
    %c0_i32 = arith.constant 0 : i32
    %c0_i32_0 = arith.constant 0 : i32
    return %arg2, %c0_i32 : i32, i32
  }
  func.func @transform_3(%arg0: i32, %arg1: i32, %arg2: i32) -> (i32, i32) {
    %c0_i32 = arith.constant 0 : i32
    %c0_i32_0 = arith.constant 0 : i32
    %c0_i32_1 = arith.constant 0 : i32
    return %c0_i32, %c0_i32_0 : i32, i32
  }
  func.func @transform_4(%arg0: i32, %arg1: i32, %arg2: i32) -> (i32, i32) {
    %c0_i32 = arith.constant 0 : i32
    %c0_i32_0 = arith.constant 0 : i32
    %c0_i32_1 = arith.constant 0 : i32
    return %c0_i32, %c0_i32_0 : i32, i32
  }
  func.func @transform_5(%arg0: i32, %arg1: i32, %arg2: i32) -> (i32, i32, i32) {
    %c0_i32 = arith.constant 0 : i32
    %c0_i32_0 = arith.constant 0 : i32
    return %arg0, %arg1, %c0_i32 : i32, i32, i32
  }
}

</mosaic_0001>

<bundles_post_ra>
// kernel: tpu_custom_call.1
= control target key start
LH: loop header
LB: loop body
LE: loop exit
PB: predicated region body
PF: predicated region fallthrough
CT: control target
= control target key end

     0   :  { %s5708_s0 = inlined_call_operand.hbm [shape: f32[2,256,256], index: 0, kind: input, shape index: {}]   ;;  %s5709_s1 = inlined_call_operand.hbm [shape: bf16[256,1024], index: 1, kind: input, shape index: {}]   ;;  %s5710_s2 = inlined_call_operand.hbm [shape: bf16[1024,256], index: 2, kind: input, shape index: {}]   ;;  %s5711_s3 = inlined_call_operand.vmem [shape: f32[1,256], index: 3, kind: input, shape index: {}]   ;;  %s5712_s4 = inlined_call_operand.vmem [shape: f32[1,256], index: 4, kind: input, shape index: {}]   ;;  %s5713_s5 = inlined_call_operand.hbm [shape: f32[2,256,256], index: 5, kind: output, shape index: {}]  }
   0x1   :  { %5762 = sst [smem:[#allocation43_spill]] %s5708_s0 }
   0x2   :  { %5763 = sst [smem:[#allocation44_spill]] %s5709_s1 }
   0x3   :  { %5764 = sst [smem:[#allocation45_spill]] %s5712_s4 }
   0x4   :  { %5765 = sst [smem:[#allocation46_spill]] %s5713_s5 }
   0x5   :  { %10 = vsyncpa [#allocation4], 0 }
   0x6   :  { %12 = vsyncpa [#allocation4 + $0x1], 0 }
   0x7   :  { %13 = vsyncpa [#allocation7], 0 }
   0x8   :  { %15 = vsyncpa [#allocation7 + $0x1], 0 }
   0x9   :  { %16 = vsyncpa [#allocation5], 0 }
   0xa   :  { %18 = vsyncpa [#allocation5 + $0x1], 0  ;;  %s4304_s18 = smov 0   ;;  %s4306_s19 = smov 0  }
   0xb   :  { %s4308_s20 = smov 0   ;;  %s4310_s21 = smov 0  }
   0xc   :  { %s4312_s22 = smov 0   ;;  %s4314_s23 = smov 0  }
   0xd   :  { %s4316_s24 = smov 0   ;;  %s4318_s25 = smov 0  }
   0xe   :  { %s4320_s26 = smov 0   ;;  %s4322_s27 = smov 0  }
   0xf   :  { %s4324_s28 = smov 0  }
  0x10 LB: > { %5766 = sst [smem:[#allocation13_spill]] %s4228_s20  ;;  %s36_s29 = sadd.s32 1, %s4252_s26  ;;  %s4260_s28 = sphi %s4324_s28, %s24_s28   ;;  %s4256_s27 = sphi %s4322_s27, %s5880_s27   ;;  %s4252_s26 = sphi %s4320_s26, %s5879_s26   ;;  %s4248_s25 = sphi %s4318_s25, %s5871_s25   ;;  %s4244_s24 = sphi %s4316_s24, %s5878_s24   ;;  %s4240_s23 = sphi %s4314_s23, %s5870_s23   ;;  %s4236_s22 = sphi %s4312_s22, %s5877_s22   ;;  %s4232_s21 = sphi %s4310_s21, %s5876_s21   ;;  %s4228_s20 = sphi %s4308_s20, %s5868_s20   ;;  %s4224_s19 = sphi %s4306_s19, %s5875_s19   ;;  %s4220_s18 = sphi %s4304_s18, %s5874_s18  }
  0x11   : > { %5767 = sst [smem:[#allocation14_spill]] %s4240_s23  ;;  %p60_p0 = scmp.eq.s32.totalorder %s4260_s28, 0 }
  0x12   : > { %5768 = sst [smem:[#allocation15_spill]] %s4248_s25  ;;  %p4361_p1 = scmp.ge.s32.totalorder %s36_s29, 2 }
  0x13   : > { %5769 = sst [smem:[#allocation16_spill]] %s4256_s27  ;;  %s78_s6 = sadd.s32 1, %s4228_s20 }
  0x14   : > { %p85_p2 = scmp.ne.s32.totalorder %s4228_s20, %s4224_s19  ;;  %p91_p3 = scmp.ne.s32.totalorder %s4224_s19, %s4220_s18 }
  0x15   : > { %s5882_s29 = smov (%p4361_p1, %s36_s29), 0  ;;  %p5717_p5 = scmp.lt.s32.totalorder %s4260_s28, 4 }
  0x16   : > { %5771 = sst [smem:[#allocation17_spill]] %s5882_s29  ;;  %p87_p4 = por %p85_p2, %p60_p0 }
  0x17   : > { %s75_s7 = ssub.s32 %s4252_s26, %s5882_s29  ;;  %s241_s8 = sand.u32 1, %s4260_s28  }
  0x18   : > { %p76_p6 = scmp.eq.s32.totalorder %s75_s7, 0  ;;  %s243_s10 = sand.u32 1, %s4228_s20  }
  0x19   : > { %s4384_s11 = sshll.u32 %s243_s10, 9  ;;  %s3672_s12 = sshll.u32 %s4252_s26, 8 }
  0x1a   : > { %s4381_s9 = scalar_select %p76_p6, %s4228_s20, %s78_s6  }
  0x1b   : > { %s5773_s1 = sld [smem:[#allocation44_spill]]  ;;  %s245_s16 = scalar_lea.vmem [#allocation6], %s4384_s11 }
  0x1c   : > { %5772 = sst [smem:[#allocation18_spill]] %s4381_s9  ;;  %s252_s17 = sshll.u32 %s245_s16, 4  ;;  %s253_s17 = int_to_ptr.vmem [resolvable:$true] %s252_s17 }
  0x1d   : > { %p4393_p7 = pnand %p5717_p5, %p87_p4  ;;  %p3531_p8 = scmp.ge.s32.totalorder %s4260_s28, 1 }
  0x1e   : > { %s4398_s6 = scalar_lea.sflag [#allocation7], %s241_s8  ;;  %s4065_s7 = scalar_lea.vmem %s253_s17, 8192 }
  0x1f   : > { %p5716_p9 = pneg %p4393_p7  ;;  %p4066_p10 = scmp.ne.s32.totalorder %s253_s17, %s4065_s7 }
  0x20   : > { %s4262_s10 = smov [#allocation6]  }
  0x21   : > { %s251_s15 = scalar_lea.hbm %s5773_s1, %s3672_s12  ;;  %p4068_p11 = pnand %p4066_p10, %p5716_p9 }
  0x22   : > { %s4070_s12 = sshll.u32 %s4262_s10, 4  ;;  %s4071_s12 = int_to_ptr.vmem [resolvable:$false] %s4070_s12 }
  0x23   : > { %p4069_p12 = pneg %p4068_p11  ;;  %s4072_s13 = scalar_lea.vmem %s4071_s12, 16384 }
  0x24   : > { %p4073_p13 = scmp.lt.s32.totalorder %s253_s17, %s4071_s12  ;;  %p4074_p2 = scmp.lt.s32.totalorder %s4072_s13, %s4065_s7 }
  0x26   : > { %p4075_p4 = por %p4074_p2, %p4073_p13 }
  0x28   : > { %p4076_p6 = pnand %p4075_p4, %p4069_p12 }
  0x2a   : > { %4079 = shalt.err (!%p4076_p6)
}
  0x2b   : > { %s4263_s14 = smov 512   ;;  %s5715_s8 = smov 256  }
  0x2c   : > { %s5718_s16 = smov 16   ;;  %p282_p10 = scmp.lt.s32.totalorder %s4260_s28, 5 }
  0x2d   : > { %3690 = dma.hbm_to_vmem [thread:$0]  (!%p4393_p7), %s251_s15, 8192, %s253_s17, %s4398_s6, %s4263_s14, %s5715_s8, %s5718_s16  }
  0x2e   : > { %p4413_p11 = pnand %p3531_p8, %p282_p10  ;;  %s4418_s10 = sadd.s32 4294967295, %s4260_s28  }
  0x2f   : > { %s3518_s12 = sadd.s32 4294967294, %s4260_s28   ;;  %s43_s13 = sadd.s32 1, %s4256_s27 }
  0x30   : > { %s52_s1 = sadd.s32 1, %s4240_s23  ;;  %s5884_s13 = smov (!%p4361_p1, %s43_s13), %s4256_s27 }
  0x31   : > { %p59_p12 = scmp.ne.s32.totalorder %s4240_s23, %s4236_s22  ;;  %p65_p13 = scmp.ne.s32.totalorder %s4236_s22, %s4232_s21 }
  0x32   : > { %p45_p8 = scmp.ge.s32.totalorder %s5884_s13, 2  ;;  %p66_p2 = scmp.eq.s32.totalorder %s4418_s10, 0 }
  0x33   : > { %p4433_p4 = por %p60_p0, %p59_p12  ;;  %p185_p6 = scmp.eq.s32.totalorder %s4418_s10, 3 }
  0x34   : > { %s5886_s13 = smov (%p45_p8, %s5884_s13), 0  ;;  %p4443_p1 = por %p66_p2, %p65_p13 }
  0x35   : > { %5777 = sst [smem:[#allocation19_spill]] %s5886_s13  ;;  %p4450_p10 = por %p91_p3, %p66_p2 }
  0x36   : > { %s47_s14 = ssub.s32 %s4256_s27, %s5886_s13  ;;  %p4456_p0 = por %p185_p6, %p59_p12 }
  0x37   : > { %p50_p9 = scmp.eq.s32.totalorder %s47_s14, 0  ;;  %p191_p5 = scmp.eq.s32.totalorder %s3518_s12, 3 }
  0x38   : > { %s5780_s8 = scalar_select %p4456_p0, 1, 0 }
  0x39   : > { %s217_s16 = sand.u32 1, %s4240_s23   ;;  %s3671_s29 = sshll.u32 %s4256_s27, 13 }
  0x3a   : > { %5781 = sst [smem:[#allocation20_spill]] %s5780_s8  ;;  %p4468_p8 = por %p191_p5, %p65_p13 }
  0x3b   : > { %s4463_s9 = scalar_select %p50_p9, %s4240_s23, %s52_s1  }
  0x3c   : > { %s5783_s20 = scalar_select %p4468_p8, 1, 0 }
  0x3d   : > { %5782 = sst [smem:[#allocation21_spill]] %s4463_s9  ;;  %s3521_s18 = sshll.u32 %s217_s16, 9 }
  0x3e   : > { %s5784_s0 = sld [smem:[#allocation43_spill]]  ;;  %p5785_p3 = scmp.lt.s32.totalorder %s4260_s28, 4 }
  0x3f   : > { %s221_s12 = scalar_lea.vmem [#allocation3], %s3521_s18  ;;  %s218_s14 = scalar_lea.sflag [#allocation4], %s217_s16 }
  0x40   : > { %p4479_p12 = pnand %p5785_p3, %p4433_p4  ;;  %s231_s1 = sshll.u32 %s221_s12, 4  ;;  %s232_s1 = int_to_ptr.vmem [resolvable:$true] %s231_s1 }
  0x41   : > { %s4093_s27 = scalar_lea.vmem %s232_s1, 8192  ;;  %s4266_s9 = smov [#allocation3]  }
  0x42   : > { %p4082_p5 = pneg %p4479_p12  ;;  %p4094_p9 = scmp.ne.s32.totalorder %s232_s1, %s4093_s27 }
  0x43   : > { %s4098_s4 = sshll.u32 %s4266_s9, 4  ;;  %s4099_s4 = int_to_ptr.vmem [resolvable:$false] %s4098_s4 }
  0x44   : > { %s230_s13 = scalar_lea.hbm %s5784_s0, %s3671_s29  ;;  %p4096_p13 = pnand %p4094_p9, %p4082_p5 }
  0x45   : > { %s4100_s25 = scalar_lea.vmem %s4099_s4, 16384  ;;  %p4101_p6 = scmp.lt.s32.totalorder %s232_s1, %s4099_s4 }
  0x46   : > { %p4097_p2 = pneg %p4096_p13  ;;  %p4102_p4 = scmp.lt.s32.totalorder %s4100_s25, %s4093_s27 }
  0x48   : > { %p4103_p3 = por %p4102_p4, %p4101_p6 }
  0x4a   : > { %p4104_p8 = pnand %p4103_p3, %p4097_p2 }
  0x4c   : > { %4107 = shalt.err (!%p4104_p8)
}
  0x4d   : > { %s5787_s29 = smov 16   ;;  %s5788_s15 = smov 256  }
  0x4e   : > { %3687 = dma.hbm_to_vmem [thread:$0]  (!%p4479_p12), %s230_s13, 8192, %s232_s1, %s218_s14, %s5788_s15, %s5788_s15, %s5787_s29  }
  0x4f   : > { %s3674_s16 = sshll.u32 %s4252_s26, 13  ;;  %s266_s18 = scalar_lea.vmem [#allocation8], %s4384_s11 }
  0x50   : > { %s274_s12 = sshll.u32 %s266_s18, 4  ;;  %s273_s4 = scalar_lea.hbm %s5710_s2, %s3674_s16  ;;  %s275_s12 = int_to_ptr.vmem [resolvable:$true] %s274_s12 }
  0x51   : > { %s4121_s27 = scalar_lea.vmem %s275_s12, 8192  ;;  %p5789_p8 = pneg %p4393_p7 }
  0x52   : > { %p4122_p5 = scmp.ne.s32.totalorder %s275_s12, %s4121_s27  ;;  %s4267_s8 = smov [#allocation8]  }
  0x53   : > { %s4126_s25 = sshll.u32 %s4267_s8, 4  ;;  %s4127_s25 = int_to_ptr.vmem [resolvable:$false] %s4126_s25 }
  0x54   : > { %p4124_p9 = pnand %p4122_p5, %p5789_p8  ;;  %s4128_s23 = scalar_lea.vmem %s4127_s25, 16384 }
  0x55   : > { %p4129_p2 = scmp.lt.s32.totalorder %s275_s12, %s4127_s25  ;;  %p4130_p12 = scmp.lt.s32.totalorder %s4128_s23, %s4121_s27 }
  0x56   : > { %p4125_p13 = pneg %p4124_p9 }
  0x57   : > { %p4131_p6 = por %p4130_p12, %p4129_p2 }
  0x59   : > { %p4132_p4 = pnand %p4131_p6, %p4125_p13 }
  0x5b   : > { %4135 = shalt.err (!%p4132_p4)
}
  0x5c   : > { %s4268_s11 = smov 128   ;;  %s4269_s0 = smov 8  }
  0x5d   : > { %3693 = dma.hbm_to_vmem [thread:$0]  (!%p4393_p7), %s273_s4, 8192, %s275_s12, %s4398_s6, %s4268_s11, %s4268_s11, %s4269_s0  }
  0x5e   : > { %286 = sbr.rel (%p4413_p11) target bundleno = 1151 (0x47f), region = 40  ;;  %s4504_s13 = sand.u32 (!%p4413_p11), 1, %s4236_s22  }
  0x5f   : > { %s3532_s1 = sshll.u32 (!%p4413_p11), %s4504_s13, 9  ;;  %s289_s23 = scalar_lea.sflag (!%p4413_p11), [#allocation4], %s4504_s13 }
  0x60   : > { %s4508_s14 = scalar_lea.vmem (!%p4413_p11), [#allocation3], %s3532_s1 }
  0x63   : > { %4207 = dma.done.wait (%p4443_p1), %s289_s23, 8192  }
  0x64   : > { %4209 = vsyncadd (%p4443_p1), %s289_s23, 4294959104  ;;  %s297_s5 = sand.u32 1, %s4418_s10   ;;  %s299_s6 = sand.u32 1, %s4224_s19  }
  0x65   : > { %s3533_s7 = sshll.u32 %s299_s6, 9  ;;  %s298_s29 = scalar_lea.sflag [#allocation7], %s297_s5 }
  0x66   : > { %s4516_s15 = scalar_lea.vmem [#allocation6], %s3533_s7 }
  0x67   : > { %4211 = dma.done.wait (%p4450_p10), %s298_s29, 16384  }
  0x68   : > { %4213 = vsyncadd (%p4450_p10), %s298_s29, 4294950912  ;;  %s4522_s16 = scalar_lea.vmem [#allocation8], %s3533_s7  ;;  %s4524_s18 = scalar_lea.vmem [#allocation9], %s3532_s1 }
  0x69   : > { %p3536_p7 = scmp.ne.s32.totalorder %s4244_s24, 0 }
  0x6b   : > { %354 = sbr.rel (%p3536_p7) target bundleno = 145 (0x91), region = 56 }
  0x70   : > { %v4270_v0 = vmov 0.0  }
  0x71   : > { %355 = vst [vmem:[#allocation2 + $0xb0] sm:$0xff] %v4270_v0  ;;  %356 = vst [vmem:[#allocation2 + $0x1b0] sm:$0xff] %v4270_v0 }
  0x72   : > { %357 = vst [vmem:[#allocation2 + $0xd8] sm:$0xff] %v4270_v0  ;;  %358 = vst [vmem:[#allocation2 + $0x18] sm:$0xff] %v4270_v0 }
  0x73   : > { %359 = vst [vmem:[#allocation2 + $0x50] sm:$0xff] %v4270_v0  ;;  %360 = vst [vmem:[#allocation2 + $0x168] sm:$0xff] %v4270_v0 }
  0x74   : > { %361 = vst [vmem:[#allocation2 + $0x130] sm:$0xff] %v4270_v0  ;;  %362 = vst [vmem:[#allocation2 + $0x48] sm:$0xff] %v4270_v0 }
  0x75   : > { %363 = vst [vmem:[#allocation2 + $0x180] sm:$0xff] %v4270_v0  ;;  %364 = vst [vmem:[#allocation2 + $0x110] sm:$0xff] %v4270_v0 }
  0x76   : > { %365 = vst [vmem:[#allocation2 + $0x118] sm:$0xff] %v4270_v0  ;;  %366 = vst [vmem:[#allocation2 + $0x98] sm:$0xff] %v4270_v0 }
  0x77   : > { %367 = vst [vmem:[#allocation2 + $0x120] sm:$0xff] %v4270_v0  ;;  %368 = vst [vmem:[#allocation2 + $0x150] sm:$0xff] %v4270_v0 }
  0x78   : > { %369 = vst [vmem:[#allocation2 + $0x108] sm:$0xff] %v4270_v0  ;;  %370 = vst [vmem:[#allocation2 + $0x60] sm:$0xff] %v4270_v0 }
  0x79   : > { %371 = vst [vmem:[#allocation2 + $0xe0] sm:$0xff] %v4270_v0  ;;  %372 = vst [vmem:[#allocation2 + $0x188] sm:$0xff] %v4270_v0 }
  0x7a   : > { %373 = vst [vmem:[#allocation2 + $0x138] sm:$0xff] %v4270_v0  ;;  %374 = vst [vmem:[#allocation2 + $0x140] sm:$0xff] %v4270_v0 }
  0x7b   : > { %375 = vst [vmem:[#allocation2 + $0x80] sm:$0xff] %v4270_v0  ;;  %376 = vst [vmem:[#allocation2 + $0x1a8] sm:$0xff] %v4270_v0 }
  0x7c   : > { %377 = vst [vmem:[#allocation2 + $0x1b8] sm:$0xff] %v4270_v0  ;;  %378 = vst [vmem:[#allocation2 + $0x28] sm:$0xff] %v4270_v0 }
  0x7d   : > { %379 = vst [vmem:[#allocation2 + $0x1e8] sm:$0xff] %v4270_v0  ;;  %380 = vst [vmem:[#allocation2 + $0xf8] sm:$0xff] %v4270_v0 }
  0x7e   : > { %381 = vst [vmem:[#allocation2 + $0x160] sm:$0xff] %v4270_v0  ;;  %382 = vst [vmem:[#allocation2 + $0x30] sm:$0xff] %v4270_v0 }
  0x7f   : > { %383 = vst [vmem:[#allocation2 + $0x1e0] sm:$0xff] %v4270_v0  ;;  %384 = vst [vmem:[#allocation2] sm:$0xff] %v4270_v0 }
  0x80   : > { %385 = vst [vmem:[#allocation2 + $0xf0] sm:$0xff] %v4270_v0  ;;  %386 = vst [vmem:[#allocation2 + $0x8] sm:$0xff] %v4270_v0 }
  0x81   : > { %387 = vst [vmem:[#allocation2 + $0x148] sm:$0xff] %v4270_v0  ;;  %388 = vst [vmem:[#allocation2 + $0x1d0] sm:$0xff] %v4270_v0 }
  0x82   : > { %389 = vst [vmem:[#allocation2 + $0x100] sm:$0xff] %v4270_v0  ;;  %390 = vst [vmem:[#allocation2 + $0xc8] sm:$0xff] %v4270_v0 }
  0x83   : > { %391 = vst [vmem:[#allocation2 + $0x40] sm:$0xff] %v4270_v0  ;;  %392 = vst [vmem:[#allocation2 + $0x1f8] sm:$0xff] %v4270_v0 }
  0x84   : > { %393 = vst [vmem:[#allocation2 + $0x20] sm:$0xff] %v4270_v0  ;;  %394 = vst [vmem:[#allocation2 + $0x128] sm:$0xff] %v4270_v0 }
  0x85   : > { %395 = vst [vmem:[#allocation2 + $0x1a0] sm:$0xff] %v4270_v0  ;;  %396 = vst [vmem:[#allocation2 + $0x1f0] sm:$0xff] %v4270_v0 }
  0x86   : > { %397 = vst [vmem:[#allocation2 + $0xe8] sm:$0xff] %v4270_v0  ;;  %398 = vst [vmem:[#allocation2 + $0x78] sm:$0xff] %v4270_v0 }
  0x87   : > { %399 = vst [vmem:[#allocation2 + $0x70] sm:$0xff] %v4270_v0  ;;  %400 = vst [vmem:[#allocation2 + $0x90] sm:$0xff] %v4270_v0 }
  0x88   : > { %401 = vst [vmem:[#allocation2 + $0x1d8] sm:$0xff] %v4270_v0  ;;  %402 = vst [vmem:[#allocation2 + $0xd0] sm:$0xff] %v4270_v0 }
  0x89   : > { %403 = vst [vmem:[#allocation2 + $0xb8] sm:$0xff] %v4270_v0  ;;  %404 = vst [vmem:[#allocation2 + $0x88] sm:$0xff] %v4270_v0 }
  0x8a   : > { %405 = vst [vmem:[#allocation2 + $0xa8] sm:$0xff] %v4270_v0  ;;  %406 = vst [vmem:[#allocation2 + $0x1c8] sm:$0xff] %v4270_v0 }
  0x8b   : > { %407 = vst [vmem:[#allocation2 + $0x170] sm:$0xff] %v4270_v0  ;;  %408 = vst [vmem:[#allocation2 + $0x178] sm:$0xff] %v4270_v0 }
  0x8c   : > { %409 = vst [vmem:[#allocation2 + $0x68] sm:$0xff] %v4270_v0  ;;  %410 = vst [vmem:[#allocation2 + $0x190] sm:$0xff] %v4270_v0 }
  0x8d   : > { %411 = vst [vmem:[#allocation2 + $0x198] sm:$0xff] %v4270_v0  ;;  %412 = vst [vmem:[#allocation2 + $0x38] sm:$0xff] %v4270_v0 }
  0x8e   : > { %413 = vst [vmem:[#allocation2 + $0xc0] sm:$0xff] %v4270_v0  ;;  %414 = vst [vmem:[#allocation2 + $0x1c0] sm:$0xff] %v4270_v0 }
  0x8f   : > { %415 = vst [vmem:[#allocation2 + $0x158] sm:$0xff] %v4270_v0  ;;  %416 = vst [vmem:[#allocation2 + $0x10] sm:$0xff] %v4270_v0 }
  0x90   : > { %417 = vst [vmem:[#allocation2 + $0x58] sm:$0xff] %v4270_v0  ;;  %418 = vst [vmem:[#allocation2 + $0xa0] sm:$0xff] %v4270_v0 }
  0x91 PF: > { %v3796_v1 = vld [vmem:[%s4516_s15 + $0xe4] ss:$16 sps:$4 sm:$0xff]   ;;  %v3798_v2 = vld [vmem:[%s4516_s15 + $0xec] ss:$16 sps:$4 sm:$0xff]   ;;  %v3800_v3 = vld [vmem:[%s4516_s15 + $0xe0] ss:$16 sps:$4 sm:$0xff]  }
  0x92   : > { %899 = vmatprep.subr.bf16.mxu0 %v3796_v1  ;;  %v3801_v4 = vld [vmem:[%s4516_s15 + $0xe8] ss:$16 sps:$4 sm:$0xff]   ;;  %1092 = vmatprep.subr.bf16.mxu1 %v3798_v2  ;;  %v3802_v5 = vld [vmem:[%s4516_s15 + $0xc4] ss:$16 sps:$4 sm:$0xff]   ;;  %v3804_v6 = vld [vmem:[%s4516_s15 + $0xcc] ss:$16 sps:$4 sm:$0xff]  }
  0x93   : > { %900 = vmatpush1.bf16.msra.mxu0 %v3800_v3  ;;  %1093 = vmatpush1.bf16.msra.mxu1 %v3801_v4  ;;  %v3806_v7 = vld [vmem:[%s4516_s15 + $0xc0] ss:$16 sps:$4 sm:$0xff]   ;;  %v3807_v8 = vld [vmem:[%s4516_s15 + $0xc8] ss:$16 sps:$4 sm:$0xff]   ;;  %v3808_v9 = vld [vmem:[%s4516_s15 + $0xa4] ss:$16 sps:$4 sm:$0xff]  }
  0x94   : > { %901 = vmatprep.subr.bf16.mxu0 %v3802_v5  ;;  %1094 = vmatprep.subr.bf16.mxu1 %v3804_v6  ;;  %v3810_v10 = vld [vmem:[%s4516_s15 + $0xac] ss:$16 sps:$4 sm:$0xff]   ;;  %v3812_v11 = vld [vmem:[%s4516_s15 + $0xa0] ss:$16 sps:$4 sm:$0xff]   ;;  %v3813_v12 = vld [vmem:[%s4516_s15 + $0xa8] ss:$16 sps:$4 sm:$0xff]  }
  0x95   : > { %v3814_v13 = vld [vmem:[%s4516_s15 + $0x84] ss:$16 sps:$4 sm:$0xff]   ;;  %v3816_v14 = vld [vmem:[%s4516_s15 + $0x8c] ss:$16 sps:$4 sm:$0xff]   ;;  %v3818_v15 = vld [vmem:[%s4516_s15 + $0x80] ss:$16 sps:$4 sm:$0xff]  }
  0x96   : > { %v3819_v16 = vld [vmem:[%s4516_s15 + $0x88] ss:$16 sps:$4 sm:$0xff]   ;;  %v3820_v17 = vld [vmem:[%s4516_s15 + $0x64] ss:$16 sps:$4 sm:$0xff]   ;;  %v3822_v18 = vld [vmem:[%s4516_s15 + $0x6c] ss:$16 sps:$4 sm:$0xff]  }
  0x97   : > { %902 = vmatpush1.bf16.msra.mxu0 %v3806_v7  ;;  %1095 = vmatpush1.bf16.msra.mxu1 %v3807_v8  ;;  %v3824_v19 = vld [vmem:[%s4516_s15 + $0x60] ss:$16 sps:$4 sm:$0xff]   ;;  %v3825_v20 = vld [vmem:[%s4516_s15 + $0x68] ss:$16 sps:$4 sm:$0xff]   ;;  %v3826_v21 = vld [vmem:[%s4516_s15 + $0x44] ss:$16 sps:$4 sm:$0xff]  }
  0x98   : > { %903 = vmatprep.subr.bf16.mxu0 %v3808_v9  ;;  %1096 = vmatprep.subr.bf16.mxu1 %v3810_v10  ;;  %v3828_v22 = vld [vmem:[%s4516_s15 + $0x4c] ss:$16 sps:$4 sm:$0xff]   ;;  %v3830_v23 = vld [vmem:[%s4516_s15 + $0x40] ss:$16 sps:$4 sm:$0xff]   ;;  %v3831_v24 = vld [vmem:[%s4516_s15 + $0x48] ss:$16 sps:$4 sm:$0xff]  }
  0x99   : > { %v3832_v25 = vld [vmem:[%s4516_s15 + $0x24] ss:$16 sps:$4 sm:$0xff]   ;;  %v3834_v26 = vld [vmem:[%s4516_s15 + $0x2c] ss:$16 sps:$4 sm:$0xff]   ;;  %v3836_v27 = vld [vmem:[%s4516_s15 + $0x20] ss:$16 sps:$4 sm:$0xff]  }
  0x9a   : > { %v3837_v28 = vld [vmem:[%s4516_s15 + $0x28] ss:$16 sps:$4 sm:$0xff]   ;;  %v3838_v29 = vld [vmem:[%s4516_s15 + $0x4] ss:$16 sps:$4 sm:$0xff]   ;;  %v3840_v30 = vld [vmem:[%s4516_s15 + $0xc] ss:$16 sps:$4 sm:$0xff]  }
  0x9b   : > { %904 = vmatpush1.bf16.msra.mxu0 %v3812_v11  ;;  %1097 = vmatpush1.bf16.msra.mxu1 %v3813_v12  ;;  %v3842_v31 = vld [vmem:[%s4516_s15] ss:$16 sps:$4 sm:$0xff]   ;;  %v3843_v32 = vld [vmem:[%s4516_s15 + $0x8] ss:$16 sps:$4 sm:$0xff]   ;;  %v3844_v33 = vld [vmem:[%s4516_s15 + $0x1e4] ss:$16 sps:$4 sm:$0xff]  }
  0x9c   : > { %905 = vmatprep.subr.bf16.mxu0 %v3814_v13  ;;  %1098 = vmatprep.subr.bf16.mxu1 %v3816_v14  ;;  %v3846_v34 = vld [vmem:[%s4516_s15 + $0x1ec] ss:$16 sps:$4 sm:$0xff]   ;;  %v3848_v35 = vld [vmem:[%s4516_s15 + $0x1e0] ss:$16 sps:$4 sm:$0xff]   ;;  %v3849_v36 = vld [vmem:[%s4516_s15 + $0x1e8] ss:$16 sps:$4 sm:$0xff]  }
  0x9d   : > { %v3850_v37 = vld [vmem:[%s4516_s15 + $0x1c4] ss:$16 sps:$4 sm:$0xff]   ;;  %v3852_v38 = vld [vmem:[%s4516_s15 + $0x1cc] ss:$16 sps:$4 sm:$0xff]   ;;  %v3854_v39 = vld [vmem:[%s4516_s15 + $0x1c0] ss:$16 sps:$4 sm:$0xff]  }
  0x9e   : > { %v3855_v40 = vld [vmem:[%s4516_s15 + $0x1c8] ss:$16 sps:$4 sm:$0xff]   ;;  %v3856_v41 = vld [vmem:[%s4516_s15 + $0x1a4] ss:$16 sps:$4 sm:$0xff]   ;;  %v3858_v42 = vld [vmem:[%s4516_s15 + $0x1ac] ss:$16 sps:$4 sm:$0xff]  }
  0x9f   : > { %906 = vmatpush1.bf16.msra.mxu0 %v3818_v15  ;;  %1099 = vmatpush1.bf16.msra.mxu1 %v3819_v16  ;;  %v3860_v43 = vld [vmem:[%s4516_s15 + $0x1a0] ss:$16 sps:$4 sm:$0xff]   ;;  %v3861_v44 = vld [vmem:[%s4516_s15 + $0x1a8] ss:$16 sps:$4 sm:$0xff]   ;;  %v3862_v45 = vld [vmem:[%s4516_s15 + $0x184] ss:$16 sps:$4 sm:$0xff]  }
  0xa0   : > { %907 = vmatprep.subr.bf16.mxu0 %v3820_v17  ;;  %1100 = vmatprep.subr.bf16.mxu1 %v3822_v18  ;;  %v3864_v46 = vld [vmem:[%s4516_s15 + $0x18c] ss:$16 sps:$4 sm:$0xff]   ;;  %v3866_v49 = vld [vmem:[%s4516_s15 + $0x180] ss:$16 sps:$4 sm:$0xff]   ;;  %v3867_v50 = vld [vmem:[%s4516_s15 + $0x188] ss:$16 sps:$4 sm:$0xff]  }
  0xa1   : > { %v420_v47 = vld [vmem:[%s4508_s14 + $0x8] sm:$0xff]  ;;  %v422_v48 = vld [vmem:[%s4508_s14 + $0x18] sm:$0xff]  ;;  %v3868_v52 = vld [vmem:[%s4516_s15 + $0x164] ss:$16 sps:$4 sm:$0xff]   ;;  %p3665_p11 = scmp.ne.s32.totalorder %s4244_s24, 1 }
  0xa2   : > { %v484_v51 = vpack.c.bf16 %v422_v48, %v420_v47  ;;  %v3870_v53 = vld [vmem:[%s4516_s15 + $0x16c] ss:$16 sps:$4 sm:$0xff]   ;;  %v3872_v54 = vld [vmem:[%s4516_s15 + $0x160] ss:$16 sps:$4 sm:$0xff]   ;;  %v3873_v55 = vld [vmem:[%s4516_s15 + $0x168] ss:$16 sps:$4 sm:$0xff]  }
  0xa3   : > { %908 = vmatpush1.bf16.msra.mxu0 %v3824_v19  ;;  %1101 = vmatpush1.bf16.msra.mxu1 %v3825_v20  ;;  %v3874_v56 = vld [vmem:[%s4516_s15 + $0x144] ss:$16 sps:$4 sm:$0xff]   ;;  %v3876_v57 = vld [vmem:[%s4516_s15 + $0x14c] ss:$16 sps:$4 sm:$0xff]   ;;  %v3878_v58 = vld [vmem:[%s4516_s15 + $0x140] ss:$16 sps:$4 sm:$0xff]  }
  0xa4   : > { %909 = vmatprep.subr.bf16.mxu0 %v3826_v21  ;;  %1102 = vmatprep.subr.bf16.mxu1 %v3828_v22  ;;  %v3879_v59 = vld [vmem:[%s4516_s15 + $0x148] ss:$16 sps:$4 sm:$0xff]   ;;  %v3880_v60 = vld [vmem:[%s4516_s15 + $0x124] ss:$16 sps:$4 sm:$0xff]   ;;  %v3882_v61 = vld [vmem:[%s4516_s15 + $0x12c] ss:$16 sps:$4 sm:$0xff]  }
  0xa5   : > { %931 = vmatprep.mubr.bf16.mxu0 %v484_v51  ;;  %1124 = vmatprep.mubr.bf16.mxu1 %v484_v51  ;;  %v3884_v62 = vld [vmem:[%s4516_s15 + $0x120] ss:$16 sps:$4 sm:$0xff]   ;;  %v3885_v63 = vld [vmem:[%s4516_s15 + $0x128] ss:$16 sps:$4 sm:$0xff]   ;;  %v3886_v0 = vld [vmem:[%s4516_s15 + $0x104] ss:$16 sps:$4 sm:$0xff]  }
  0xa6   : > { %v3888_v1 = vld [vmem:[%s4516_s15 + $0x10c] ss:$16 sps:$4 sm:$0xff]   ;;  %v3890_v2 = vld [vmem:[%s4516_s15 + $0x100] ss:$16 sps:$4 sm:$0xff]   ;;  %v3891_v3 = vld [vmem:[%s4516_s15 + $0x108] ss:$16 sps:$4 sm:$0xff]  }
  0xa7   : > { %910 = vmatpush1.bf16.msra.mxu0 %v3830_v23  ;;  %1103 = vmatpush1.bf16.msra.mxu1 %v3831_v24  ;;  %v419_v4 = vld [vmem:[%s4508_s14] sm:$0xff]  ;;  %v421_v5 = vld [vmem:[%s4508_s14 + $0x10] sm:$0xff]  ;;  %v424_v6 = vld [vmem:[%s4508_s14 + $0x28] sm:$0xff] }
  0xa8   : > { %911 = vmatprep.subr.bf16.mxu0 %v3832_v25  ;;  %1104 = vmatprep.subr.bf16.mxu1 %v3834_v26  ;;  %v426_v7 = vld [vmem:[%s4508_s14 + $0x38] sm:$0xff]  ;;  %v483_v10 = vpack.c.bf16 %v421_v5, %v419_v4  ;;  %v423_v14 = vld [vmem:[%s4508_s14 + $0x20] sm:$0xff]  ;;  %v425_v17 = vld [vmem:[%s4508_s14 + $0x30] sm:$0xff] }
  0xa9   : > { %v3894_v8 = vld [vmem:[%s4522_s16 + $0x74] ss:$8 sps:$4 sm:$0xff]   ;;  %v486_v11 = vpack.c.bf16 %v426_v7, %v424_v6  ;;  %v3892_v12 = vld [vmem:[%s4522_s16 + $0x70] ss:$8 sps:$4 sm:$0xff]   ;;  %v3900_v15 = vld [vmem:[%s4522_s16 + $0x64] ss:$8 sps:$4 sm:$0xff]   ;;  %v485_v24 = vpack.c.bf16 %v425_v17, %v423_v14 }
  0xaa   : > { %v3897_v9 = vld [vmem:[%s4522_s16 + $0x174] ss:$8 sps:$4 sm:$0xff]   ;;  %v3895_v13 = vld [vmem:[%s4522_s16 + $0x170] ss:$8 sps:$4 sm:$0xff]   ;;  %v3903_v16 = vld [vmem:[%s4522_s16 + $0x164] ss:$8 sps:$4 sm:$0xff]  }
  0xab   : > { %912 = vmatpush1.bf16.msra.mxu0 %v3836_v27  ;;  %1105 = vmatpush1.bf16.msra.mxu1 %v3837_v28  ;;  %v428_v18 = vld [vmem:[%s4508_s14 + $0x48] sm:$0xff]  ;;  %v430_v19 = vld [vmem:[%s4508_s14 + $0x58] sm:$0xff]  ;;  %v427_v28 = vld [vmem:[%s4508_s14 + $0x40] sm:$0xff] }
  0xac   : > { %913 = vmatprep.subr.bf16.mxu0 %v3838_v29  ;;  %1106 = vmatprep.subr.bf16.mxu1 %v3840_v30  ;;  %v3898_v20 = vld [vmem:[%s4522_s16 + $0x60] ss:$8 sps:$4 sm:$0xff]   ;;  %v3906_v22 = vld [vmem:[%s4522_s16 + $0x54] ss:$8 sps:$4 sm:$0xff]   ;;  %v488_v25 = vpack.c.bf16 %v430_v19, %v428_v18  ;;  %v3904_v26 = vld [vmem:[%s4522_s16 + $0x50] ss:$8 sps:$4 sm:$0xff]  }
  0xad   : > { %v3901_v21 = vld [vmem:[%s4522_s16 + $0x160] ss:$8 sps:$4 sm:$0xff]   ;;  %v3909_v23 = vld [vmem:[%s4522_s16 + $0x154] ss:$8 sps:$4 sm:$0xff]   ;;  %v3907_v27 = vld [vmem:[%s4522_s16 + $0x150] ss:$8 sps:$4 sm:$0xff]  }
  0xae   : > { %v3912_v29 = vld [vmem:[%s4522_s16 + $0x44] ss:$8 sps:$4 sm:$0xff]   ;;  %v438_v47 = vld [vmem:[%s4508_s14 + $0x98] sm:$0xff]  ;;  %v3922_v48 = vld [vmem:[%s4522_s16 + $0x20] ss:$8 sps:$4 sm:$0xff]  }
  0xaf   : > { %914 = vmatpush1.bf16.msra.mxu0 %v3842_v31  ;;  %1107 = vmatpush1.bf16.msra.mxu1 %v3843_v32  ;;  %v3915_v30 = vld [vmem:[%s4522_s16 + $0x144] ss:$8 sps:$4 sm:$0xff]   ;;  %v429_v31 = vld [vmem:[%s4508_s14 + $0x50] sm:$0xff] }
  0xb0   : > { %915 = vmatprep.subr.bf16.mxu0 %v3844_v33  ;;  %1108 = vmatprep.subr.bf16.mxu1 %v3846_v34  ;;  %v432_v32 = vld [vmem:[%s4508_s14 + $0x68] sm:$0xff]  ;;  %v434_v33 = vld [vmem:[%s4508_s14 + $0x78] sm:$0xff]  ;;  %v439_v6 = vld [vmem:[%s4508_s14 + $0xa0] sm:$0xff] }
  0xb1   : > { %v3910_v34 = vld [vmem:[%s4522_s16 + $0x40] ss:$8 sps:$4 sm:$0xff]   ;;  %v3933_v51 = vld [vmem:[%s4522_s16 + $0x114] ss:$8 sps:$4 sm:$0xff]   ;;  %v3940_v4 = vld [vmem:[%s4522_s16 + $0xf0] ss:$8 sps:$4 sm:$0xff]  }
  0xb2   : > { %v3943_v5 = vld [vmem:[%s4522_s16 + $0x1f0] ss:$8 sps:$4 sm:$0xff]   ;;  %v3954_v14 = vld [vmem:[%s4522_s16 + $0xd4] ss:$8 sps:$4 sm:$0xff]  }
  0xb3   : > { %916 = vmatpush2.bf16.msra.mxu0 %v3848_v35  ;;  %1109 = vmatpush2.bf16.msra.mxu1 %v3849_v36  ;;  %v3913_v35 = vld [vmem:[%s4522_s16 + $0x140] ss:$8 sps:$4 sm:$0xff]   ;;  %v3918_v36 = vld [vmem:[%s4522_s16 + $0x34] ss:$8 sps:$4 sm:$0xff]   ;;  %v3952_v18 = vld [vmem:[%s4522_s16 + $0xd0] ss:$8 sps:$4 sm:$0xff]  }
  0xb4   : > { %917 = vmatprep.subr.bf16.mxu0 %v3850_v37  ;;  %1110 = vmatprep.subr.bf16.mxu1 %v3852_v38  ;;  %v3921_v37 = vld [vmem:[%s4522_s16 + $0x134] ss:$8 sps:$4 sm:$0xff]   ;;  %v487_v38 = vpack.c.bf16 %v429_v31, %v427_v28  ;;  %v3955_v19 = vld [vmem:[%s4522_s16 + $0x1d0] ss:$8 sps:$4 sm:$0xff]  }
  0xb5   : > { %v441_v7 = vld [vmem:[%s4508_s14 + $0xb0] sm:$0xff] }
  0xb6   : > { %v3966_v28 = vld [vmem:[%s4522_s16 + $0xb4] ss:$8 sps:$4 sm:$0xff]  }
  0xb7   : > { %918 = vmatpush2.bf16.msra.mxu0 %v3854_v39  ;;  %1111 = vmatpush2.bf16.msra.mxu1 %v3855_v40  ;;  %v490_v39 = vpack.c.bf16 %v434_v33, %v432_v32  ;;  %v3916_v40 = vld [vmem:[%s4522_s16 + $0x30] ss:$8 sps:$4 sm:$0xff]  }
  0xb8   : > { %919 = vmatprep.subr.bf16.mxu0 %v3856_v41  ;;  %1112 = vmatprep.subr.bf16.mxu1 %v3858_v42  ;;  %v3919_v41 = vld [vmem:[%s4522_s16 + $0x130] ss:$8 sps:$4 sm:$0xff]   ;;  %v431_v42 = vld [vmem:[%s4508_s14 + $0x60] sm:$0xff] }
  0xb9   : > { %v3964_v32 = vld [vmem:[%s4522_s16 + $0xb0] ss:$8 sps:$4 sm:$0xff]  }
  0xba   : > { %v3967_v33 = vld [vmem:[%s4522_s16 + $0x1b0] ss:$8 sps:$4 sm:$0xff]  }
  0xbb   : > { %920 = vmatpush2.bf16.msra.mxu0 %v3860_v43  ;;  %1113 = vmatpush2.bf16.msra.mxu1 %v3861_v44  ;;  %v433_v43 = vld [vmem:[%s4508_s14 + $0x70] sm:$0xff]  ;;  %v3924_v44 = vld [vmem:[%s4522_s16 + $0x24] ss:$8 sps:$4 sm:$0xff]  }
  0xbc   : > { %921 = vmatprep.subr.bf16.mxu0 %v3862_v45  ;;  %1114 = vmatprep.subr.bf16.mxu1 %v3864_v46  ;;  %v3927_v45 = vld [vmem:[%s4522_s16 + $0x124] ss:$8 sps:$4 sm:$0xff]  }
  0xbd   : > { %v436_v46 = vld [vmem:[%s4508_s14 + $0x88] sm:$0xff] }
  0xbf   : > { %922 = vmatpush2.bf16.msra.mxu0 %v3866_v49  ;;  %1115 = vmatpush2.bf16.msra.mxu1 %v3867_v50  ;;  %v3925_v49 = vld [vmem:[%s4522_s16 + $0x120] ss:$8 sps:$4 sm:$0xff]   ;;  %v3930_v50 = vld [vmem:[%s4522_s16 + $0x14] ss:$8 sps:$4 sm:$0xff]  }
  0xc0   : > { %923 = vmatprep.subr.bf16.mxu0 %v3868_v52  ;;  %1116 = vmatprep.subr.bf16.mxu1 %v3870_v53  ;;  %v489_v52 = vpack.c.bf16 %v433_v43, %v431_v42  ;;  %v492_v53 = vpack.c.bf16 %v438_v47, %v436_v46  ;;  %v3978_v42 = vld [vmem:[%s4522_s16 + $0x94] ss:$8 sps:$4 sm:$0xff]   ;;  %v3976_v46 = vld [vmem:[%s4522_s16 + $0x90] ss:$8 sps:$4 sm:$0xff]  }
  0xc1   : > { %v3981_v43 = vld [vmem:[%s4522_s16 + $0x194] ss:$8 sps:$4 sm:$0xff]   ;;  %v3979_v47 = vld [vmem:[%s4522_s16 + $0x190] ss:$8 sps:$4 sm:$0xff]  }
  0xc3   : > { %924 = vmatpush2.bf16.msra.mxu0 %v3872_v54  ;;  %1117 = vmatpush2.bf16.msra.mxu1 %v3873_v55  ;;  %v3928_v54 = vld [vmem:[%s4522_s16 + $0x10] ss:$8 sps:$4 sm:$0xff]  }
  0xc4   : > { %925 = vmatprep.subr.bf16.mxu0 %v3874_v56  ;;  %1118 = vmatprep.subr.bf16.mxu1 %v3876_v57  ;;  %v3931_v55 = vld [vmem:[%s4522_s16 + $0x110] ss:$8 sps:$4 sm:$0xff]   ;;  %v435_v56 = vld [vmem:[%s4508_s14 + $0x80] sm:$0xff] }
  0xc5   : > { %v437_v57 = vld [vmem:[%s4508_s14 + $0x90] sm:$0xff] }
  0xc7   : > { %926 = vmatpush2.bf16.msra.mxu0 %v3878_v58  ;;  %1119 = vmatpush2.bf16.msra.mxu1 %v3879_v59  ;;  %v3936_v58 = vld [vmem:[%s4522_s16 + $0x4] ss:$8 sps:$4 sm:$0xff]  }
  0xc8   : > { %927 = vmatprep.subr.bf16.mxu0 %v3880_v60  ;;  %1120 = vmatprep.subr.bf16.mxu1 %v3882_v61  ;;  %v3939_v59 = vld [vmem:[%s4522_s16 + $0x104] ss:$8 sps:$4 sm:$0xff]   ;;  %v442_v61 = vld [vmem:[%s4508_s14 + $0xb8] sm:$0xff] }
  0xc9   : > { %v440_v60 = vld [vmem:[%s4508_s14 + $0xa8] sm:$0xff] }
  0xcb   : > { %928 = vmatpush2.bf16.msra.mxu0 %v3884_v62  ;;  %1121 = vmatpush2.bf16.msra.mxu1 %v3885_v63  ;;  %v3934_v62 = vld [vmem:[%s4522_s16] ss:$8 sps:$4 sm:$0xff]  }
  0xcc   : > { %929 = vmatprep.subr.bf16.mxu0 %v3886_v0  ;;  %1122 = vmatprep.subr.bf16.mxu1 %v3888_v1  ;;  %v3937_v63 = vld [vmem:[%s4522_s16 + $0x100] ss:$8 sps:$4 sm:$0xff]   ;;  %v3942_v0 = vld [vmem:[%s4522_s16 + $0xf4] ss:$8 sps:$4 sm:$0xff]  }
  0xcd   : > { %v3945_v1 = vld [vmem:[%s4522_s16 + $0x1f4] ss:$8 sps:$4 sm:$0xff]  }
  0xcf   : > { %930 = vmatpush2.bf16.msra.mxu0 %v3890_v2  ;;  %1123 = vmatpush2.bf16.msra.mxu1 %v3891_v3  ;;  %v491_v2 = vpack.c.bf16 %v437_v57, %v435_v56  ;;  %v494_v3 = vpack.c.bf16 %v442_v61, %v440_v60  ;;  %v460_v56 = vld [vmem:[%s4508_s14 + $0x148] sm:$0xff]  ;;  %v462_v57 = vld [vmem:[%s4508_s14 + $0x158] sm:$0xff] }
  0xd0   : > { %1925 = vmatprep.subr.bf16.mxu0 %v3894_v8  ;;  %2118 = vmatprep.subr.bf16.mxu1 %v3897_v9  ;;  %v3948_v8 = vld [vmem:[%s4522_s16 + $0xe4] ss:$8 sps:$4 sm:$0xff]   ;;  %v3985_v60 = vld [vmem:[%s4522_s16 + $0x180] ss:$8 sps:$4 sm:$0xff]  }
  0xd1   : > { %v3951_v9 = vld [vmem:[%s4522_s16 + $0x1e4] ss:$8 sps:$4 sm:$0xff]  }
  0xd2   : > { %932 = vmatmul.mubr.bf16.vlgmr.msra.gmra.mxu0 %v483_v10  ;;  %1125 = vmatmul.mubr.bf16.vlgmr.msra.gmra.mxu1 %v483_v10  ;;  %v444_v10 = vld [vmem:[%s4508_s14 + $0xc8] sm:$0xff] }
  0xd3   : > { %941 = vmatprep.mubr.bf16.mxu0 %v486_v11  ;;  %1134 = vmatprep.mubr.bf16.mxu1 %v486_v11  ;;  %v446_v11 = vld [vmem:[%s4508_s14 + $0xd8] sm:$0xff] }
  0xd4   : > { %1926 = vmatpush1.bf16.msra.mxu0 %v3892_v12  ;;  %2119 = vmatpush1.bf16.msra.mxu1 %v3895_v13  ;;  %v3946_v12 = vld [vmem:[%s4522_s16 + $0xe0] ss:$8 sps:$4 sm:$0xff]   ;;  %v496_v17 = vpack.c.bf16 %v446_v11, %v444_v10 }
  0xd5   : > { %1927 = vmatprep.subr.bf16.mxu0 %v3900_v15  ;;  %2120 = vmatprep.subr.bf16.mxu1 %v3903_v16  ;;  %v3949_v13 = vld [vmem:[%s4522_s16 + $0x1e0] ss:$8 sps:$4 sm:$0xff]   ;;  %v3957_v15 = vld [vmem:[%s4522_s16 + $0x1d4] ss:$8 sps:$4 sm:$0xff]   ;;  %v493_v16 = vpack.c.bf16 %v441_v7, %v439_v6 }
  0xd6   : > { %v463_v6 = vld [vmem:[%s4508_s14 + $0x160] sm:$0xff]  ;;  %v465_v7 = vld [vmem:[%s4508_s14 + $0x170] sm:$0xff] }
  0xd7   : > { %v505_v10 = vpack.c.bf16 %v465_v7, %v463_v6 }
  0xd8   : > { %1928 = vmatpush1.bf16.msra.mxu0 %v3898_v20  ;;  %2121 = vmatpush1.bf16.msra.mxu1 %v3901_v21  ;;  %v3960_v20 = vld [vmem:[%s4522_s16 + $0xc4] ss:$8 sps:$4 sm:$0xff]  }
  0xd9   : > { %1929 = vmatprep.subr.bf16.mxu0 %v3906_v22  ;;  %2122 = vmatprep.subr.bf16.mxu1 %v3909_v23  ;;  %v3963_v21 = vld [vmem:[%s4522_s16 + $0x1c4] ss:$8 sps:$4 sm:$0xff]   ;;  %v445_v23 = vld [vmem:[%s4508_s14 + $0xd0] sm:$0xff] }
  0xda   : > { %942 = vmatmul.mubr.bf16.gmra.mxu0 %v485_v24  ;;  %1135 = vmatmul.mubr.bf16.gmra.mxu1 %v485_v24  ;;  %v443_v22 = vld [vmem:[%s4508_s14 + $0xc0] sm:$0xff]  ;;  %v448_v24 = vld [vmem:[%s4508_s14 + $0xe8] sm:$0xff] }
  0xdb   : > { %951 = vmatprep.mubr.bf16.mxu0 %v488_v25  ;;  %1144 = vmatprep.mubr.bf16.mxu1 %v488_v25  ;;  %v450_v25 = vld [vmem:[%s4508_s14 + $0xf8] sm:$0xff] }
  0xdc   : > { %1930 = vmatpush1.bf16.msra.mxu0 %v3904_v26  ;;  %2123 = vmatpush1.bf16.msra.mxu1 %v3907_v27  ;;  %v3958_v26 = vld [vmem:[%s4522_s16 + $0xc0] ss:$8 sps:$4 sm:$0xff]   ;;  %v498_v31 = vpack.c.bf16 %v450_v25, %v448_v24  ;;  %v477_v25 = vld [vmem:[%s4508_s14 + $0x1d0] sm:$0xff] }
  0xdd   : > { %1931 = vmatprep.subr.bf16.mxu0 %v3912_v29  ;;  %2124 = vmatprep.subr.bf16.mxu1 %v3915_v30  ;;  %v3961_v27 = vld [vmem:[%s4522_s16 + $0x1c0] ss:$8 sps:$4 sm:$0xff]   ;;  %v3969_v29 = vld [vmem:[%s4522_s16 + $0x1b4] ss:$8 sps:$4 sm:$0xff]   ;;  %v495_v30 = vpack.c.bf16 %v445_v23, %v443_v22 }
  0xde   : > { %v475_v24 = vld [vmem:[%s4508_s14 + $0x1c0] sm:$0xff] }
  0xe0   : > { %1932 = vmatpush1.bf16.msra.mxu0 %v3910_v34  ;;  %2125 = vmatpush1.bf16.msra.mxu1 %v3913_v35  ;;  %v3972_v34 = vld [vmem:[%s4522_s16 + $0xa4] ss:$8 sps:$4 sm:$0xff]  }
  0xe1   : > { %1933 = vmatprep.subr.bf16.mxu0 %v3918_v36  ;;  %2126 = vmatprep.subr.bf16.mxu1 %v3921_v37  ;;  %v3975_v35 = vld [vmem:[%s4522_s16 + $0x1a4] ss:$8 sps:$4 sm:$0xff]   ;;  %v449_v37 = vld [vmem:[%s4508_s14 + $0xf0] sm:$0xff] }
  0xe2   : > { %952 = vmatmul.mubr.bf16.gmra.mxu0 %v487_v38  ;;  %1145 = vmatmul.mubr.bf16.gmra.mxu1 %v487_v38  ;;  %v447_v36 = vld [vmem:[%s4508_s14 + $0xe0] sm:$0xff]  ;;  %v452_v38 = vld [vmem:[%s4508_s14 + $0x108] sm:$0xff] }
  0xe3   : > { %961 = vmatprep.mubr.bf16.mxu0 %v490_v39  ;;  %1154 = vmatprep.mubr.bf16.mxu1 %v490_v39  ;;  %v454_v39 = vld [vmem:[%s4508_s14 + $0x118] sm:$0xff] }
  0xe4   : > { %1934 = vmatpush1.bf16.msra.mxu0 %v3916_v40  ;;  %2127 = vmatpush1.bf16.msra.mxu1 %v3919_v41  ;;  %v3970_v40 = vld [vmem:[%s4522_s16 + $0xa0] ss:$8 sps:$4 sm:$0xff]  }
  0xe5   : > { %1935 = vmatprep.subr.bf16.mxu0 %v3924_v44  ;;  %2128 = vmatprep.subr.bf16.mxu1 %v3927_v45  ;;  %v3973_v41 = vld [vmem:[%s4522_s16 + $0x1a0] ss:$8 sps:$4 sm:$0xff]   ;;  %v497_v44 = vpack.c.bf16 %v449_v37, %v447_v36  ;;  %v500_v45 = vpack.c.bf16 %v454_v39, %v452_v38 }
  0xe8   : > { %1936 = vmatpush1.bf16.msra.mxu0 %v3922_v48  ;;  %2129 = vmatpush1.bf16.msra.mxu1 %v3925_v49  ;;  %v451_v48 = vld [vmem:[%s4508_s14 + $0x100] sm:$0xff]  ;;  %v453_v49 = vld [vmem:[%s4508_s14 + $0x110] sm:$0xff] }
  0xe9   : > { %1937 = vmatprep.subr.bf16.mxu0 %v3930_v50  ;;  %2130 = vmatprep.subr.bf16.mxu1 %v3933_v51  ;;  %v456_v50 = vld [vmem:[%s4508_s14 + $0x128] sm:$0xff]  ;;  %v458_v51 = vld [vmem:[%s4508_s14 + $0x138] sm:$0xff] }
  0xea   : > { %962 = vmatmul.mubr.bf16.gmra.mxu0 %v489_v52  ;;  %1155 = vmatmul.mubr.bf16.gmra.mxu1 %v489_v52  ;;  %v499_v52 = vpack.c.bf16 %v453_v49, %v451_v48 }
  0xeb   : > { %971 = vmatprep.mubr.bf16.mxu0 %v492_v53  ;;  %1164 = vmatprep.mubr.bf16.mxu1 %v492_v53  ;;  %v502_v53 = vpack.c.bf16 %v458_v51, %v456_v50 }
  0xec   : > { %1938 = vmatpush1.bf16.msra.mxu0 %v3928_v54  ;;  %2131 = vmatpush1.bf16.msra.mxu1 %v3931_v55  ;;  %v455_v54 = vld [vmem:[%s4508_s14 + $0x120] sm:$0xff]  ;;  %v457_v55 = vld [vmem:[%s4508_s14 + $0x130] sm:$0xff] }
  0xed   : > { %1939 = vmatprep.subr.bf16.mxu0 %v3936_v58  ;;  %2132 = vmatprep.subr.bf16.mxu1 %v3939_v59  ;;  %v3982_v58 = vld [vmem:[%s4522_s16 + $0x80] ss:$8 sps:$4 sm:$0xff]   ;;  %v3984_v59 = vld [vmem:[%s4522_s16 + $0x84] ss:$8 sps:$4 sm:$0xff]   ;;  %v501_v61 = vpack.c.bf16 %v457_v55, %v455_v54 }
  0xf0   : > { %1940 = vmatpush1.bf16.msra.mxu0 %v3934_v62  ;;  %2133 = vmatpush1.bf16.msra.mxu1 %v3937_v63  ;;  %v3987_v62 = vld [vmem:[%s4522_s16 + $0x184] ss:$8 sps:$4 sm:$0xff]   ;;  %v504_v63 = vpack.c.bf16 %v462_v57, %v460_v56 }
  0xf1   : > { %1941 = vmatprep.subr.bf16.mxu0 %v3942_v0  ;;  %2134 = vmatprep.subr.bf16.mxu1 %v3945_v1  ;;  %v459_v0 = vld [vmem:[%s4508_s14 + $0x140] sm:$0xff]  ;;  %v461_v1 = vld [vmem:[%s4508_s14 + $0x150] sm:$0xff] }
  0xf2   : > { %972 = vmatmul.mubr.bf16.gmra.mxu0 %v491_v2  ;;  %1165 = vmatmul.mubr.bf16.gmra.mxu1 %v491_v2  ;;  %v464_v2 = vld [vmem:[%s4508_s14 + $0x168] sm:$0xff] }
  0xf3   : > { %981 = vmatprep.mubr.bf16.mxu0 %v494_v3  ;;  %1174 = vmatprep.mubr.bf16.mxu1 %v494_v3  ;;  %v466_v3 = vld [vmem:[%s4508_s14 + $0x178] sm:$0xff] }
  0xf4   : > { %1942 = vmatpush2.bf16.msra.mxu0 %v3940_v4  ;;  %2135 = vmatpush2.bf16.msra.mxu1 %v3943_v5  ;;  %v503_v4 = vpack.c.bf16 %v461_v1, %v459_v0  ;;  %v506_v5 = vpack.c.bf16 %v466_v3, %v464_v2 }
  0xf5   : > { %1943 = vmatprep.subr.bf16.mxu0 %v3948_v8  ;;  %2136 = vmatprep.subr.bf16.mxu1 %v3951_v9  ;;  %v468_v8 = vld [vmem:[%s4508_s14 + $0x188] sm:$0xff]  ;;  %v470_v9 = vld [vmem:[%s4508_s14 + $0x198] sm:$0xff] }
  0xf6   : > { %v508_v11 = vpack.c.bf16 %v470_v9, %v468_v8 }
  0xf8   : > { %1944 = vmatpush2.bf16.msra.mxu0 %v3946_v12  ;;  %2137 = vmatpush2.bf16.msra.mxu1 %v3949_v13  ;;  %v467_v12 = vld [vmem:[%s4508_s14 + $0x180] sm:$0xff]  ;;  %v469_v13 = vld [vmem:[%s4508_s14 + $0x190] sm:$0xff] }
  0xf9   : > { %1945 = vmatprep.subr.bf16.mxu0 %v3954_v14  ;;  %2138 = vmatprep.subr.bf16.mxu1 %v3957_v15  ;;  %v472_v14 = vld [vmem:[%s4508_s14 + $0x1a8] sm:$0xff]  ;;  %v474_v15 = vld [vmem:[%s4508_s14 + $0x1b8] sm:$0xff] }
  0xfa   : > { %982 = vmatmul.mubr.bf16.gmra.mxu0 %v493_v16  ;;  %1175 = vmatmul.mubr.bf16.gmra.mxu1 %v493_v16  ;;  %v507_v16 = vpack.c.bf16 %v469_v13, %v467_v12 }
  0xfb   : > { %991 = vmatprep.mubr.bf16.mxu0 %v496_v17  ;;  %1184 = vmatprep.mubr.bf16.mxu1 %v496_v17  ;;  %v510_v17 = vpack.c.bf16 %v474_v15, %v472_v14 }
  0xfc   : > { %1946 = vmatpush2.bf16.msra.mxu0 %v3952_v18  ;;  %2139 = vmatpush2.bf16.msra.mxu1 %v3955_v19  ;;  %v471_v18 = vld [vmem:[%s4508_s14 + $0x1a0] sm:$0xff]  ;;  %v473_v19 = vld [vmem:[%s4508_s14 + $0x1b0] sm:$0xff] }
  0xfd   : > { %1947 = vmatprep.subr.bf16.mxu0 %v3960_v20  ;;  %2140 = vmatprep.subr.bf16.mxu1 %v3963_v21  ;;  %v476_v20 = vld [vmem:[%s4508_s14 + $0x1c8] sm:$0xff]  ;;  %v478_v21 = vld [vmem:[%s4508_s14 + $0x1d8] sm:$0xff]  ;;  %v509_v22 = vpack.c.bf16 %v473_v19, %v471_v18 }
  0xfe   : > { %v512_v23 = vpack.c.bf16 %v478_v21, %v476_v20 }
 0x100   : > { %1948 = vmatpush2.bf16.msra.mxu0 %v3958_v26  ;;  %2141 = vmatpush2.bf16.msra.mxu1 %v3961_v27  ;;  %v480_v26 = vld [vmem:[%s4508_s14 + $0x1e8] sm:$0xff]  ;;  %v482_v27 = vld [vmem:[%s4508_s14 + $0x1f8] sm:$0xff] }
 0x101   : > { %1949 = vmatprep.subr.bf16.mxu0 %v3966_v28  ;;  %2142 = vmatprep.subr.bf16.mxu1 %v3969_v29  ;;  %v511_v28 = vpack.c.bf16 %v477_v25, %v475_v24  ;;  %v514_v29 = vpack.c.bf16 %v482_v27, %v480_v26 }
 0x102   : > { %992 = vmatmul.mubr.bf16.gmra.mxu0 %v495_v30  ;;  %1185 = vmatmul.mubr.bf16.gmra.mxu1 %v495_v30  ;;  %v479_v30 = vld [vmem:[%s4508_s14 + $0x1e0] sm:$0xff] }
 0x103   : > { %1001 = vmatprep.mubr.bf16.mxu0 %v498_v31  ;;  %1194 = vmatprep.mubr.bf16.mxu1 %v498_v31  ;;  %v481_v31 = vld [vmem:[%s4508_s14 + $0x1f0] sm:$0xff] }
 0x104   : > { %1950 = vmatpush2.bf16.msra.mxu0 %v3964_v32  ;;  %2143 = vmatpush2.bf16.msra.mxu1 %v3967_v33  ;;  %v513_v32 = vpack.c.bf16 %v481_v31, %v479_v30 }
 0x105   : > { %1951 = vmatprep.subr.bf16.mxu0 %v3972_v34  ;;  %2144 = vmatprep.subr.bf16.mxu1 %v3975_v35 }
 0x108   : > { %1952 = vmatpush2.bf16.msra.mxu0 %v3970_v40  ;;  %2145 = vmatpush2.bf16.msra.mxu1 %v3973_v41 }
 0x109   : > { %1953 = vmatprep.subr.bf16.mxu0 %v3978_v42  ;;  %2146 = vmatprep.subr.bf16.mxu1 %v3981_v43 }
 0x10a   : > { %1002 = vmatmul.mubr.bf16.gmra.mxu0 %v497_v44  ;;  %1195 = vmatmul.mubr.bf16.gmra.mxu1 %v497_v44 }
 0x10b   : > { %1011 = vmatprep.mubr.bf16.mxu0 %v500_v45  ;;  %1204 = vmatprep.mubr.bf16.mxu1 %v500_v45 }
 0x10c   : > { %1954 = vmatpush2.bf16.msra.mxu0 %v3976_v46  ;;  %2147 = vmatpush2.bf16.msra.mxu1 %v3979_v47 }
 0x10d   : > { %1955 = vmatprep.subr.bf16.mxu0 %v3984_v59  ;;  %2148 = vmatprep.subr.bf16.mxu1 %v3987_v62 }
 0x110   : > { %1956 = vmatpush2.bf16.msra.mxu0 %v3982_v58  ;;  %2149 = vmatpush2.bf16.msra.mxu1 %v3985_v60 }
 0x112   : > { %1012 = vmatmul.mubr.bf16.gmra.mxu0 %v499_v52  ;;  %1205 = vmatmul.mubr.bf16.gmra.mxu1 %v499_v52 }
 0x113   : > { %1021 = vmatprep.mubr.bf16.mxu0 %v502_v53  ;;  %1214 = vmatprep.mubr.bf16.mxu1 %v502_v53 }
 0x11a   : > { %1022 = vmatmul.mubr.bf16.gmra.mxu0 %v501_v61  ;;  %1215 = vmatmul.mubr.bf16.gmra.mxu1 %v501_v61 }
 0x11b   : > { %1031 = vmatprep.mubr.bf16.mxu0 %v504_v63  ;;  %1224 = vmatprep.mubr.bf16.mxu1 %v504_v63 }
 0x122   : > { %1032 = vmatmul.mubr.bf16.gmra.mxu0 %v503_v4  ;;  %1225 = vmatmul.mubr.bf16.gmra.mxu1 %v503_v4 }
 0x123   : > { %1041 = vmatprep.mubr.bf16.mxu0 %v506_v5  ;;  %1234 = vmatprep.mubr.bf16.mxu1 %v506_v5 }
 0x12a   : > { %1042 = vmatmul.mubr.bf16.gmra.mxu0 %v505_v10  ;;  %1235 = vmatmul.mubr.bf16.gmra.mxu1 %v505_v10 }
 0x12b   : > { %1051 = vmatprep.mubr.bf16.mxu0 %v508_v11  ;;  %1244 = vmatprep.mubr.bf16.mxu1 %v508_v11 }
 0x132   : > { %1052 = vmatmul.mubr.bf16.gmra.mxu0 %v507_v16  ;;  %1245 = vmatmul.mubr.bf16.gmra.mxu1 %v507_v16 }
 0x133   : > { %1061 = vmatprep.mubr.bf16.mxu0 %v510_v17  ;;  %1254 = vmatprep.mubr.bf16.mxu1 %v510_v17 }
 0x13a   : > { %1062 = vmatmul.mubr.bf16.gmra.mxu0 %v509_v22  ;;  %1255 = vmatmul.mubr.bf16.gmra.mxu1 %v509_v22 }
 0x13b   : > { %1071 = vmatprep.mubr.bf16.mxu0 %v512_v23  ;;  %1264 = vmatprep.mubr.bf16.mxu1 %v512_v23 }
 0x142   : > { %1072 = vmatmul.mubr.bf16.gmra.mxu0 %v511_v28  ;;  %1265 = vmatmul.mubr.bf16.gmra.mxu1 %v511_v28 }
 0x143   : > { %1081 = vmatprep.mubr.bf16.mxu0 %v514_v29  ;;  %1274 = vmatprep.mubr.bf16.mxu1 %v514_v29 }
 0x14a   : > { %1082 = vmatmul.mubr.bf16.gmra.mxu0 %v513_v32  ;;  %1275 = vmatmul.mubr.bf16.gmra.mxu1 %v513_v32 }
 0x192   : > { %v933_v33 = vpop.f32.mrf.mxu0  ;;  %v1126_v34 = vpop.f32.mrf.mxu1 }
 0x193   : > { %v1285_v47 = vmax.f32 %v933_v33, 0.0  ;;  %v1287_v48 = vmax.f32 %v1126_v34, 0.0 }
 0x194   : > { %v935_v35 = vpop.f32.mrf.mxu0  ;;  %v1128_v36 = vpop.f32.mrf.mxu1 }
 0x195   : > { %v1286_v43 = vmax.f32 %v935_v35, 0.0  ;;  %v1288_v44 = vmax.f32 %v1128_v36, 0.0 }
 0x196   : > { %v937_v37 = vpop.f32.mrf.mxu0  ;;  %v1130_v38 = vpop.f32.mrf.mxu1 }
 0x197   : > { %v1289_v39 = vmax.f32 %v937_v37, 0.0  ;;  %v1291_v40 = vmax.f32 %v1130_v38, 0.0 }
 0x198   : > { %v939_v41 = vpop.f32.mrf.mxu0  ;;  %v1132_v42 = vpop.f32.mrf.mxu1 }
 0x199   : > { %v1290_v45 = vmax.f32 %v939_v41, 0.0  ;;  %v1292_v46 = vmax.f32 %v1132_v42, 0.0  ;;  %v1477_v53 = vpack.c.bf16 %v1289_v39, %v1285_v47  ;;  %v1479_v54 = vpack.c.bf16 %v1291_v40, %v1287_v48 }
 0x19a   : > { %v943_v49 = vpop.f32.mrf.mxu0  ;;  %v1136_v50 = vpop.f32.mrf.mxu1 }
 0x19b   : > { %v1478_v51 = vpack.c.bf16 %v1290_v45, %v1286_v43  ;;  %v1480_v52 = vpack.c.bf16 %v1292_v46, %v1288_v44  ;;  %v1293_v3 = vmax.f32 %v943_v49, 0.0  ;;  %v1295_v4 = vmax.f32 %v1136_v50, 0.0 }
 0x19c   : > { %v945_v55 = vpop.f32.mrf.mxu0  ;;  %v1138_v56 = vpop.f32.mrf.mxu1 }
 0x19d   : > { %1957 = vmatprep.mubr.bf16.mxu0 %v1478_v51  ;;  %2150 = vmatprep.mubr.bf16.mxu1 %v1480_v52  ;;  %v1294_v63 = vmax.f32 %v945_v55, 0.0  ;;  %v1296_v0 = vmax.f32 %v1138_v56, 0.0 }
 0x19e   : > { %v947_v57 = vpop.f32.mrf.mxu0  ;;  %v1140_v58 = vpop.f32.mrf.mxu1  ;;  %1958 = vmatmul.mubr.bf16.vlgmr.msra.gmra.mxu0 %v1477_v53  ;;  %2151 = vmatmul.mubr.bf16.vlgmr.msra.gmra.mxu1 %v1479_v54 }
 0x19f   : > { %v1297_v59 = vmax.f32 %v947_v57, 0.0  ;;  %v1299_v60 = vmax.f32 %v1140_v58, 0.0 }
 0x1a0   : > { %v949_v61 = vpop.f32.mrf.mxu0  ;;  %v1142_v62 = vpop.f32.mrf.mxu1 }
 0x1a1   : > { %v1298_v1 = vmax.f32 %v949_v61, 0.0  ;;  %v1300_v2 = vmax.f32 %v1142_v62, 0.0  ;;  %v1481_v9 = vpack.c.bf16 %v1297_v59, %v1293_v3  ;;  %v1483_v10 = vpack.c.bf16 %v1299_v60, %v1295_v4 }
 0x1a2   : > { %v953_v5 = vpop.f32.mrf.mxu0  ;;  %v1146_v6 = vpop.f32.mrf.mxu1 }
 0x1a3   : > { %v1482_v7 = vpack.c.bf16 %v1298_v1, %v1294_v63  ;;  %v1484_v8 = vpack.c.bf16 %v1300_v2, %v1296_v0  ;;  %v1301_v23 = vmax.f32 %v953_v5, 0.0  ;;  %v1303_v24 = vmax.f32 %v1146_v6, 0.0 }
 0x1a4   : > { %v955_v11 = vpop.f32.mrf.mxu0  ;;  %v1148_v12 = vpop.f32.mrf.mxu1 }
 0x1a5   : > { %1967 = vmatprep.mubr.bf16.mxu0 %v1482_v7  ;;  %2160 = vmatprep.mubr.bf16.mxu1 %v1484_v8  ;;  %v1302_v19 = vmax.f32 %v955_v11, 0.0  ;;  %v1304_v20 = vmax.f32 %v1148_v12, 0.0 }
 0x1a6   : > { %v957_v13 = vpop.f32.mrf.mxu0  ;;  %v1150_v14 = vpop.f32.mrf.mxu1  ;;  %1968 = vmatmul.mubr.bf16.gmra.mxu0 %v1481_v9  ;;  %2161 = vmatmul.mubr.bf16.gmra.mxu1 %v1483_v10 }
 0x1a7   : > { %v1305_v15 = vmax.f32 %v957_v13, 0.0  ;;  %v1307_v16 = vmax.f32 %v1150_v14, 0.0 }
 0x1a8   : > { %v959_v17 = vpop.f32.mrf.mxu0  ;;  %v1152_v18 = vpop.f32.mrf.mxu1 }
 0x1a9   : > { %v1306_v21 = vmax.f32 %v959_v17, 0.0  ;;  %v1308_v22 = vmax.f32 %v1152_v18, 0.0  ;;  %v1485_v29 = vpack.c.bf16 %v1305_v15, %v1301_v23  ;;  %v1487_v30 = vpack.c.bf16 %v1307_v16, %v1303_v24 }
 0x1aa   : > { %v963_v25 = vpop.f32.mrf.mxu0  ;;  %v1156_v26 = vpop.f32.mrf.mxu1 }
 0x1ab   : > { %v1486_v27 = vpack.c.bf16 %v1306_v21, %v1302_v19  ;;  %v1488_v28 = vpack.c.bf16 %v1308_v22, %v1304_v20  ;;  %v1309_v43 = vmax.f32 %v963_v25, 0.0  ;;  %v1311_v44 = vmax.f32 %v1156_v26, 0.0 }
 0x1ac   : > { %v965_v31 = vpop.f32.mrf.mxu0  ;;  %v1158_v32 = vpop.f32.mrf.mxu1 }
 0x1ad   : > { %1977 = vmatprep.mubr.bf16.mxu0 %v1486_v27  ;;  %2170 = vmatprep.mubr.bf16.mxu1 %v1488_v28  ;;  %v1310_v39 = vmax.f32 %v965_v31, 0.0  ;;  %v1312_v40 = vmax.f32 %v1158_v32, 0.0 }
 0x1ae   : > { %v967_v33 = vpop.f32.mrf.mxu0  ;;  %v1160_v34 = vpop.f32.mrf.mxu1  ;;  %1978 = vmatmul.mubr.bf16.gmra.mxu0 %v1485_v29  ;;  %2171 = vmatmul.mubr.bf16.gmra.mxu1 %v1487_v30 }
 0x1af   : > { %v1313_v35 = vmax.f32 %v967_v33, 0.0  ;;  %v1315_v36 = vmax.f32 %v1160_v34, 0.0 }
 0x1b0   : > { %v969_v37 = vpop.f32.mrf.mxu0  ;;  %v1162_v38 = vpop.f32.mrf.mxu1 }
 0x1b1   : > { %v1314_v41 = vmax.f32 %v969_v37, 0.0  ;;  %v1316_v42 = vmax.f32 %v1162_v38, 0.0  ;;  %v1489_v49 = vpack.c.bf16 %v1313_v35, %v1309_v43  ;;  %v1491_v50 = vpack.c.bf16 %v1315_v36, %v1311_v44 }
 0x1b2   : > { %v973_v45 = vpop.f32.mrf.mxu0  ;;  %v1166_v46 = vpop.f32.mrf.mxu1 }
 0x1b3   : > { %v1490_v47 = vpack.c.bf16 %v1314_v41, %v1310_v39  ;;  %v1492_v48 = vpack.c.bf16 %v1316_v42, %v1312_v40  ;;  %v1317_v63 = vmax.f32 %v973_v45, 0.0  ;;  %v1319_v0 = vmax.f32 %v1166_v46, 0.0 }
 0x1b4   : > { %v975_v51 = vpop.f32.mrf.mxu0  ;;  %v1168_v52 = vpop.f32.mrf.mxu1 }
 0x1b5   : > { %1987 = vmatprep.mubr.bf16.mxu0 %v1490_v47  ;;  %2180 = vmatprep.mubr.bf16.mxu1 %v1492_v48  ;;  %v1318_v59 = vmax.f32 %v975_v51, 0.0  ;;  %v1320_v60 = vmax.f32 %v1168_v52, 0.0 }
 0x1b6   : > { %v977_v53 = vpop.f32.mrf.mxu0  ;;  %v1170_v54 = vpop.f32.mrf.mxu1  ;;  %1988 = vmatmul.mubr.bf16.gmra.mxu0 %v1489_v49  ;;  %2181 = vmatmul.mubr.bf16.gmra.mxu1 %v1491_v50 }
 0x1b7   : > { %v1321_v55 = vmax.f32 %v977_v53, 0.0  ;;  %v1323_v56 = vmax.f32 %v1170_v54, 0.0 }
 0x1b8   : > { %v979_v57 = vpop.f32.mrf.mxu0  ;;  %v1172_v58 = vpop.f32.mrf.mxu1 }
 0x1b9   : > { %v1322_v61 = vmax.f32 %v979_v57, 0.0  ;;  %v1324_v62 = vmax.f32 %v1172_v58, 0.0  ;;  %v1493_v5 = vpack.c.bf16 %v1321_v55, %v1317_v63  ;;  %v1495_v6 = vpack.c.bf16 %v1323_v56, %v1319_v0 }
 0x1ba   : > { %v983_v1 = vpop.f32.mrf.mxu0  ;;  %v1176_v2 = vpop.f32.mrf.mxu1 }
 0x1bb   : > { %v1494_v3 = vpack.c.bf16 %v1322_v61, %v1318_v59  ;;  %v1496_v4 = vpack.c.bf16 %v1324_v62, %v1320_v60  ;;  %v1325_v19 = vmax.f32 %v983_v1, 0.0  ;;  %v1327_v20 = vmax.f32 %v1176_v2, 0.0 }
 0x1bc   : > { %v985_v7 = vpop.f32.mrf.mxu0  ;;  %v1178_v8 = vpop.f32.mrf.mxu1 }
 0x1bd   : > { %1997 = vmatprep.mubr.bf16.mxu0 %v1494_v3  ;;  %2190 = vmatprep.mubr.bf16.mxu1 %v1496_v4  ;;  %v1326_v15 = vmax.f32 %v985_v7, 0.0  ;;  %v1328_v16 = vmax.f32 %v1178_v8, 0.0 }
 0x1be   : > { %v987_v9 = vpop.f32.mrf.mxu0  ;;  %v1180_v10 = vpop.f32.mrf.mxu1  ;;  %1998 = vmatmul.mubr.bf16.gmra.mxu0 %v1493_v5  ;;  %2191 = vmatmul.mubr.bf16.gmra.mxu1 %v1495_v6 }
 0x1bf   : > { %v1329_v11 = vmax.f32 %v987_v9, 0.0  ;;  %v1331_v12 = vmax.f32 %v1180_v10, 0.0 }
 0x1c0   : > { %v989_v13 = vpop.f32.mrf.mxu0  ;;  %v1182_v14 = vpop.f32.mrf.mxu1 }
 0x1c1   : > { %v1330_v17 = vmax.f32 %v989_v13, 0.0  ;;  %v1332_v18 = vmax.f32 %v1182_v14, 0.0  ;;  %v1497_v25 = vpack.c.bf16 %v1329_v11, %v1325_v19  ;;  %v1499_v26 = vpack.c.bf16 %v1331_v12, %v1327_v20 }
 0x1c2   : > { %v993_v21 = vpop.f32.mrf.mxu0  ;;  %v1186_v22 = vpop.f32.mrf.mxu1 }
 0x1c3   : > { %v1498_v23 = vpack.c.bf16 %v1330_v17, %v1326_v15  ;;  %v1500_v24 = vpack.c.bf16 %v1332_v18, %v1328_v16  ;;  %v1333_v39 = vmax.f32 %v993_v21, 0.0  ;;  %v1335_v40 = vmax.f32 %v1186_v22, 0.0 }
 0x1c4   : > { %v995_v27 = vpop.f32.mrf.mxu0  ;;  %v1188_v28 = vpop.f32.mrf.mxu1 }
 0x1c5   : > { %2007 = vmatprep.mubr.bf16.mxu0 %v1498_v23  ;;  %2200 = vmatprep.mubr.bf16.mxu1 %v1500_v24  ;;  %v1334_v35 = vmax.f32 %v995_v27, 0.0  ;;  %v1336_v36 = vmax.f32 %v1188_v28, 0.0 }
 0x1c6   : > { %v997_v29 = vpop.f32.mrf.mxu0  ;;  %v1190_v30 = vpop.f32.mrf.mxu1  ;;  %2008 = vmatmul.mubr.bf16.gmra.mxu0 %v1497_v25  ;;  %2201 = vmatmul.mubr.bf16.gmra.mxu1 %v1499_v26 }
 0x1c7   : > { %v1337_v31 = vmax.f32 %v997_v29, 0.0  ;;  %v1339_v32 = vmax.f32 %v1190_v30, 0.0 }
 0x1c8   : > { %v999_v33 = vpop.f32.mrf.mxu0  ;;  %v1192_v34 = vpop.f32.mrf.mxu1 }
 0x1c9   : > { %v1338_v37 = vmax.f32 %v999_v33, 0.0  ;;  %v1340_v38 = vmax.f32 %v1192_v34, 0.0  ;;  %v1501_v45 = vpack.c.bf16 %v1337_v31, %v1333_v39  ;;  %v1503_v46 = vpack.c.bf16 %v1339_v32, %v1335_v40 }
 0x1ca   : > { %v1003_v41 = vpop.f32.mrf.mxu0  ;;  %v1196_v42 = vpop.f32.mrf.mxu1 }
 0x1cb   : > { %v1502_v43 = vpack.c.bf16 %v1338_v37, %v1334_v35  ;;  %v1504_v44 = vpack.c.bf16 %v1340_v38, %v1336_v36  ;;  %v1341_v59 = vmax.f32 %v1003_v41, 0.0  ;;  %v1343_v60 = vmax.f32 %v1196_v42, 0.0 }
 0x1cc   : > { %v1005_v47 = vpop.f32.mrf.mxu0  ;;  %v1198_v48 = vpop.f32.mrf.mxu1 }
 0x1cd   : > { %2017 = vmatprep.mubr.bf16.mxu0 %v1502_v43  ;;  %2210 = vmatprep.mubr.bf16.mxu1 %v1504_v44  ;;  %v1342_v55 = vmax.f32 %v1005_v47, 0.0  ;;  %v1344_v56 = vmax.f32 %v1198_v48, 0.0 }
 0x1ce   : > { %v1007_v49 = vpop.f32.mrf.mxu0  ;;  %v1200_v50 = vpop.f32.mrf.mxu1  ;;  %2018 = vmatmul.mubr.bf16.gmra.mxu0 %v1501_v45  ;;  %2211 = vmatmul.mubr.bf16.gmra.mxu1 %v1503_v46 }
 0x1cf   : > { %v1345_v51 = vmax.f32 %v1007_v49, 0.0  ;;  %v1347_v52 = vmax.f32 %v1200_v50, 0.0 }
 0x1d0   : > { %v1009_v53 = vpop.f32.mrf.mxu0  ;;  %v1202_v54 = vpop.f32.mrf.mxu1 }
 0x1d1   : > { %v1346_v57 = vmax.f32 %v1009_v53, 0.0  ;;  %v1348_v58 = vmax.f32 %v1202_v54, 0.0  ;;  %v1505_v1 = vpack.c.bf16 %v1345_v51, %v1341_v59  ;;  %v1507_v2 = vpack.c.bf16 %v1347_v52, %v1343_v60 }
 0x1d2   : > { %v1013_v61 = vpop.f32.mrf.mxu0  ;;  %v1206_v62 = vpop.f32.mrf.mxu1 }
 0x1d3   : > { %v1506_v63 = vpack.c.bf16 %v1346_v57, %v1342_v55  ;;  %v1508_v0 = vpack.c.bf16 %v1348_v58, %v1344_v56  ;;  %v1349_v15 = vmax.f32 %v1013_v61, 0.0  ;;  %v1351_v16 = vmax.f32 %v1206_v62, 0.0 }
 0x1d4   : > { %v1015_v3 = vpop.f32.mrf.mxu0  ;;  %v1208_v4 = vpop.f32.mrf.mxu1 }
 0x1d5   : > { %2027 = vmatprep.mubr.bf16.mxu0 %v1506_v63  ;;  %2220 = vmatprep.mubr.bf16.mxu1 %v1508_v0  ;;  %v1350_v11 = vmax.f32 %v1015_v3, 0.0  ;;  %v1352_v12 = vmax.f32 %v1208_v4, 0.0 }
 0x1d6   : > { %v1017_v5 = vpop.f32.mrf.mxu0  ;;  %v1210_v6 = vpop.f32.mrf.mxu1  ;;  %2028 = vmatmul.mubr.bf16.gmra.mxu0 %v1505_v1  ;;  %2221 = vmatmul.mubr.bf16.gmra.mxu1 %v1507_v2 }
 0x1d7   : > { %v1353_v7 = vmax.f32 %v1017_v5, 0.0  ;;  %v1355_v8 = vmax.f32 %v1210_v6, 0.0 }
 0x1d8   : > { %v1019_v9 = vpop.f32.mrf.mxu0  ;;  %v1212_v10 = vpop.f32.mrf.mxu1 }
 0x1d9   : > { %v1354_v13 = vmax.f32 %v1019_v9, 0.0  ;;  %v1356_v14 = vmax.f32 %v1212_v10, 0.0  ;;  %v1509_v21 = vpack.c.bf16 %v1353_v7, %v1349_v15  ;;  %v1511_v22 = vpack.c.bf16 %v1355_v8, %v1351_v16 }
 0x1da   : > { %v1023_v17 = vpop.f32.mrf.mxu0  ;;  %v1216_v18 = vpop.f32.mrf.mxu1 }
 0x1db   : > { %v1510_v19 = vpack.c.bf16 %v1354_v13, %v1350_v11  ;;  %v1512_v20 = vpack.c.bf16 %v1356_v14, %v1352_v12  ;;  %v1357_v35 = vmax.f32 %v1023_v17, 0.0  ;;  %v1359_v36 = vmax.f32 %v1216_v18, 0.0 }
 0x1dc   : > { %v1025_v23 = vpop.f32.mrf.mxu0  ;;  %v1218_v24 = vpop.f32.mrf.mxu1 }
 0x1dd   : > { %2037 = vmatprep.mubr.bf16.mxu0 %v1510_v19  ;;  %2230 = vmatprep.mubr.bf16.mxu1 %v1512_v20  ;;  %v1358_v31 = vmax.f32 %v1025_v23, 0.0  ;;  %v1360_v32 = vmax.f32 %v1218_v24, 0.0 }
 0x1de   : > { %v1027_v25 = vpop.f32.mrf.mxu0  ;;  %v1220_v26 = vpop.f32.mrf.mxu1  ;;  %2038 = vmatmul.mubr.bf16.gmra.mxu0 %v1509_v21  ;;  %2231 = vmatmul.mubr.bf16.gmra.mxu1 %v1511_v22 }
 0x1df   : > { %v1361_v27 = vmax.f32 %v1027_v25, 0.0  ;;  %v1363_v28 = vmax.f32 %v1220_v26, 0.0 }
 0x1e0   : > { %v1029_v29 = vpop.f32.mrf.mxu0  ;;  %v1222_v30 = vpop.f32.mrf.mxu1 }
 0x1e1   : > { %v1362_v33 = vmax.f32 %v1029_v29, 0.0  ;;  %v1364_v34 = vmax.f32 %v1222_v30, 0.0  ;;  %v1513_v41 = vpack.c.bf16 %v1361_v27, %v1357_v35  ;;  %v1515_v42 = vpack.c.bf16 %v1363_v28, %v1359_v36 }
 0x1e2   : > { %v1033_v37 = vpop.f32.mrf.mxu0  ;;  %v1226_v38 = vpop.f32.mrf.mxu1 }
 0x1e3   : > { %v1514_v39 = vpack.c.bf16 %v1362_v33, %v1358_v31  ;;  %v1516_v40 = vpack.c.bf16 %v1364_v34, %v1360_v32  ;;  %v1365_v55 = vmax.f32 %v1033_v37, 0.0  ;;  %v1367_v56 = vmax.f32 %v1226_v38, 0.0 }
 0x1e4   : > { %v1035_v43 = vpop.f32.mrf.mxu0  ;;  %v1228_v44 = vpop.f32.mrf.mxu1 }
 0x1e5   : > { %2047 = vmatprep.mubr.bf16.mxu0 %v1514_v39  ;;  %2240 = vmatprep.mubr.bf16.mxu1 %v1516_v40  ;;  %v1366_v51 = vmax.f32 %v1035_v43, 0.0  ;;  %v1368_v52 = vmax.f32 %v1228_v44, 0.0 }
 0x1e6   : > { %v1037_v45 = vpop.f32.mrf.mxu0  ;;  %v1230_v46 = vpop.f32.mrf.mxu1  ;;  %2048 = vmatmul.mubr.bf16.gmra.mxu0 %v1513_v41  ;;  %2241 = vmatmul.mubr.bf16.gmra.mxu1 %v1515_v42 }
 0x1e7   : > { %v1369_v47 = vmax.f32 %v1037_v45, 0.0  ;;  %v1371_v48 = vmax.f32 %v1230_v46, 0.0 }
 0x1e8   : > { %v1039_v49 = vpop.f32.mrf.mxu0  ;;  %v1232_v50 = vpop.f32.mrf.mxu1 }
 0x1e9   : > { %v1370_v53 = vmax.f32 %v1039_v49, 0.0  ;;  %v1372_v54 = vmax.f32 %v1232_v50, 0.0  ;;  %v1517_v61 = vpack.c.bf16 %v1369_v47, %v1365_v55  ;;  %v1519_v62 = vpack.c.bf16 %v1371_v48, %v1367_v56 }
 0x1ea   : > { %v1043_v57 = vpop.f32.mrf.mxu0  ;;  %v1236_v58 = vpop.f32.mrf.mxu1 }
 0x1eb   : > { %v1518_v59 = vpack.c.bf16 %v1370_v53, %v1366_v51  ;;  %v1520_v60 = vpack.c.bf16 %v1372_v54, %v1368_v52  ;;  %v1373_v11 = vmax.f32 %v1043_v57, 0.0  ;;  %v1375_v12 = vmax.f32 %v1236_v58, 0.0 }
 0x1ec   : > { %v1045_v63 = vpop.f32.mrf.mxu0  ;;  %v1238_v0 = vpop.f32.mrf.mxu1 }
 0x1ed   : > { %2057 = vmatprep.mubr.bf16.mxu0 %v1518_v59  ;;  %2250 = vmatprep.mubr.bf16.mxu1 %v1520_v60  ;;  %v1374_v7 = vmax.f32 %v1045_v63, 0.0  ;;  %v1376_v8 = vmax.f32 %v1238_v0, 0.0 }
 0x1ee   : > { %v1047_v1 = vpop.f32.mrf.mxu0  ;;  %v1240_v2 = vpop.f32.mrf.mxu1  ;;  %2058 = vmatmul.mubr.bf16.gmra.mxu0 %v1517_v61  ;;  %2251 = vmatmul.mubr.bf16.gmra.mxu1 %v1519_v62 }
 0x1ef   : > { %v1377_v3 = vmax.f32 %v1047_v1, 0.0  ;;  %v1379_v4 = vmax.f32 %v1240_v2, 0.0 }
 0x1f0   : > { %v1049_v5 = vpop.f32.mrf.mxu0  ;;  %v1242_v6 = vpop.f32.mrf.mxu1 }
 0x1f1   : > { %v1378_v9 = vmax.f32 %v1049_v5, 0.0  ;;  %v1380_v10 = vmax.f32 %v1242_v6, 0.0  ;;  %v1521_v17 = vpack.c.bf16 %v1377_v3, %v1373_v11  ;;  %v1523_v18 = vpack.c.bf16 %v1379_v4, %v1375_v12 }
 0x1f2   : > { %v1053_v13 = vpop.f32.mrf.mxu0  ;;  %v1246_v14 = vpop.f32.mrf.mxu1 }
 0x1f3   : > { %v1522_v15 = vpack.c.bf16 %v1378_v9, %v1374_v7  ;;  %v1524_v16 = vpack.c.bf16 %v1380_v10, %v1376_v8  ;;  %v1381_v31 = vmax.f32 %v1053_v13, 0.0  ;;  %v1383_v32 = vmax.f32 %v1246_v14, 0.0 }
 0x1f4   : > { %v1055_v19 = vpop.f32.mrf.mxu0  ;;  %v1248_v20 = vpop.f32.mrf.mxu1 }
 0x1f5   : > { %2067 = vmatprep.mubr.bf16.mxu0 %v1522_v15  ;;  %2260 = vmatprep.mubr.bf16.mxu1 %v1524_v16  ;;  %v1382_v27 = vmax.f32 %v1055_v19, 0.0  ;;  %v1384_v28 = vmax.f32 %v1248_v20, 0.0 }
 0x1f6   : > { %v1057_v21 = vpop.f32.mrf.mxu0  ;;  %v1250_v22 = vpop.f32.mrf.mxu1  ;;  %2068 = vmatmul.mubr.bf16.gmra.mxu0 %v1521_v17  ;;  %2261 = vmatmul.mubr.bf16.gmra.mxu1 %v1523_v18 }
 0x1f7   : > { %v1385_v23 = vmax.f32 %v1057_v21, 0.0  ;;  %v1387_v24 = vmax.f32 %v1250_v22, 0.0 }
 0x1f8   : > { %v1059_v25 = vpop.f32.mrf.mxu0  ;;  %v1252_v26 = vpop.f32.mrf.mxu1 }
 0x1f9   : > { %v1386_v29 = vmax.f32 %v1059_v25, 0.0  ;;  %v1388_v30 = vmax.f32 %v1252_v26, 0.0  ;;  %v1525_v37 = vpack.c.bf16 %v1385_v23, %v1381_v31  ;;  %v1527_v38 = vpack.c.bf16 %v1387_v24, %v1383_v32 }
 0x1fa   : > { %v1063_v33 = vpop.f32.mrf.mxu0  ;;  %v1256_v34 = vpop.f32.mrf.mxu1 }
 0x1fb   : > { %v1526_v35 = vpack.c.bf16 %v1386_v29, %v1382_v27  ;;  %v1528_v36 = vpack.c.bf16 %v1388_v30, %v1384_v28  ;;  %v1389_v51 = vmax.f32 %v1063_v33, 0.0  ;;  %v1391_v52 = vmax.f32 %v1256_v34, 0.0  ;;  %v1413_v34 = vld [vmem:[#allocation2 + $0xb0] sm:$0xff] }
 0x1fc   : > { %v1065_v39 = vpop.f32.mrf.mxu0  ;;  %v1258_v40 = vpop.f32.mrf.mxu1 }
 0x1fd   : > { %2077 = vmatprep.mubr.bf16.mxu0 %v1526_v35  ;;  %2270 = vmatprep.mubr.bf16.mxu1 %v1528_v36  ;;  %v1390_v47 = vmax.f32 %v1065_v39, 0.0  ;;  %v1392_v48 = vmax.f32 %v1258_v40, 0.0 }
 0x1fe   : > { %v1067_v41 = vpop.f32.mrf.mxu0  ;;  %v1260_v42 = vpop.f32.mrf.mxu1  ;;  %2078 = vmatmul.mubr.bf16.gmra.mxu0 %v1525_v37  ;;  %2271 = vmatmul.mubr.bf16.gmra.mxu1 %v1527_v38  ;;  %v1414_v38 = vld [vmem:[#allocation2 + $0x1b0] sm:$0xff] }
 0x1ff   : > { %v1393_v43 = vmax.f32 %v1067_v41, 0.0  ;;  %v1395_v44 = vmax.f32 %v1260_v42, 0.0 }
 0x200   : > { %v1069_v45 = vpop.f32.mrf.mxu0  ;;  %v1262_v46 = vpop.f32.mrf.mxu1 }
 0x201   : > { %v1394_v49 = vmax.f32 %v1069_v45, 0.0  ;;  %v1396_v50 = vmax.f32 %v1262_v46, 0.0  ;;  %v1529_v57 = vpack.c.bf16 %v1393_v43, %v1389_v51  ;;  %v1531_v58 = vpack.c.bf16 %v1395_v44, %v1391_v52  ;;  %v1415_v43 = vld [vmem:[#allocation2 + $0xd8] sm:$0xff] }
 0x202   : > { %v1073_v53 = vpop.f32.mrf.mxu0  ;;  %v1266_v54 = vpop.f32.mrf.mxu1 }
 0x203   : > { %v1530_v55 = vpack.c.bf16 %v1394_v49, %v1390_v47  ;;  %v1532_v56 = vpack.c.bf16 %v1396_v50, %v1392_v48  ;;  %v1397_v7 = vmax.f32 %v1073_v53, 0.0  ;;  %v1399_v8 = vmax.f32 %v1266_v54, 0.0  ;;  %v1416_v48 = vld [vmem:[#allocation2 + $0x18] sm:$0xff]  ;;  %v1417_v53 = vld [vmem:[#allocation2 + $0x50] sm:$0xff] }
 0x204   : > { %v1075_v59 = vpop.f32.mrf.mxu0  ;;  %v1268_v60 = vpop.f32.mrf.mxu1 }
 0x205   : > { %2087 = vmatprep.mubr.bf16.mxu0 %v1530_v55  ;;  %2280 = vmatprep.mubr.bf16.mxu1 %v1532_v56  ;;  %v1398_v3 = vmax.f32 %v1075_v59, 0.0  ;;  %v1400_v4 = vmax.f32 %v1268_v60, 0.0 }
 0x206   : > { %v1077_v61 = vpop.f32.mrf.mxu0  ;;  %v1270_v62 = vpop.f32.mrf.mxu1  ;;  %2088 = vmatmul.mubr.bf16.gmra.mxu0 %v1529_v57  ;;  %2281 = vmatmul.mubr.bf16.gmra.mxu1 %v1531_v58  ;;  %v1418_v58 = vld [vmem:[#allocation2 + $0x168] sm:$0xff] }
 0x207   : > { %v1401_v63 = vmax.f32 %v1077_v61, 0.0  ;;  %v1403_v0 = vmax.f32 %v1270_v62, 0.0 }
 0x208   : > { %v1079_v1 = vpop.f32.mrf.mxu0  ;;  %v1272_v2 = vpop.f32.mrf.mxu1 }
 0x209   : > { %v1402_v5 = vmax.f32 %v1079_v1, 0.0  ;;  %v1404_v6 = vmax.f32 %v1272_v2, 0.0  ;;  %v1533_v13 = vpack.c.bf16 %v1401_v63, %v1397_v7  ;;  %v1535_v14 = vpack.c.bf16 %v1403_v0, %v1399_v8  ;;  %v1419_v63 = vld [vmem:[#allocation2 + $0x130] sm:$0xff] }
 0x20a   : > { %v1083_v9 = vpop.f32.mrf.mxu0  ;;  %v1276_v10 = vpop.f32.mrf.mxu1 }
 0x20b   : > { %v1534_v11 = vpack.c.bf16 %v1402_v5, %v1398_v3  ;;  %v1536_v12 = vpack.c.bf16 %v1404_v6, %v1400_v4  ;;  %v1405_v27 = vmax.f32 %v1083_v9, 0.0  ;;  %v1407_v28 = vmax.f32 %v1276_v10, 0.0  ;;  %v1420_v4 = vld [vmem:[#allocation2 + $0x48] sm:$0xff]  ;;  %v1421_v9 = vld [vmem:[#allocation2 + $0x180] sm:$0xff] }
 0x20c   : > { %v1085_v15 = vpop.f32.mrf.mxu0  ;;  %v1278_v16 = vpop.f32.mrf.mxu1 }
 0x20d   : > { %2097 = vmatprep.mubr.bf16.mxu0 %v1534_v11  ;;  %2290 = vmatprep.mubr.bf16.mxu1 %v1536_v12  ;;  %v1406_v23 = vmax.f32 %v1085_v15, 0.0  ;;  %v1408_v24 = vmax.f32 %v1278_v16, 0.0 }
 0x20e   : > { %v1087_v17 = vpop.f32.mrf.mxu0  ;;  %v1280_v18 = vpop.f32.mrf.mxu1  ;;  %2098 = vmatmul.mubr.bf16.gmra.mxu0 %v1533_v13  ;;  %2291 = vmatmul.mubr.bf16.gmra.mxu1 %v1535_v14  ;;  %v1422_v14 = vld [vmem:[#allocation2 + $0x110] sm:$0xff] }
 0x20f   : > { %v1409_v19 = vmax.f32 %v1087_v17, 0.0  ;;  %v1411_v20 = vmax.f32 %v1280_v18, 0.0 }
 0x210   : > { %v1089_v21 = vpop.f32.mrf.mxu0  ;;  %v1282_v22 = vpop.f32.mrf.mxu1 }
 0x211   : > { %v1410_v25 = vmax.f32 %v1089_v21, 0.0  ;;  %v1412_v26 = vmax.f32 %v1282_v22, 0.0  ;;  %v1537_v31 = vpack.c.bf16 %v1409_v19, %v1405_v27  ;;  %v1539_v32 = vpack.c.bf16 %v1411_v20, %v1407_v28  ;;  %v1423_v19 = vld [vmem:[#allocation2 + $0x118] sm:$0xff] }
 0x213   : > { %v1538_v29 = vpack.c.bf16 %v1410_v25, %v1406_v23  ;;  %v1540_v30 = vpack.c.bf16 %v1412_v26, %v1408_v24  ;;  %v1424_v24 = vld [vmem:[#allocation2 + $0x98] sm:$0xff] }
 0x215   : > { %2107 = vmatprep.mubr.bf16.mxu0 %v1538_v29  ;;  %2300 = vmatprep.mubr.bf16.mxu1 %v1540_v30  ;;  %v1425_v29 = vld [vmem:[#allocation2 + $0x120] sm:$0xff] }
 0x216   : > { %2108 = vmatmul.mubr.bf16.gmra.mxu0 %v1537_v31  ;;  %2301 = vmatmul.mubr.bf16.gmra.mxu1 %v1539_v32 }
 0x25e   : > { %v1959_v33 = vpop.f32.mrf.mxu0  ;;  %v2152_v35 = vpop.f32.mrf.mxu1 }
 0x25f   : > { %v2153_v36 = vadd.f32 %v2152_v35, %v1959_v33 }
 0x260   : > { %v1961_v37 = vpop.f32.mrf.mxu0  ;;  %v2154_v39 = vpop.f32.mrf.mxu1 }
 0x261   : > { %v2311_v40 = vadd.f32 %v2153_v36, %v1413_v34  ;;  %v2155_v41 = vadd.f32 %v2154_v39, %v1961_v37  ;;  %v1426_v34 = vld [vmem:[#allocation2 + $0x150] sm:$0xff]  ;;  %v1427_v39 = vld [vmem:[#allocation2 + $0x108] sm:$0xff] }
 0x262   : > { %v1963_v42 = vpop.f32.mrf.mxu0  ;;  %v2156_v44 = vpop.f32.mrf.mxu1 }
 0x263   : > { %2375 = vst [vmem:[#allocation2 + $0xb0] sm:$0xff] %v2311_v40  ;;  %v2312_v45 = vadd.f32 %v2155_v41, %v1414_v38  ;;  %v2157_v46 = vadd.f32 %v2156_v44, %v1963_v42  ;;  %v1428_v44 = vld [vmem:[#allocation2 + $0x60] sm:$0xff] }
 0x264   : > { %v1965_v47 = vpop.f32.mrf.mxu0  ;;  %v2158_v49 = vpop.f32.mrf.mxu1 }
 0x265   : > { %2376 = vst [vmem:[#allocation2 + $0x1b0] sm:$0xff] %v2312_v45  ;;  %v2313_v50 = vadd.f32 %v2157_v46, %v1415_v43  ;;  %v2159_v51 = vadd.f32 %v2158_v49, %v1965_v47  ;;  %v1429_v49 = vld [vmem:[#allocation2 + $0xe0] sm:$0xff] }
 0x266   : > { %v1969_v52 = vpop.f32.mrf.mxu0  ;;  %v2162_v54 = vpop.f32.mrf.mxu1 }
 0x267   : > { %2377 = vst [vmem:[#allocation2 + $0xd8] sm:$0xff] %v2313_v50  ;;  %v2314_v55 = vadd.f32 %v2159_v51, %v1416_v48  ;;  %v2163_v56 = vadd.f32 %v2162_v54, %v1969_v52  ;;  %v1430_v54 = vld [vmem:[#allocation2 + $0x188] sm:$0xff] }
 0x268   : > { %v1971_v57 = vpop.f32.mrf.mxu0  ;;  %v2164_v59 = vpop.f32.mrf.mxu1 }
 0x269   : > { %2378 = vst [vmem:[#allocation2 + $0x18] sm:$0xff] %v2314_v55  ;;  %v2315_v60 = vadd.f32 %v2163_v56, %v1417_v53  ;;  %v2165_v61 = vadd.f32 %v2164_v59, %v1971_v57  ;;  %v1431_v59 = vld [vmem:[#allocation2 + $0x138] sm:$0xff] }
 0x26a   : > { %v1973_v62 = vpop.f32.mrf.mxu0  ;;  %v2166_v0 = vpop.f32.mrf.mxu1 }
 0x26b   : > { %2379 = vst [vmem:[#allocation2 + $0x50] sm:$0xff] %v2315_v60  ;;  %v2316_v1 = vadd.f32 %v2165_v61, %v1418_v58  ;;  %v2167_v2 = vadd.f32 %v2166_v0, %v1973_v62  ;;  %v1432_v0 = vld [vmem:[#allocation2 + $0x140] sm:$0xff] }
 0x26c   : > { %v1975_v3 = vpop.f32.mrf.mxu0  ;;  %v2168_v5 = vpop.f32.mrf.mxu1 }
 0x26d   : > { %2380 = vst [vmem:[#allocation2 + $0x168] sm:$0xff] %v2316_v1  ;;  %v2317_v6 = vadd.f32 %v2167_v2, %v1419_v63  ;;  %v2169_v7 = vadd.f32 %v2168_v5, %v1975_v3  ;;  %v1433_v5 = vld [vmem:[#allocation2 + $0x80] sm:$0xff] }
 0x26e   : > { %v1979_v8 = vpop.f32.mrf.mxu0  ;;  %v2172_v10 = vpop.f32.mrf.mxu1 }
 0x26f   : > { %2381 = vst [vmem:[#allocation2 + $0x130] sm:$0xff] %v2317_v6  ;;  %v2318_v11 = vadd.f32 %v2169_v7, %v1420_v4  ;;  %v2173_v12 = vadd.f32 %v2172_v10, %v1979_v8  ;;  %v1434_v10 = vld [vmem:[#allocation2 + $0x1a8] sm:$0xff] }
 0x270   : > { %v1981_v13 = vpop.f32.mrf.mxu0  ;;  %v2174_v15 = vpop.f32.mrf.mxu1 }
 0x271   : > { %2382 = vst [vmem:[#allocation2 + $0x48] sm:$0xff] %v2318_v11  ;;  %v2319_v16 = vadd.f32 %v2173_v12, %v1421_v9  ;;  %v2175_v17 = vadd.f32 %v2174_v15, %v1981_v13  ;;  %v1435_v15 = vld [vmem:[#allocation2 + $0x1b8] sm:$0xff] }
 0x272   : > { %v1983_v18 = vpop.f32.mrf.mxu0  ;;  %v2176_v20 = vpop.f32.mrf.mxu1 }
 0x273   : > { %2383 = vst [vmem:[#allocation2 + $0x180] sm:$0xff] %v2319_v16  ;;  %v2320_v21 = vadd.f32 %v2175_v17, %v1422_v14  ;;  %v2177_v22 = vadd.f32 %v2176_v20, %v1983_v18  ;;  %v1436_v20 = vld [vmem:[#allocation2 + $0x28] sm:$0xff] }
 0x274   : > { %v1985_v23 = vpop.f32.mrf.mxu0  ;;  %v2178_v25 = vpop.f32.mrf.mxu1 }
 0x275   : > { %2384 = vst [vmem:[#allocation2 + $0x110] sm:$0xff] %v2320_v21  ;;  %v2321_v26 = vadd.f32 %v2177_v22, %v1423_v19  ;;  %v2179_v27 = vadd.f32 %v2178_v25, %v1985_v23  ;;  %v1437_v25 = vld [vmem:[#allocation2 + $0x1e8] sm:$0xff] }
 0x276   : > { %v1989_v28 = vpop.f32.mrf.mxu0  ;;  %v2182_v30 = vpop.f32.mrf.mxu1 }
 0x277   : > { %2385 = vst [vmem:[#allocation2 + $0x118] sm:$0xff] %v2321_v26  ;;  %v2322_v31 = vadd.f32 %v2179_v27, %v1424_v24  ;;  %v2183_v32 = vadd.f32 %v2182_v30, %v1989_v28  ;;  %v1438_v30 = vld [vmem:[#allocation2 + $0xf8] sm:$0xff] }
 0x278   : > { %v1991_v33 = vpop.f32.mrf.mxu0  ;;  %v2184_v35 = vpop.f32.mrf.mxu1 }
 0x279   : > { %2386 = vst [vmem:[#allocation2 + $0x98] sm:$0xff] %v2322_v31  ;;  %v2323_v36 = vadd.f32 %v2183_v32, %v1425_v29  ;;  %v2185_v37 = vadd.f32 %v2184_v35, %v1991_v33  ;;  %v1439_v35 = vld [vmem:[#allocation2 + $0x160] sm:$0xff] }
 0x27a   : > { %v1993_v38 = vpop.f32.mrf.mxu0  ;;  %v2186_v40 = vpop.f32.mrf.mxu1 }
 0x27b   : > { %2387 = vst [vmem:[#allocation2 + $0x120] sm:$0xff] %v2323_v36  ;;  %v2324_v41 = vadd.f32 %v2185_v37, %v1426_v34  ;;  %v2187_v42 = vadd.f32 %v2186_v40, %v1993_v38  ;;  %v1440_v40 = vld [vmem:[#allocation2 + $0x30] sm:$0xff] }
 0x27c   : > { %v1995_v43 = vpop.f32.mrf.mxu0  ;;  %v2188_v45 = vpop.f32.mrf.mxu1 }
 0x27d   : > { %2388 = vst [vmem:[#allocation2 + $0x150] sm:$0xff] %v2324_v41  ;;  %v2325_v46 = vadd.f32 %v2187_v42, %v1427_v39  ;;  %v2189_v47 = vadd.f32 %v2188_v45, %v1995_v43  ;;  %v1441_v45 = vld [vmem:[#allocation2 + $0x1e0] sm:$0xff] }
 0x27e   : > { %v1999_v48 = vpop.f32.mrf.mxu0  ;;  %v2192_v50 = vpop.f32.mrf.mxu1 }
 0x27f   : > { %2389 = vst [vmem:[#allocation2 + $0x108] sm:$0xff] %v2325_v46  ;;  %v2326_v51 = vadd.f32 %v2189_v47, %v1428_v44  ;;  %v2193_v52 = vadd.f32 %v2192_v50, %v1999_v48  ;;  %v1442_v50 = vld [vmem:[#allocation2] sm:$0xff] }
 0x280   : > { %v2001_v53 = vpop.f32.mrf.mxu0  ;;  %v2194_v55 = vpop.f32.mrf.mxu1 }
 0x281   : > { %2390 = vst [vmem:[#allocation2 + $0x60] sm:$0xff] %v2326_v51  ;;  %v2327_v56 = vadd.f32 %v2193_v52, %v1429_v49  ;;  %v2195_v57 = vadd.f32 %v2194_v55, %v2001_v53  ;;  %v1443_v55 = vld [vmem:[#allocation2 + $0xf0] sm:$0xff] }
 0x282   : > { %v2003_v58 = vpop.f32.mrf.mxu0  ;;  %v2196_v60 = vpop.f32.mrf.mxu1 }
 0x283   : > { %2391 = vst [vmem:[#allocation2 + $0xe0] sm:$0xff] %v2327_v56  ;;  %v2328_v61 = vadd.f32 %v2195_v57, %v1430_v54  ;;  %v2197_v62 = vadd.f32 %v2196_v60, %v2003_v58  ;;  %v1444_v60 = vld [vmem:[#allocation2 + $0x8] sm:$0xff] }
 0x284   : > { %v2005_v63 = vpop.f32.mrf.mxu0  ;;  %v2198_v1 = vpop.f32.mrf.mxu1 }
 0x285   : > { %2392 = vst [vmem:[#allocation2 + $0x188] sm:$0xff] %v2328_v61  ;;  %v2329_v2 = vadd.f32 %v2197_v62, %v1431_v59  ;;  %v2199_v3 = vadd.f32 %v2198_v1, %v2005_v63  ;;  %v1445_v1 = vld [vmem:[#allocation2 + $0x148] sm:$0xff] }
 0x286   : > { %v2009_v4 = vpop.f32.mrf.mxu0  ;;  %v2202_v6 = vpop.f32.mrf.mxu1 }
 0x287   : > { %2393 = vst [vmem:[#allocation2 + $0x138] sm:$0xff] %v2329_v2  ;;  %v2330_v7 = vadd.f32 %v2199_v3, %v1432_v0  ;;  %v2203_v8 = vadd.f32 %v2202_v6, %v2009_v4  ;;  %v1446_v6 = vld [vmem:[#allocation2 + $0x1d0] sm:$0xff] }
 0x288   : > { %v2011_v9 = vpop.f32.mrf.mxu0  ;;  %v2204_v11 = vpop.f32.mrf.mxu1 }
 0x289   : > { %2394 = vst [vmem:[#allocation2 + $0x140] sm:$0xff] %v2330_v7  ;;  %v2331_v12 = vadd.f32 %v2203_v8, %v1433_v5  ;;  %v2205_v13 = vadd.f32 %v2204_v11, %v2011_v9  ;;  %v1447_v11 = vld [vmem:[#allocation2 + $0x100] sm:$0xff] }
 0x28a   : > { %v2013_v14 = vpop.f32.mrf.mxu0  ;;  %v2206_v16 = vpop.f32.mrf.mxu1 }
 0x28b   : > { %2395 = vst [vmem:[#allocation2 + $0x80] sm:$0xff] %v2331_v12  ;;  %v2332_v17 = vadd.f32 %v2205_v13, %v1434_v10  ;;  %v2207_v18 = vadd.f32 %v2206_v16, %v2013_v14  ;;  %v1448_v16 = vld [vmem:[#allocation2 + $0xc8] sm:$0xff] }
 0x28c   : > { %v2015_v19 = vpop.f32.mrf.mxu0  ;;  %v2208_v21 = vpop.f32.mrf.mxu1 }
 0x28d   : > { %2396 = vst [vmem:[#allocation2 + $0x1a8] sm:$0xff] %v2332_v17  ;;  %v2333_v22 = vadd.f32 %v2207_v18, %v1435_v15  ;;  %v2209_v23 = vadd.f32 %v2208_v21, %v2015_v19  ;;  %v1449_v21 = vld [vmem:[#allocation2 + $0x40] sm:$0xff] }
 0x28e   : > { %v2019_v24 = vpop.f32.mrf.mxu0  ;;  %v2212_v26 = vpop.f32.mrf.mxu1 }
 0x28f   : > { %2397 = vst [vmem:[#allocation2 + $0x1b8] sm:$0xff] %v2333_v22  ;;  %v2334_v27 = vadd.f32 %v2209_v23, %v1436_v20  ;;  %v2213_v28 = vadd.f32 %v2212_v26, %v2019_v24  ;;  %v1450_v26 = vld [vmem:[#allocation2 + $0x1f8] sm:$0xff] }
 0x290   : > { %v2021_v29 = vpop.f32.mrf.mxu0  ;;  %v2214_v31 = vpop.f32.mrf.mxu1 }
 0x291   : > { %2398 = vst [vmem:[#allocation2 + $0x28] sm:$0xff] %v2334_v27  ;;  %v2335_v32 = vadd.f32 %v2213_v28, %v1437_v25  ;;  %v2215_v33 = vadd.f32 %v2214_v31, %v2021_v29  ;;  %v1451_v31 = vld [vmem:[#allocation2 + $0x20] sm:$0xff] }
 0x292   : > { %v2023_v34 = vpop.f32.mrf.mxu0  ;;  %v2216_v36 = vpop.f32.mrf.mxu1 }
 0x293   : > { %2399 = vst [vmem:[#allocation2 + $0x1e8] sm:$0xff] %v2335_v32  ;;  %v2336_v37 = vadd.f32 %v2215_v33, %v1438_v30  ;;  %v2217_v38 = vadd.f32 %v2216_v36, %v2023_v34  ;;  %v1452_v36 = vld [vmem:[#allocation2 + $0x128] sm:$0xff] }
 0x294   : > { %v2025_v39 = vpop.f32.mrf.mxu0  ;;  %v2218_v41 = vpop.f32.mrf.mxu1 }
 0x295   : > { %2400 = vst [vmem:[#allocation2 + $0xf8] sm:$0xff] %v2336_v37  ;;  %v2337_v42 = vadd.f32 %v2217_v38, %v1439_v35  ;;  %v2219_v43 = vadd.f32 %v2218_v41, %v2025_v39  ;;  %v1453_v41 = vld [vmem:[#allocation2 + $0x1a0] sm:$0xff] }
 0x296   : > { %v2029_v44 = vpop.f32.mrf.mxu0  ;;  %v2222_v46 = vpop.f32.mrf.mxu1 }
 0x297   : > { %2401 = vst [vmem:[#allocation2 + $0x160] sm:$0xff] %v2337_v42  ;;  %v2338_v47 = vadd.f32 %v2219_v43, %v1440_v40  ;;  %v2223_v48 = vadd.f32 %v2222_v46, %v2029_v44  ;;  %v1454_v46 = vld [vmem:[#allocation2 + $0x1f0] sm:$0xff] }
 0x298   : > { %v2031_v49 = vpop.f32.mrf.mxu0  ;;  %v2224_v51 = vpop.f32.mrf.mxu1 }
 0x299   : > { %2402 = vst [vmem:[#allocation2 + $0x30] sm:$0xff] %v2338_v47  ;;  %v2339_v52 = vadd.f32 %v2223_v48, %v1441_v45  ;;  %v2225_v53 = vadd.f32 %v2224_v51, %v2031_v49  ;;  %v1455_v51 = vld [vmem:[#allocation2 + $0xe8] sm:$0xff] }
 0x29a   : > { %v2033_v54 = vpop.f32.mrf.mxu0  ;;  %v2226_v56 = vpop.f32.mrf.mxu1 }
 0x29b   : > { %2403 = vst [vmem:[#allocation2 + $0x1e0] sm:$0xff] %v2339_v52  ;;  %v2340_v57 = vadd.f32 %v2225_v53, %v1442_v50  ;;  %v2227_v58 = vadd.f32 %v2226_v56, %v2033_v54  ;;  %v1456_v56 = vld [vmem:[#allocation2 + $0x78] sm:$0xff] }
 0x29c   : > { %v2035_v59 = vpop.f32.mrf.mxu0  ;;  %v2228_v61 = vpop.f32.mrf.mxu1 }
 0x29d   : > { %2404 = vst [vmem:[#allocation2] sm:$0xff] %v2340_v57  ;;  %v2341_v62 = vadd.f32 %v2227_v58, %v1443_v55  ;;  %v2229_v63 = vadd.f32 %v2228_v61, %v2035_v59  ;;  %v1457_v61 = vld [vmem:[#allocation2 + $0x70] sm:$0xff] }
 0x29e   : > { %v2039_v0 = vpop.f32.mrf.mxu0  ;;  %v2232_v2 = vpop.f32.mrf.mxu1 }
 0x29f   : > { %2405 = vst [vmem:[#allocation2 + $0xf0] sm:$0xff] %v2341_v62  ;;  %v2342_v3 = vadd.f32 %v2229_v63, %v1444_v60  ;;  %v2233_v4 = vadd.f32 %v2232_v2, %v2039_v0  ;;  %v1458_v2 = vld [vmem:[#allocation2 + $0x90] sm:$0xff] }
 0x2a0   : > { %v2041_v5 = vpop.f32.mrf.mxu0  ;;  %v2234_v7 = vpop.f32.mrf.mxu1 }
 0x2a1   : > { %2406 = vst [vmem:[#allocation2 + $0x8] sm:$0xff] %v2342_v3  ;;  %v2343_v8 = vadd.f32 %v2233_v4, %v1445_v1  ;;  %v2235_v9 = vadd.f32 %v2234_v7, %v2041_v5  ;;  %v1459_v7 = vld [vmem:[#allocation2 + $0x1d8] sm:$0xff] }
 0x2a2   : > { %v2043_v10 = vpop.f32.mrf.mxu0  ;;  %v2236_v12 = vpop.f32.mrf.mxu1 }
 0x2a3   : > { %2407 = vst [vmem:[#allocation2 + $0x148] sm:$0xff] %v2343_v8  ;;  %v2344_v13 = vadd.f32 %v2235_v9, %v1446_v6  ;;  %v2237_v14 = vadd.f32 %v2236_v12, %v2043_v10  ;;  %v1460_v12 = vld [vmem:[#allocation2 + $0xd0] sm:$0xff] }
 0x2a4   : > { %v2045_v15 = vpop.f32.mrf.mxu0  ;;  %v2238_v17 = vpop.f32.mrf.mxu1 }
 0x2a5   : > { %2408 = vst [vmem:[#allocation2 + $0x1d0] sm:$0xff] %v2344_v13  ;;  %v2345_v18 = vadd.f32 %v2237_v14, %v1447_v11  ;;  %v2239_v19 = vadd.f32 %v2238_v17, %v2045_v15  ;;  %v1461_v17 = vld [vmem:[#allocation2 + $0xb8] sm:$0xff] }
 0x2a6   : > { %v2049_v20 = vpop.f32.mrf.mxu0  ;;  %v2242_v22 = vpop.f32.mrf.mxu1 }
 0x2a7   : > { %2409 = vst [vmem:[#allocation2 + $0x100] sm:$0xff] %v2345_v18  ;;  %v2346_v23 = vadd.f32 %v2239_v19, %v1448_v16  ;;  %v2243_v24 = vadd.f32 %v2242_v22, %v2049_v20  ;;  %v1462_v22 = vld [vmem:[#allocation2 + $0x88] sm:$0xff] }
 0x2a8   : > { %v2051_v25 = vpop.f32.mrf.mxu0  ;;  %v2244_v27 = vpop.f32.mrf.mxu1 }
 0x2a9   : > { %2410 = vst [vmem:[#allocation2 + $0xc8] sm:$0xff] %v2346_v23  ;;  %v2347_v28 = vadd.f32 %v2243_v24, %v1449_v21  ;;  %v2245_v29 = vadd.f32 %v2244_v27, %v2051_v25  ;;  %v1463_v27 = vld [vmem:[#allocation2 + $0xa8] sm:$0xff] }
 0x2aa   : > { %v2053_v30 = vpop.f32.mrf.mxu0  ;;  %v2246_v32 = vpop.f32.mrf.mxu1 }
 0x2ab   : > { %2411 = vst [vmem:[#allocation2 + $0x40] sm:$0xff] %v2347_v28  ;;  %v2348_v33 = vadd.f32 %v2245_v29, %v1450_v26  ;;  %v2247_v34 = vadd.f32 %v2246_v32, %v2053_v30  ;;  %v1464_v32 = vld [vmem:[#allocation2 + $0x1c8] sm:$0xff] }
 0x2ac   : > { %v2055_v35 = vpop.f32.mrf.mxu0  ;;  %v2248_v37 = vpop.f32.mrf.mxu1 }
 0x2ad   : > { %2412 = vst [vmem:[#allocation2 + $0x1f8] sm:$0xff] %v2348_v33  ;;  %v2349_v38 = vadd.f32 %v2247_v34, %v1451_v31  ;;  %v2249_v39 = vadd.f32 %v2248_v37, %v2055_v35  ;;  %v1465_v37 = vld [vmem:[#allocation2 + $0x170] sm:$0xff] }
 0x2ae   : > { %v2059_v40 = vpop.f32.mrf.mxu0  ;;  %v2252_v42 = vpop.f32.mrf.mxu1 }
 0x2af   : > { %2413 = vst [vmem:[#allocation2 + $0x20] sm:$0xff] %v2349_v38  ;;  %v2350_v43 = vadd.f32 %v2249_v39, %v1452_v36  ;;  %v2253_v44 = vadd.f32 %v2252_v42, %v2059_v40  ;;  %v1466_v42 = vld [vmem:[#allocation2 + $0x178] sm:$0xff] }
 0x2b0   : > { %v2061_v45 = vpop.f32.mrf.mxu0  ;;  %v2254_v47 = vpop.f32.mrf.mxu1 }
 0x2b1   : > { %2414 = vst [vmem:[#allocation2 + $0x128] sm:$0xff] %v2350_v43  ;;  %v2351_v48 = vadd.f32 %v2253_v44, %v1453_v41  ;;  %v2255_v49 = vadd.f32 %v2254_v47, %v2061_v45  ;;  %v1467_v47 = vld [vmem:[#allocation2 + $0x68] sm:$0xff] }
 0x2b2   : > { %v2063_v50 = vpop.f32.mrf.mxu0  ;;  %v2256_v52 = vpop.f32.mrf.mxu1 }
 0x2b3   : > { %2415 = vst [vmem:[#allocation2 + $0x1a0] sm:$0xff] %v2351_v48  ;;  %v2352_v53 = vadd.f32 %v2255_v49, %v1454_v46  ;;  %v2257_v54 = vadd.f32 %v2256_v52, %v2063_v50  ;;  %v1468_v52 = vld [vmem:[#allocation2 + $0x190] sm:$0xff] }
 0x2b4   : > { %v2065_v55 = vpop.f32.mrf.mxu0  ;;  %v2258_v57 = vpop.f32.mrf.mxu1 }
 0x2b5   : > { %2416 = vst [vmem:[#allocation2 + $0x1f0] sm:$0xff] %v2352_v53  ;;  %v2353_v58 = vadd.f32 %v2257_v54, %v1455_v51  ;;  %v2259_v59 = vadd.f32 %v2258_v57, %v2065_v55  ;;  %v1469_v57 = vld [vmem:[#allocation2 + $0x198] sm:$0xff] }
 0x2b6   : > { %v2069_v60 = vpop.f32.mrf.mxu0  ;;  %v2262_v62 = vpop.f32.mrf.mxu1 }
 0x2b7   : > { %2417 = vst [vmem:[#allocation2 + $0xe8] sm:$0xff] %v2353_v58  ;;  %v2354_v63 = vadd.f32 %v2259_v59, %v1456_v56  ;;  %v2263_v0 = vadd.f32 %v2262_v62, %v2069_v60  ;;  %v1470_v62 = vld [vmem:[#allocation2 + $0x38] sm:$0xff] }
 0x2b8   : > { %v2071_v1 = vpop.f32.mrf.mxu0  ;;  %v2264_v3 = vpop.f32.mrf.mxu1 }
 0x2b9   : > { %2418 = vst [vmem:[#allocation2 + $0x78] sm:$0xff] %v2354_v63  ;;  %v2355_v4 = vadd.f32 %v2263_v0, %v1457_v61  ;;  %v2265_v5 = vadd.f32 %v2264_v3, %v2071_v1  ;;  %v1471_v3 = vld [vmem:[#allocation2 + $0xc0] sm:$0xff] }
 0x2ba   : > { %v2073_v6 = vpop.f32.mrf.mxu0  ;;  %v2266_v8 = vpop.f32.mrf.mxu1 }
 0x2bb   : > { %2419 = vst [vmem:[#allocation2 + $0x70] sm:$0xff] %v2355_v4  ;;  %v2356_v9 = vadd.f32 %v2265_v5, %v1458_v2  ;;  %v2267_v10 = vadd.f32 %v2266_v8, %v2073_v6  ;;  %v1472_v8 = vld [vmem:[#allocation2 + $0x1c0] sm:$0xff] }
 0x2bc   : > { %v2075_v11 = vpop.f32.mrf.mxu0  ;;  %v2268_v13 = vpop.f32.mrf.mxu1 }
 0x2bd   : > { %2420 = vst [vmem:[#allocation2 + $0x90] sm:$0xff] %v2356_v9  ;;  %v2357_v14 = vadd.f32 %v2267_v10, %v1459_v7  ;;  %v2269_v15 = vadd.f32 %v2268_v13, %v2075_v11  ;;  %v1473_v13 = vld [vmem:[#allocation2 + $0x158] sm:$0xff] }
 0x2be   : > { %v2079_v16 = vpop.f32.mrf.mxu0  ;;  %v2272_v18 = vpop.f32.mrf.mxu1 }
 0x2bf   : > { %2421 = vst [vmem:[#allocation2 + $0x1d8] sm:$0xff] %v2357_v14  ;;  %v2358_v19 = vadd.f32 %v2269_v15, %v1460_v12  ;;  %v2273_v20 = vadd.f32 %v2272_v18, %v2079_v16  ;;  %v1474_v18 = vld [vmem:[#allocation2 + $0x10] sm:$0xff] }
 0x2c0   : > { %v2081_v21 = vpop.f32.mrf.mxu0  ;;  %v2274_v23 = vpop.f32.mrf.mxu1 }
 0x2c1   : > { %2422 = vst [vmem:[#allocation2 + $0xd0] sm:$0xff] %v2358_v19  ;;  %v2359_v24 = vadd.f32 %v2273_v20, %v1461_v17  ;;  %v2275_v25 = vadd.f32 %v2274_v23, %v2081_v21  ;;  %v1475_v23 = vld [vmem:[#allocation2 + $0x58] sm:$0xff] }
 0x2c2   : > { %v2083_v26 = vpop.f32.mrf.mxu0  ;;  %v2276_v28 = vpop.f32.mrf.mxu1 }
 0x2c3   : > { %2423 = vst [vmem:[#allocation2 + $0xb8] sm:$0xff] %v2359_v24  ;;  %v2360_v29 = vadd.f32 %v2275_v25, %v1462_v22  ;;  %v2277_v30 = vadd.f32 %v2276_v28, %v2083_v26  ;;  %v1476_v28 = vld [vmem:[#allocation2 + $0xa0] sm:$0xff] }
 0x2c4   : > { %v2085_v31 = vpop.f32.mrf.mxu0  ;;  %v2278_v33 = vpop.f32.mrf.mxu1 }
 0x2c5   : > { %2424 = vst [vmem:[#allocation2 + $0x88] sm:$0xff] %v2360_v29  ;;  %v2361_v34 = vadd.f32 %v2277_v30, %v1463_v27  ;;  %v2279_v35 = vadd.f32 %v2278_v33, %v2085_v31 }
 0x2c6   : > { %v2089_v36 = vpop.f32.mrf.mxu0  ;;  %v2282_v38 = vpop.f32.mrf.mxu1 }
 0x2c7   : > { %2425 = vst [vmem:[#allocation2 + $0xa8] sm:$0xff] %v2361_v34  ;;  %v2362_v39 = vadd.f32 %v2279_v35, %v1464_v32  ;;  %v2283_v40 = vadd.f32 %v2282_v38, %v2089_v36 }
 0x2c8   : > { %v2091_v41 = vpop.f32.mrf.mxu0  ;;  %v2284_v43 = vpop.f32.mrf.mxu1 }
 0x2c9   : > { %2426 = vst [vmem:[#allocation2 + $0x1c8] sm:$0xff] %v2362_v39  ;;  %v2363_v44 = vadd.f32 %v2283_v40, %v1465_v37  ;;  %v2285_v45 = vadd.f32 %v2284_v43, %v2091_v41 }
 0x2ca   : > { %v2093_v46 = vpop.f32.mrf.mxu0  ;;  %v2286_v48 = vpop.f32.mrf.mxu1 }
 0x2cb   : > { %2427 = vst [vmem:[#allocation2 + $0x170] sm:$0xff] %v2363_v44  ;;  %v2364_v49 = vadd.f32 %v2285_v45, %v1466_v42  ;;  %v2287_v50 = vadd.f32 %v2286_v48, %v2093_v46 }
 0x2cc   : > { %v2095_v51 = vpop.f32.mrf.mxu0  ;;  %v2288_v53 = vpop.f32.mrf.mxu1 }
 0x2cd   : > { %2428 = vst [vmem:[#allocation2 + $0x178] sm:$0xff] %v2364_v49  ;;  %v2365_v54 = vadd.f32 %v2287_v50, %v1467_v47  ;;  %v2289_v55 = vadd.f32 %v2288_v53, %v2095_v51 }
 0x2ce   : > { %v2099_v56 = vpop.f32.mrf.mxu0  ;;  %v2292_v58 = vpop.f32.mrf.mxu1 }
 0x2cf   : > { %2429 = vst [vmem:[#allocation2 + $0x68] sm:$0xff] %v2365_v54  ;;  %v2366_v59 = vadd.f32 %v2289_v55, %v1468_v52  ;;  %v2293_v60 = vadd.f32 %v2292_v58, %v2099_v56 }
 0x2d0   : > { %v2101_v61 = vpop.f32.mrf.mxu0  ;;  %v2294_v63 = vpop.f32.mrf.mxu1 }
 0x2d1   : > { %2430 = vst [vmem:[#allocation2 + $0x190] sm:$0xff] %v2366_v59  ;;  %v2367_v0 = vadd.f32 %v2293_v60, %v1469_v57  ;;  %v2295_v1 = vadd.f32 %v2294_v63, %v2101_v61 }
 0x2d2   : > { %v2103_v2 = vpop.f32.mrf.mxu0  ;;  %v2296_v4 = vpop.f32.mrf.mxu1 }
 0x2d3   : > { %2431 = vst [vmem:[#allocation2 + $0x198] sm:$0xff] %v2367_v0  ;;  %v2368_v5 = vadd.f32 %v2295_v1, %v1470_v62  ;;  %v2297_v6 = vadd.f32 %v2296_v4, %v2103_v2 }
 0x2d4   : > { %v2105_v7 = vpop.f32.mrf.mxu0  ;;  %v2298_v9 = vpop.f32.mrf.mxu1 }
 0x2d5   : > { %2432 = vst [vmem:[#allocation2 + $0x38] sm:$0xff] %v2368_v5  ;;  %v2369_v10 = vadd.f32 %v2297_v6, %v1471_v3  ;;  %v2299_v11 = vadd.f32 %v2298_v9, %v2105_v7 }
 0x2d6   : > { %v2109_v12 = vpop.f32.mrf.mxu0  ;;  %v2302_v14 = vpop.f32.mrf.mxu1 }
 0x2d7   : > { %2433 = vst [vmem:[#allocation2 + $0xc0] sm:$0xff] %v2369_v10  ;;  %v2370_v15 = vadd.f32 %v2299_v11, %v1472_v8  ;;  %v2303_v16 = vadd.f32 %v2302_v14, %v2109_v12 }
 0x2d8   : > { %v2111_v17 = vpop.f32.mrf.mxu0  ;;  %v2304_v19 = vpop.f32.mrf.mxu1 }
 0x2d9   : > { %2434 = vst [vmem:[#allocation2 + $0x1c0] sm:$0xff] %v2370_v15  ;;  %v2371_v20 = vadd.f32 %v2303_v16, %v1473_v13  ;;  %v2305_v21 = vadd.f32 %v2304_v19, %v2111_v17 }
 0x2da   : > { %v2113_v22 = vpop.f32.mrf.mxu0  ;;  %v2306_v24 = vpop.f32.mrf.mxu1 }
 0x2db   : > { %2435 = vst [vmem:[#allocation2 + $0x158] sm:$0xff] %v2371_v20  ;;  %v2372_v25 = vadd.f32 %v2305_v21, %v1474_v18  ;;  %v2307_v26 = vadd.f32 %v2306_v24, %v2113_v22 }
 0x2dc   : > { %v2115_v27 = vpop.f32.mrf.mxu0  ;;  %v2308_v29 = vpop.f32.mrf.mxu1 }
 0x2dd   : > { %2436 = vst [vmem:[#allocation2 + $0x10] sm:$0xff] %v2372_v25  ;;  %v2373_v30 = vadd.f32 %v2307_v26, %v1475_v23  ;;  %v2309_v31 = vadd.f32 %v2308_v29, %v2115_v27  ;;  %2442 = sbr.rel (%p3665_p11) target bundleno = 1126 (0x466), region = 60 }
 0x2df   : > { %2437 = vst [vmem:[#allocation2 + $0x58] sm:$0xff] %v2373_v30  ;;  %v2374_v32 = vadd.f32 %v2309_v31, %v1476_v28 }
 0x2e1   : > { %2438 = vst [vmem:[#allocation2 + $0xa0] sm:$0xff] %v2374_v32 }
 0x2e2   : > { %v2443_v33 = vld [vmem:[%s4508_s14] sm:$0xff]  ;;  %v2444_v34 = vld [vmem:[%s4508_s14 + $0x8] sm:$0xff]  ;;  %v2507_v35 = vld [vmem:[#allocation2 + $0xb0] sm:$0xff]  ;;  %s5841_s12 = sld [smem:[#allocation45_spill]] }
 0x2e3   : > { %v2508_v36 = vld [vmem:[#allocation2 + $0x1b0] sm:$0xff]  ;;  %v4786_v37 = vadd.f32 %v2507_v35, %v2443_v33  ;;  %v2447_v38 = vld [vmem:[%s4508_s14 + $0x20] sm:$0xff]  ;;  %v2448_v39 = vld [vmem:[%s4508_s14 + $0x28] sm:$0xff] }
 0x2e4   : > { %v4790_v40 = vadd.f32 %v2508_v36, %v2444_v34  ;;  %v2511_v41 = vld [vmem:[#allocation2 + $0x50] sm:$0xff]  ;;  %v2512_v42 = vld [vmem:[#allocation2 + $0x168] sm:$0xff]  ;;  %v2446_v46 = vld [vmem:[%s4508_s14 + $0x18] sm:$0xff] }
 0x2e5   : > { %v2445_v43 = vld [vmem:[%s4508_s14 + $0x10] sm:$0xff]  ;;  %v4793_v44 = vadd.f32 %v2511_v41, %v2447_v38  ;;  %v4795_v45 = vadd.f32 %v2512_v42, %v2448_v39  ;;  %v2509_v47 = vld [vmem:[#allocation2 + $0xd8] sm:$0xff]  ;;  %v2514_v56 = vld [vmem:[#allocation2 + $0x48] sm:$0xff] }
 0x2e6   : > { %v2510_v48 = vld [vmem:[#allocation2 + $0x18] sm:$0xff]  ;;  %v2637_v49 = vadd.f32 %v4790_v40, %v4786_v37  ;;  %v4800_v50 = vadd.f32 %v2509_v47, %v2445_v43  ;;  %v2449_v52 = vld [vmem:[%s4508_s14 + $0x30] sm:$0xff]  ;;  %v2451_v58 = vld [vmem:[%s4508_s14 + $0x40] sm:$0xff] }
 0x2e7   : > { %v4802_v51 = vadd.f32 %v2510_v48, %v2446_v46  ;;  %v2450_v53 = vld [vmem:[%s4508_s14 + $0x38] sm:$0xff]  ;;  %v2513_v54 = vld [vmem:[#allocation2 + $0x130] sm:$0xff]  ;;  %v2643_v55 = vadd.f32 %v4795_v45, %v4793_v44  ;;  %v2452_v59 = vld [vmem:[%s4508_s14 + $0x48] sm:$0xff] }
 0x2e8   : > { %v4808_v57 = vadd.f32 %v2513_v54, %v2449_v52  ;;  %2638 = vadd.xlane.f32.xlu0 %v2637_v49  ;;  %v4814_v61 = vadd.f32 %v2514_v56, %v2450_v53  ;;  %v2515_v62 = vld [vmem:[#allocation2 + $0x180] sm:$0xff]  ;;  %v2516_v63 = vld [vmem:[#allocation2 + $0x110] sm:$0xff]  ;;  %v2454_v3 = vld [vmem:[%s4508_s14 + $0x58] sm:$0xff] }
 0x2e9   : > { %v2640_v60 = vadd.f32 %v4802_v51, %v4800_v50  ;;  %v2453_v0 = vld [vmem:[%s4508_s14 + $0x50] sm:$0xff]  ;;  %2644 = vadd.xlane.f32.xlu1 %v2643_v55  ;;  %v4817_v1 = vadd.f32 %v2515_v62, %v2451_v58  ;;  %v4819_v2 = vadd.f32 %v2516_v63, %v2452_v59  ;;  %v2517_v4 = vld [vmem:[#allocation2 + $0x118] sm:$0xff]  ;;  %v2455_v9 = vld [vmem:[%s4508_s14 + $0x60] sm:$0xff] }
 0x2ea   : > { %v2518_v5 = vld [vmem:[#allocation2 + $0x98] sm:$0xff]  ;;  %v2646_v6 = vadd.f32 %v4814_v61, %v4808_v57  ;;  %v4824_v7 = vadd.f32 %v2517_v4, %v2453_v0  ;;  %v2456_v10 = vld [vmem:[%s4508_s14 + $0x68] sm:$0xff]  ;;  %v2519_v11 = vld [vmem:[#allocation2 + $0x120] sm:$0xff] }
 0x2eb   : > { %v4826_v8 = vadd.f32 %v2518_v5, %v2454_v3  ;;  %v2520_v12 = vld [vmem:[#allocation2 + $0x150] sm:$0xff]  ;;  %v2458_v14 = vld [vmem:[%s4508_s14 + $0x78] sm:$0xff]  ;;  %v2649_v15 = vadd.f32 %v4819_v2, %v4817_v1  ;;  %v4834_v16 = vadd.f32 %v2519_v11, %v2455_v9  ;;  %v2521_v18 = vld [vmem:[#allocation2 + $0x108] sm:$0xff] }
 0x2ec   : > { %v2457_v13 = vld [vmem:[%s4508_s14 + $0x70] sm:$0xff]  ;;  %2641 = vadd.xlane.f32.xlu0 %v2640_v60  ;;  %v4836_v17 = vadd.f32 %v2520_v12, %v2456_v10  ;;  %v2522_v19 = vld [vmem:[#allocation2 + $0x60] sm:$0xff]  ;;  %v2460_v24 = vld [vmem:[%s4508_s14 + $0x88] sm:$0xff] }
 0x2ed   : > { %v2459_v20 = vld [vmem:[%s4508_s14 + $0x80] sm:$0xff]  ;;  %2647 = vadd.xlane.f32.xlu1 %v2646_v6  ;;  %v2652_v21 = vadd.f32 %v4826_v8, %v4824_v7  ;;  %v4841_v22 = vadd.f32 %v2521_v18, %v2457_v13  ;;  %v4843_v23 = vadd.f32 %v2522_v19, %v2458_v14  ;;  %v2524_v26 = vld [vmem:[#allocation2 + $0x188] sm:$0xff]  ;;  %v2461_v27 = vld [vmem:[%s4508_s14 + $0x90] sm:$0xff] }
 0x2ee   : > { %v2523_v25 = vld [vmem:[#allocation2 + $0xe0] sm:$0xff]  ;;  %v2462_v28 = vld [vmem:[%s4508_s14 + $0x98] sm:$0xff]  ;;  %v2655_v31 = vadd.f32 %v4836_v17, %v4834_v16  ;;  %v4852_v33 = vadd.f32 %v2524_v26, %v2460_v24  ;;  %v2464_v35 = vld [vmem:[%s4508_s14 + $0xa8] sm:$0xff] }
 0x2ef   : > { %v2525_v29 = vld [vmem:[#allocation2 + $0x138] sm:$0xff]  ;;  %v2526_v30 = vld [vmem:[#allocation2 + $0x140] sm:$0xff]  ;;  %v4850_v32 = vadd.f32 %v2523_v25, %v2459_v20  ;;  %v2658_v36 = vadd.f32 %v4843_v23, %v4841_v22  ;;  %v2528_v42 = vld [vmem:[#allocation2 + $0x1a8] sm:$0xff] }
 0x2f0   : > { %2650 = vadd.xlane.f32.xlu0 %v2649_v15  ;;  %v2463_v34 = vld [vmem:[%s4508_s14 + $0xa0] sm:$0xff]  ;;  %v4858_v38 = vadd.f32 %v2525_v29, %v2461_v27  ;;  %v4860_v39 = vadd.f32 %v2526_v30, %v2462_v28  ;;  %v2465_v43 = vld [vmem:[%s4508_s14 + $0xb0] sm:$0xff]  ;;  %v2466_v46 = vld [vmem:[%s4508_s14 + $0xb8] sm:$0xff]  ;;  %v4868_v53 = vadd.f32 %v2528_v42, %v2464_v35 }
 0x2f1   : > { %2653 = vadd.xlane.f32.xlu1 %v2652_v21  ;;  %v2527_v41 = vld [vmem:[#allocation2 + $0x80] sm:$0xff]  ;;  %v2529_v47 = vld [vmem:[#allocation2 + $0x1b8] sm:$0xff]  ;;  %v2530_v48 = vld [vmem:[#allocation2 + $0x28] sm:$0xff]  ;;  %v2661_v49 = vadd.f32 %v4852_v33, %v4850_v32 }
 0x2f2   : > { %v4866_v52 = vadd.f32 %v2527_v41, %v2463_v34  ;;  %v2467_v54 = vld [vmem:[%s4508_s14 + $0xc0] sm:$0xff]  ;;  %v2468_v55 = vld [vmem:[%s4508_s14 + $0xc8] sm:$0xff]  ;;  %v2664_v56 = vadd.f32 %v4860_v39, %v4858_v38  ;;  %v4874_v58 = vadd.f32 %v2529_v47, %v2465_v43  ;;  %v4876_v59 = vadd.f32 %v2530_v48, %v2466_v46  ;;  %v2532_v62 = vld [vmem:[#allocation2 + $0xf8] sm:$0xff] }
 0x2f3   : > { %v2531_v60 = vld [vmem:[#allocation2 + $0x1e8] sm:$0xff]  ;;  %v2469_v63 = vld [vmem:[%s4508_s14 + $0xd0] sm:$0xff]  ;;  %v2470_v0 = vld [vmem:[%s4508_s14 + $0xd8] sm:$0xff]  ;;  %v4884_v9 = vadd.f32 %v2532_v62, %v2468_v55 }
 0x2f4   : > { %2656 = vadd.xlane.f32.xlu0 %v2655_v31  ;;  %v2533_v3 = vld [vmem:[#allocation2 + $0x160] sm:$0xff]  ;;  %v2534_v4 = vld [vmem:[#allocation2 + $0x30] sm:$0xff]  ;;  %v2667_v5 = vadd.f32 %v4868_v53, %v4866_v52  ;;  %v4882_v6 = vadd.f32 %v2531_v60, %v2467_v54  ;;  %v2472_v11 = vld [vmem:[%s4508_s14 + $0xe8] sm:$0xff]  ;;  %v2670_v12 = vadd.f32 %v4876_v59, %v4874_v58 }
 0x2f5   : > { %2659 = vadd.xlane.f32.xlu1 %v2658_v36  ;;  %v2471_v10 = vld [vmem:[%s4508_s14 + $0xe0] sm:$0xff]  ;;  %v4890_v13 = vadd.f32 %v2533_v3, %v2469_v63  ;;  %v4892_v14 = vadd.f32 %v2534_v4, %v2470_v0  ;;  %v2473_v19 = vld [vmem:[%s4508_s14 + $0xf0] sm:$0xff]  ;;  %v2474_v20 = vld [vmem:[%s4508_s14 + $0xf8] sm:$0xff] }
 0x2f6   : > { %v2535_v15 = vld [vmem:[#allocation2 + $0x1e0] sm:$0xff]  ;;  %v2537_v21 = vld [vmem:[#allocation2 + $0xf0] sm:$0xff]  ;;  %v2538_v24 = vld [vmem:[#allocation2 + $0x8] sm:$0xff]  ;;  %v2673_v25 = vadd.f32 %v4884_v9, %v4882_v6 }
 0x2f7   : > { %v2536_v18 = vld [vmem:[#allocation2] sm:$0xff]  ;;  %v4898_v26 = vadd.f32 %v2535_v15, %v2471_v10  ;;  %v2476_v29 = vld [vmem:[%s4508_s14 + $0x108] sm:$0xff]  ;;  %v2676_v30 = vadd.f32 %v4892_v14, %v4890_v13  ;;  %v4906_v31 = vadd.f32 %v2537_v21, %v2473_v19  ;;  %v4908_v34 = vadd.f32 %v2538_v24, %v2474_v20  ;;  %v2540_v36 = vld [vmem:[#allocation2 + $0x1d0] sm:$0xff] }
 0x2f8   : > { %2662 = vadd.xlane.f32.xlu0 %v2661_v49  ;;  %v4900_v27 = vadd.f32 %v2536_v18, %v2472_v11  ;;  %v2475_v28 = vld [vmem:[%s4508_s14 + $0x100] sm:$0xff]  ;;  %v2539_v35 = vld [vmem:[#allocation2 + $0x148] sm:$0xff]  ;;  %v2477_v41 = vld [vmem:[%s4508_s14 + $0x110] sm:$0xff]  ;;  %v4916_v49 = vadd.f32 %v2540_v36, %v2476_v29 }
 0x2f9   : > { %2665 = vadd.xlane.f32.xlu1 %v2664_v56  ;;  %v2478_v42 = vld [vmem:[%s4508_s14 + $0x118] sm:$0xff]  ;;  %v2541_v43 = vld [vmem:[#allocation2 + $0x100] sm:$0xff]  ;;  %v2542_v46 = vld [vmem:[#allocation2 + $0xc8] sm:$0xff]  ;;  %v4914_v48 = vadd.f32 %v2539_v35, %v2475_v28  ;;  %v2682_v56 = vadd.f32 %v4908_v34, %v4906_v31 }
 0x2fa   : > { %v2679_v47 = vadd.f32 %v4900_v27, %v4898_v26  ;;  %v2479_v54 = vld [vmem:[%s4508_s14 + $0x120] sm:$0xff]  ;;  %v2480_v55 = vld [vmem:[%s4508_s14 + $0x128] sm:$0xff]  ;;  %v4922_v60 = vadd.f32 %v2541_v43, %v2477_v41  ;;  %v4924_v62 = vadd.f32 %v2542_v46, %v2478_v42  ;;  %v2544_v0 = vld [vmem:[#allocation2 + $0x1f8] sm:$0xff] }
 0x2fb   : > { %v2543_v63 = vld [vmem:[#allocation2 + $0x40] sm:$0xff]  ;;  %v2481_v3 = vld [vmem:[%s4508_s14 + $0x130] sm:$0xff]  ;;  %v2482_v4 = vld [vmem:[%s4508_s14 + $0x138] sm:$0xff]  ;;  %v2685_v11 = vadd.f32 %v4916_v49, %v4914_v48  ;;  %v4932_v15 = vadd.f32 %v2544_v0, %v2480_v55 }
 0x2fc   : > { %2668 = vadd.xlane.f32.xlu0 %v2667_v5  ;;  %v2545_v5 = vld [vmem:[#allocation2 + $0x20] sm:$0xff]  ;;  %v2546_v10 = vld [vmem:[#allocation2 + $0x128] sm:$0xff]  ;;  %v2688_v20 = vadd.f32 %v4924_v62, %v4922_v60  ;;  %v2548_v28 = vld [vmem:[#allocation2 + $0x1f0] sm:$0xff] }
 0x2fd   : > { %2671 = vadd.xlane.f32.xlu1 %v2670_v12  ;;  %v4930_v12 = vadd.f32 %v2543_v63, %v2479_v54  ;;  %v2483_v18 = vld [vmem:[%s4508_s14 + $0x140] sm:$0xff]  ;;  %v2484_v19 = vld [vmem:[%s4508_s14 + $0x148] sm:$0xff]  ;;  %v4938_v21 = vadd.f32 %v2545_v5, %v2481_v3  ;;  %v4940_v24 = vadd.f32 %v2546_v10, %v2482_v4  ;;  %v2485_v29 = vld [vmem:[%s4508_s14 + $0x150] sm:$0xff] }
 0x2fe   : > { %v2549_v35 = vld [vmem:[#allocation2 + $0xe8] sm:$0xff]  ;;  %v2550_v36 = vld [vmem:[#allocation2 + $0x78] sm:$0xff]  ;;  %v4948_v43 = vadd.f32 %v2548_v28, %v2484_v19  ;;  %v2487_v46 = vld [vmem:[%s4508_s14 + $0x160] sm:$0xff] }
 0x2ff   : > { %5790 = vst [vmem:[#allocation22_spill] sm:$0xff] %v4938_v21  ;;  %5791 = vst [vmem:[#allocation23_spill] sm:$0xff] %v4940_v24  ;;  %v2691_v41 = vadd.f32 %v4932_v15, %v4930_v12  ;;  %v2694_v54 = vadd.f32 %v4940_v24, %v4938_v21  ;;  %v4954_v55 = vadd.f32 %v2549_v35, %v2485_v29  ;;  %v2551_v63 = vld [vmem:[#allocation2 + $0x70] sm:$0xff]  ;;  %v2490_v4 = vld [vmem:[%s4508_s14 + $0x178] sm:$0xff] }
 0x300   : > { %2674 = vadd.xlane.f32.xlu0 %v2673_v25  ;;  %v2547_v25 = vld [vmem:[#allocation2 + $0x1a0] sm:$0xff]  ;;  %5793 = vst [vmem:[#allocation25_spill] sm:$0xff] %v4948_v43  ;;  %v2552_v0 = vld [vmem:[#allocation2 + $0x90] sm:$0xff]  ;;  %v2553_v5 = vld [vmem:[#allocation2 + $0x1d8] sm:$0xff] }
 0x301   : > { %2677 = vadd.xlane.f32.xlu1 %v2676_v30  ;;  %v2486_v30 = vld [vmem:[%s4508_s14 + $0x158] sm:$0xff]  ;;  %v4946_v42 = vadd.f32 %v2547_v25, %v2483_v18  ;;  %5794 = vst [vmem:[#allocation26_spill] sm:$0xff] %v4954_v55  ;;  %v2489_v3 = vld [vmem:[%s4508_s14 + $0x170] sm:$0xff]  ;;  %v4962_v18 = vadd.f32 %v2551_v63, %v2487_v46  ;;  %v2492_v25 = vld [vmem:[%s4508_s14 + $0x188] sm:$0xff] }
 0x302   : > { %v2554_v10 = vld [vmem:[#allocation2 + $0xd0] sm:$0xff]  ;;  %v4970_v29 = vadd.f32 %v2553_v5, %v2489_v3  ;;  %v2555_v35 = vld [vmem:[#allocation2 + $0xb8] sm:$0xff]  ;;  %v2558_v63 = vld [vmem:[#allocation2 + $0x1c8] sm:$0xff] }
 0x303   : > { %5792 = vst [vmem:[#allocation24_spill] sm:$0xff] %v4946_v42  ;;  %5796 = vst [vmem:[#allocation28_spill] sm:$0xff] %v4962_v18  ;;  %v2494_v46 = vld [vmem:[%s4508_s14 + $0x198] sm:$0xff]  ;;  %v2495_v3 = vld [vmem:[%s4508_s14 + $0x1a0] sm:$0xff] }
 0x304   : > { %2680 = vadd.xlane.f32.xlu0 %v2679_v47  ;;  %v2488_v47 = vld [vmem:[%s4508_s14 + $0x168] sm:$0xff]  ;;  %5798 = vst [vmem:[#allocation30_spill] sm:$0xff] %v4970_v29  ;;  %v2506_v24 = vld [vmem:[%s4508_s14 + $0x1f8] sm:$0xff] }
 0x305   : > { %2683 = vadd.xlane.f32.xlu1 %v2682_v56  ;;  %v4956_v56 = vadd.f32 %v2550_v36, %v2486_v30  ;;  %v4964_v19 = vadd.f32 %v2552_v0, %v2488_v47  ;;  %v4972_v30 = vadd.f32 %v2554_v10, %v2490_v4  ;;  %v2556_v36 = vld [vmem:[#allocation2 + $0x88] sm:$0xff]  ;;  %v2569_v21 = vld [vmem:[#allocation2 + $0x58] sm:$0xff] }
 0x306   : > { %v2557_v47 = vld [vmem:[#allocation2 + $0xa8] sm:$0xff] }
 0x307   : > { %5795 = vst [vmem:[#allocation27_spill] sm:$0xff] %v4956_v56  ;;  %5797 = vst [vmem:[#allocation29_spill] sm:$0xff] %v4964_v19  ;;  %v2700_v28 = vadd.f32 %v4956_v56, %v4954_v55  ;;  %v2703_v0 = vadd.f32 %v4964_v19, %v4962_v18  ;;  %v2496_v4 = vld [vmem:[%s4508_s14 + $0x1a8] sm:$0xff]  ;;  %v2706_v5 = vadd.f32 %v4972_v30, %v4970_v29  ;;  %v2560_v55 = vld [vmem:[#allocation2 + $0x178] sm:$0xff] }
 0x308   : > { %2686 = vadd.xlane.f32.xlu0 %v2685_v11  ;;  %v2697_v11 = vadd.f32 %v4948_v43, %v4946_v42  ;;  %5799 = vst [vmem:[#allocation31_spill] sm:$0xff] %v4972_v30  ;;  %v4980_v43 = vadd.f32 %v2556_v36, %v2492_v25  ;;  %v4988_v56 = vadd.f32 %v2558_v63, %v2494_v46  ;;  %v2497_v42 = vld [vmem:[%s4508_s14 + $0x1b0] sm:$0xff]  ;;  %v2561_v25 = vld [vmem:[#allocation2 + $0x68] sm:$0xff]  ;;  %v2564_v29 = vld [vmem:[#allocation2 + $0x38] sm:$0xff] }
 0x309   : > { %2689 = vadd.xlane.f32.xlu1 %v2688_v20  ;;  %v2491_v20 = vld [vmem:[%s4508_s14 + $0x180] sm:$0xff]  ;;  %v4996_v19 = vadd.f32 %v2560_v55, %v2496_v4  ;;  %v2500_v46 = vld [vmem:[%s4508_s14 + $0x1c8] sm:$0xff]  ;;  %v5002_v63 = vadd.f32 %v2561_v25, %v2497_v42  ;;  %v2501_v18 = vld [vmem:[%s4508_s14 + $0x1d0] sm:$0xff] }
 0x30a   : > { %5801 = vst [vmem:[#allocation33_spill] sm:$0xff] %v4980_v43  ;;  %5803 = vst [vmem:[#allocation35_spill] sm:$0xff] %v4988_v56  ;;  %v2565_v55 = vld [vmem:[#allocation2 + $0xc0] sm:$0xff]  ;;  %v2504_v25 = vld [vmem:[%s4508_s14 + $0x1e8] sm:$0xff] }
 0x30b   : > { %5804 = vst [vmem:[#allocation36_spill] sm:$0xff] %v4996_v19  ;;  %v2566_v4 = vld [vmem:[#allocation2 + $0x1c0] sm:$0xff] }
 0x30c   : > { %2692 = vadd.xlane.f32.xlu0 %v2691_v41  ;;  %v2493_v41 = vld [vmem:[%s4508_s14 + $0x190] sm:$0xff]  ;;  %v2503_v42 = vld [vmem:[%s4508_s14 + $0x1e0] sm:$0xff] }
 0x30d   : > { %2695 = vadd.xlane.f32.xlu1 %v2694_v54  ;;  %v4978_v54 = vadd.f32 %v2555_v35, %v2491_v20  ;;  %v4986_v10 = vadd.f32 %v2557_v47, %v2493_v41  ;;  %v2498_v20 = vld [vmem:[%s4508_s14 + $0x1b8] sm:$0xff]  ;;  %v2562_v35 = vld [vmem:[#allocation2 + $0x190] sm:$0xff]  ;;  %v2499_v41 = vld [vmem:[%s4508_s14 + $0x1c0] sm:$0xff] }
 0x30e   : > { %v5004_v30 = vadd.f32 %v2562_v35, %v2498_v20  ;;  %v5018_v35 = vadd.f32 %v2565_v55, %v2501_v18 }
 0x30f   : > { %5800 = vst [vmem:[#allocation32_spill] sm:$0xff] %v4978_v54  ;;  %5802 = vst [vmem:[#allocation34_spill] sm:$0xff] %v4986_v10  ;;  %v2709_v36 = vadd.f32 %v4980_v43, %v4978_v54  ;;  %v2712_v47 = vadd.f32 %v4988_v56, %v4986_v10  ;;  %v5012_v43 = vadd.f32 %v2564_v29, %v2500_v46  ;;  %v2567_v10 = vld [vmem:[#allocation2 + $0x158] sm:$0xff]  ;;  %v2568_v54 = vld [vmem:[#allocation2 + $0x10] sm:$0xff] }
 0x310   : > { %2698 = vadd.xlane.f32.xlu0 %v2697_v11  ;;  %v2559_v11 = vld [vmem:[#allocation2 + $0x170] sm:$0xff]  ;;  %v2718_v20 = vadd.f32 %v5004_v30, %v5002_v63  ;;  %v5028_v46 = vadd.f32 %v2568_v54, %v2504_v25 }
 0x311   : > { %2701 = vadd.xlane.f32.xlu1 %v2700_v28  ;;  %v4994_v28 = vadd.f32 %v2559_v11, %v2495_v3  ;;  %v2502_v3 = vld [vmem:[%s4508_s14 + $0x1d8] sm:$0xff] }
 0x312   : > { %v5020_v56 = vadd.f32 %v2566_v4, %v2502_v3 }
 0x313   : > { %v2715_v11 = vadd.f32 %v4996_v19, %v4994_v28  ;;  %v2570_v19 = vld [vmem:[#allocation2 + $0xa0] sm:$0xff] }
 0x314   : > { %2704 = vadd.xlane.f32.xlu0 %v2703_v0  ;;  %v2563_v0 = vld [vmem:[#allocation2 + $0x198] sm:$0xff]  ;;  %v2724_v18 = vadd.f32 %v5020_v56, %v5018_v35 }
 0x315   : > { %2707 = vadd.xlane.f32.xlu1 %v2706_v5  ;;  %v5010_v5 = vadd.f32 %v2563_v0, %v2499_v41  ;;  %v5026_v41 = vadd.f32 %v2567_v10, %v2503_v42  ;;  %v5034_v0 = vadd.f32 %v2570_v19, %v2506_v24 }
 0x317   : > { %v2721_v29 = vadd.f32 %v5012_v43, %v5010_v5  ;;  %v2727_v3 = vadd.f32 %v5028_v46, %v5026_v41 }
 0x318   : > { %2710 = vadd.xlane.f32.xlu0 %v2709_v36  ;;  %v2505_v36 = vld [vmem:[%s4508_s14 + $0x1f0] sm:$0xff] }
 0x319   : > { %2713 = vadd.xlane.f32.xlu1 %v2712_v47  ;;  %v5032_v47 = vadd.f32 %v2569_v21, %v2505_v36 }
 0x31b   : > { %v2730_v55 = vadd.f32 %v5034_v0, %v5032_v47 }
 0x31c   : > { %2716 = vadd.xlane.f32.xlu0 %v2715_v11 }
 0x31d   : > { %2719 = vadd.xlane.f32.xlu1 %v2718_v20 }
 0x320   : > { %2722 = vadd.xlane.f32.xlu0 %v2721_v29 }
 0x321   : > { %2725 = vadd.xlane.f32.xlu1 %v2724_v18 }
 0x324   : > { %2728 = vadd.xlane.f32.xlu0 %v2727_v3 }
 0x325   : > { %2731 = vadd.xlane.f32.xlu1 %v2730_v55 }
 0x371   : > { %v2639_v54 = vpop.xlane.xlu0 %2638 }
 0x372   : > { %v2734_v10 = vmul.f32 0.00390625, %v2639_v54  ;;  %v2645_v4 = vpop.xlane.xlu1 %2644 }
 0x373   : > { %v2736_v11 = vmul.f32 0.00390625, %v2645_v4 }
 0x374   : > { %v5041_v42 = vsub.f32 %v4786_v37, %v2734_v10  ;;  %v5044_v21 = vsub.f32 %v4790_v40, %v2734_v10 }
 0x375   : > { %v5047_v24 = vsub.f32 %v4793_v44, %v2736_v11  ;;  %v5050_v19 = vsub.f32 %v4795_v45, %v2736_v11  ;;  %v2642_v25 = vpop.xlane.xlu0 %2641 }
 0x376   : > { %v2735_v20 = vmul.f32 0.00390625, %v2642_v25  ;;  %v2648_v36 = vpop.xlane.xlu1 %2647  ;;  %v2830_v29 = vmul.f32 %v5041_v42, %v5041_v42  ;;  %v2831_v18 = vmul.f32 %v5044_v21, %v5044_v21 }
 0x377   : > { %5805 = vst [vmem:[#allocation37_spill] sm:$0xff] %v5050_v19  ;;  %v2737_v37 = vmul.f32 0.00390625, %v2648_v36  ;;  %v2834_v40 = vmul.f32 %v5047_v24, %v5047_v24  ;;  %v2835_v44 = vmul.f32 %v5050_v19, %v5050_v19 }
 0x378   : > { %v5061_v3 = vsub.f32 %v4800_v50, %v2735_v20  ;;  %v5064_v45 = vsub.f32 %v4802_v51, %v2735_v20  ;;  %v2894_v55 = vadd.f32 %v2831_v18, %v2830_v29 }
 0x379   : > { %v5067_v54 = vsub.f32 %v4808_v57, %v2737_v37  ;;  %v5070_v10 = vsub.f32 %v4814_v61, %v2737_v37  ;;  %v2651_v4 = vpop.xlane.xlu0 %2650  ;;  %v2900_v36 = vadd.f32 %v2835_v44, %v2834_v40 }
 0x37a   : > { %v2738_v11 = vmul.f32 0.00390625, %v2651_v4  ;;  %2895 = vadd.xlane.f32.xlu0 %v2894_v55  ;;  %v2654_v25 = vpop.xlane.xlu1 %2653  ;;  %v2832_v19 = vmul.f32 %v5061_v3, %v5061_v3  ;;  %v2833_v50 = vmul.f32 %v5064_v45, %v5064_v45 }
 0x37b   : > { %v2739_v51 = vmul.f32 0.00390625, %v2654_v25  ;;  %v2836_v20 = vmul.f32 %v5067_v54, %v5067_v54  ;;  %v2837_v57 = vmul.f32 %v5070_v10, %v5070_v10 }
 0x37c   : > { %v5081_v61 = vsub.f32 %v4817_v1, %v2738_v11  ;;  %v5084_v29 = vsub.f32 %v4819_v2, %v2738_v11  ;;  %v2897_v18 = vadd.f32 %v2833_v50, %v2832_v19 }
 0x37d   : > { %v5087_v37 = vsub.f32 %v4824_v7, %v2739_v51  ;;  %v5090_v40 = vsub.f32 %v4826_v8, %v2739_v51  ;;  %v2657_v44 = vpop.xlane.xlu0 %2656  ;;  %v2903_v25 = vadd.f32 %v2837_v57, %v2836_v20 }
 0x37e   : > { %v2740_v55 = vmul.f32 0.00390625, %v2657_v44  ;;  %2901 = vadd.xlane.f32.xlu0 %v2900_v36  ;;  %2898 = vadd.xlane.f32.xlu1 %v2897_v18  ;;  %v2660_v4 = vpop.xlane.xlu1 %2659  ;;  %v2838_v1 = vmul.f32 %v5081_v61, %v5081_v61  ;;  %v2839_v2 = vmul.f32 %v5084_v29, %v5084_v29 }
 0x37f   : > { %v2741_v11 = vmul.f32 0.00390625, %v2660_v4  ;;  %v2840_v7 = vmul.f32 %v5087_v37, %v5087_v37  ;;  %v2841_v8 = vmul.f32 %v5090_v40, %v5090_v40 }
 0x380   : > { %v5101_v19 = vsub.f32 %v4834_v16, %v2740_v55  ;;  %v5104_v36 = vsub.f32 %v4836_v17, %v2740_v55  ;;  %v2906_v50 = vadd.f32 %v2839_v2, %v2838_v1 }
 0x381   : > { %v5107_v51 = vsub.f32 %v4841_v22, %v2741_v11  ;;  %v5110_v20 = vsub.f32 %v4843_v23, %v2741_v11  ;;  %v2663_v57 = vpop.xlane.xlu0 %2662  ;;  %v2909_v4 = vadd.f32 %v2841_v8, %v2840_v7 }
 0x382   : > { %v2742_v18 = vmul.f32 0.00390625, %v2663_v57  ;;  %2904 = vadd.xlane.f32.xlu1 %v2903_v25  ;;  %2907 = vadd.xlane.f32.xlu0 %v2906_v50  ;;  %v2666_v44 = vpop.xlane.xlu1 %2665  ;;  %v2842_v16 = vmul.f32 %v5101_v19, %v5101_v19  ;;  %v2843_v17 = vmul.f32 %v5104_v36, %v5104_v36 }
 0x383   : > { %v2743_v55 = vmul.f32 0.00390625, %v2666_v44  ;;  %v2844_v22 = vmul.f32 %v5107_v51, %v5107_v51  ;;  %v2845_v23 = vmul.f32 %v5110_v20, %v5110_v20 }
 0x384   : > { %v5121_v1 = vsub.f32 %v4850_v32, %v2742_v18  ;;  %v5124_v25 = vsub.f32 %v4852_v33, %v2742_v18  ;;  %v2912_v2 = vadd.f32 %v2843_v17, %v2842_v16 }
 0x385   : > { %v5127_v11 = vsub.f32 %v4858_v38, %v2743_v55  ;;  %v5130_v7 = vsub.f32 %v4860_v39, %v2743_v55  ;;  %v2669_v8 = vpop.xlane.xlu0 %2668  ;;  %v2915_v44 = vadd.f32 %v2845_v23, %v2844_v22 }
 0x386   : > { %v2744_v50 = vmul.f32 0.00390625, %v2669_v8  ;;  %2910 = vadd.xlane.f32.xlu1 %v2909_v4  ;;  %2913 = vadd.xlane.f32.xlu0 %v2912_v2  ;;  %v2672_v57 = vpop.xlane.xlu1 %2671  ;;  %v2846_v32 = vmul.f32 %v5121_v1, %v5121_v1  ;;  %v2847_v33 = vmul.f32 %v5124_v25, %v5124_v25 }
 0x387   : > { %v2745_v18 = vmul.f32 0.00390625, %v2672_v57  ;;  %v2848_v38 = vmul.f32 %v5127_v11, %v5127_v11  ;;  %v2849_v39 = vmul.f32 %v5130_v7, %v5130_v7 }
 0x388   : > { %v5141_v16 = vsub.f32 %v4866_v52, %v2744_v50  ;;  %v5144_v4 = vsub.f32 %v4868_v53, %v2744_v50  ;;  %v2918_v17 = vadd.f32 %v2847_v33, %v2846_v32 }
 0x389   : > { %v5147_v55 = vsub.f32 %v4874_v58, %v2745_v18  ;;  %v5150_v22 = vsub.f32 %v4876_v59, %v2745_v18  ;;  %v2675_v23 = vpop.xlane.xlu0 %2674  ;;  %v2921_v57 = vadd.f32 %v2849_v39, %v2848_v38 }
 0x38a   : > { %v2746_v2 = vmul.f32 0.00390625, %v2675_v23  ;;  %2916 = vadd.xlane.f32.xlu1 %v2915_v44  ;;  %2919 = vadd.xlane.f32.xlu0 %v2918_v17  ;;  %v2678_v8 = vpop.xlane.xlu1 %2677  ;;  %v2850_v52 = vmul.f32 %v5141_v16, %v5141_v16  ;;  %v2851_v53 = vmul.f32 %v5144_v4, %v5144_v4 }
 0x38b   : > { %v2747_v50 = vmul.f32 0.00390625, %v2678_v8  ;;  %v2852_v58 = vmul.f32 %v5147_v55, %v5147_v55  ;;  %v2853_v59 = vmul.f32 %v5150_v22, %v5150_v22 }
 0x38c   : > { %v5161_v32 = vsub.f32 %v4882_v6, %v2746_v2  ;;  %v5164_v44 = vsub.f32 %v4884_v9, %v2746_v2  ;;  %v2924_v33 = vadd.f32 %v2851_v53, %v2850_v52 }
 0x38d   : > { %v5167_v18 = vsub.f32 %v4890_v13, %v2747_v50  ;;  %v5170_v38 = vsub.f32 %v4892_v14, %v2747_v50  ;;  %v2681_v39 = vpop.xlane.xlu0 %2680  ;;  %v2927_v8 = vadd.f32 %v2853_v59, %v2852_v58 }
 0x38e   : > { %v2748_v17 = vmul.f32 0.00390625, %v2681_v39  ;;  %2922 = vadd.xlane.f32.xlu1 %v2921_v57  ;;  %2925 = vadd.xlane.f32.xlu0 %v2924_v33  ;;  %v2684_v23 = vpop.xlane.xlu1 %2683  ;;  %v2854_v6 = vmul.f32 %v5161_v32, %v5161_v32  ;;  %v2855_v9 = vmul.f32 %v5164_v44, %v5164_v44 }
 0x38f   : > { %v2749_v2 = vmul.f32 0.00390625, %v2684_v23  ;;  %v2856_v13 = vmul.f32 %v5167_v18, %v5167_v18  ;;  %v2857_v14 = vmul.f32 %v5170_v38, %v5170_v38 }
 0x390   : > { %v5181_v52 = vsub.f32 %v4898_v26, %v2748_v17  ;;  %v5184_v57 = vsub.f32 %v4900_v27, %v2748_v17  ;;  %v2930_v53 = vadd.f32 %v2855_v9, %v2854_v6 }
 0x391   : > { %v5187_v50 = vsub.f32 %v4906_v31, %v2749_v2  ;;  %v5190_v58 = vsub.f32 %v4908_v34, %v2749_v2  ;;  %v2687_v59 = vpop.xlane.xlu0 %2686  ;;  %v2933_v23 = vadd.f32 %v2857_v14, %v2856_v13 }
 0x392   : > { %v2750_v33 = vmul.f32 0.00390625, %v2687_v59  ;;  %2928 = vadd.xlane.f32.xlu1 %v2927_v8  ;;  %2931 = vadd.xlane.f32.xlu0 %v2930_v53  ;;  %v2690_v39 = vpop.xlane.xlu1 %2689  ;;  %v2858_v26 = vmul.f32 %v5181_v52, %v5181_v52  ;;  %v2859_v27 = vmul.f32 %v5184_v57, %v5184_v57 }
 0x393   : > { %v2751_v17 = vmul.f32 0.00390625, %v2690_v39  ;;  %v2860_v31 = vmul.f32 %v5187_v50, %v5187_v50  ;;  %v2861_v34 = vmul.f32 %v5190_v58, %v5190_v58 }
 0x394   : > { %v5201_v6 = vsub.f32 %v4914_v48, %v2750_v33  ;;  %v5204_v8 = vsub.f32 %v4916_v49, %v2750_v33  ;;  %v2936_v9 = vadd.f32 %v2859_v27, %v2858_v26 }
 0x395   : > { %v5207_v2 = vsub.f32 %v4922_v60, %v2751_v17  ;;  %v5210_v13 = vsub.f32 %v4924_v62, %v2751_v17  ;;  %v2693_v14 = vpop.xlane.xlu0 %2692  ;;  %v2939_v39 = vadd.f32 %v2861_v34, %v2860_v31  ;;  %v5811_v17 = vld [vmem:[#allocation22_spill] sm:$0xff]  ;;  %v5813_v34 = vld [vmem:[#allocation23_spill] sm:$0xff] }
 0x396   : > { %5806 = vst [vmem:[#allocation38_spill] sm:$0xff] %v5204_v8  ;;  %v2752_v53 = vmul.f32 0.00390625, %v2693_v14  ;;  %2934 = vadd.xlane.f32.xlu1 %v2933_v23  ;;  %2937 = vadd.xlane.f32.xlu0 %v2936_v9  ;;  %v2696_v59 = vpop.xlane.xlu1 %2695  ;;  %v2862_v48 = vmul.f32 %v5201_v6, %v5201_v6  ;;  %v2863_v49 = vmul.f32 %v5204_v8, %v5204_v8 }
 0x397   : > { %5807 = vst [vmem:[#allocation39_spill] sm:$0xff] %v5207_v2  ;;  %5808 = vst [vmem:[#allocation40_spill] sm:$0xff] %v5210_v13  ;;  %v2753_v33 = vmul.f32 0.00390625, %v2696_v59  ;;  %v2864_v60 = vmul.f32 %v5207_v2, %v5207_v2  ;;  %v2865_v62 = vmul.f32 %v5210_v13, %v5210_v13 }
 0x398   : > { %v5221_v26 = vsub.f32 %v4930_v12, %v2752_v53  ;;  %v5224_v23 = vsub.f32 %v4932_v15, %v2752_v53  ;;  %v2942_v27 = vadd.f32 %v2863_v49, %v2862_v48 }
 0x399   : > { %v5227_v31 = vsub.f32 %v5811_v17, %v2753_v33  ;;  %v5230_v9 = vsub.f32 %v5813_v34, %v2753_v33  ;;  %v2699_v14 = vpop.xlane.xlu0 %2698  ;;  %v2945_v8 = vadd.f32 %v2865_v62, %v2864_v60  ;;  %v5815_v33 = vld [vmem:[#allocation24_spill] sm:$0xff]  ;;  %v5819_v62 = vld [vmem:[#allocation26_spill] sm:$0xff] }
 0x39a   : > { %5809 = vst [vmem:[#allocation41_spill] sm:$0xff] %v5221_v26  ;;  %5810 = vst [vmem:[#allocation42_spill] sm:$0xff] %v5224_v23  ;;  %v2754_v59 = vmul.f32 0.00390625, %v2699_v14  ;;  %2940 = vadd.xlane.f32.xlu1 %v2939_v39  ;;  %2943 = vadd.xlane.f32.xlu0 %v2942_v27  ;;  %v2702_v2 = vpop.xlane.xlu1 %2701  ;;  %v2866_v12 = vmul.f32 %v5221_v26, %v5221_v26  ;;  %v2867_v15 = vmul.f32 %v5224_v23, %v5224_v23  ;;  %v5817_v39 = vld [vmem:[#allocation25_spill] sm:$0xff]  ;;  %v5821_v14 = vld [vmem:[#allocation27_spill] sm:$0xff] }
 0x39b   : > { %5812 = vst [vmem:[#allocation22_spill] sm:$0xff] %v5227_v31  ;;  %5814 = vst [vmem:[#allocation23_spill] sm:$0xff] %v5230_v9  ;;  %v2755_v53 = vmul.f32 0.00390625, %v2702_v2  ;;  %v2868_v48 = vmul.f32 %v5227_v31, %v5227_v31  ;;  %v2869_v49 = vmul.f32 %v5230_v9, %v5230_v9 }
 0x39c   : > { %v5241_v17 = vsub.f32 %v5815_v33, %v2754_v59  ;;  %v5244_v27 = vsub.f32 %v5817_v39, %v2754_v59  ;;  %v2948_v60 = vadd.f32 %v2867_v15, %v2866_v12 }
 0x39d   : > { %v5247_v34 = vsub.f32 %v5819_v62, %v2755_v53  ;;  %v5250_v26 = vsub.f32 %v5821_v14, %v2755_v53  ;;  %v2705_v2 = vpop.xlane.xlu0 %2704  ;;  %v2951_v13 = vadd.f32 %v2869_v49, %v2868_v48  ;;  %v5823_v53 = vld [vmem:[#allocation28_spill] sm:$0xff]  ;;  %v5827_v49 = vld [vmem:[#allocation30_spill] sm:$0xff] }
 0x39e   : > { %5816 = vst [vmem:[#allocation24_spill] sm:$0xff] %v5241_v17  ;;  %5818 = vst [vmem:[#allocation25_spill] sm:$0xff] %v5244_v27  ;;  %v2756_v23 = vmul.f32 0.00390625, %v2705_v2  ;;  %2946 = vadd.xlane.f32.xlu1 %v2945_v8  ;;  %2949 = vadd.xlane.f32.xlu0 %v2948_v60  ;;  %v2708_v31 = vpop.xlane.xlu1 %2707  ;;  %v2870_v33 = vmul.f32 %v5241_v17, %v5241_v17  ;;  %v2871_v59 = vmul.f32 %v5244_v27, %v5244_v27  ;;  %v5825_v8 = vld [vmem:[#allocation29_spill] sm:$0xff]  ;;  %v5829_v2 = vld [vmem:[#allocation31_spill] sm:$0xff] }
 0x39f   : > { %5820 = vst [vmem:[#allocation26_spill] sm:$0xff] %v5247_v34  ;;  %5822 = vst [vmem:[#allocation27_spill] sm:$0xff] %v5250_v26  ;;  %v2757_v39 = vmul.f32 0.00390625, %v2708_v31  ;;  %v2872_v12 = vmul.f32 %v5247_v34, %v5247_v34  ;;  %v2873_v15 = vmul.f32 %v5250_v26, %v5250_v26 }
 0x3a0   : > { %v5261_v62 = vsub.f32 %v5823_v53, %v2756_v23  ;;  %v5264_v60 = vsub.f32 %v5825_v8, %v2756_v23  ;;  %v2954_v48 = vadd.f32 %v2871_v59, %v2870_v33 }
 0x3a1   : > { %v5267_v14 = vsub.f32 %v5827_v49, %v2757_v39  ;;  %v5270_v17 = vsub.f32 %v5829_v2, %v2757_v39  ;;  %v2711_v31 = vpop.xlane.xlu0 %2710  ;;  %v2957_v9 = vadd.f32 %v2873_v15, %v2872_v12  ;;  %v5830_v39 = vld [vmem:[#allocation32_spill] sm:$0xff]  ;;  %v5832_v15 = vld [vmem:[#allocation34_spill] sm:$0xff] }
 0x3a2   : > { %5824 = vst [vmem:[#allocation28_spill] sm:$0xff] %v5261_v62  ;;  %5826 = vst [vmem:[#allocation29_spill] sm:$0xff] %v5264_v60  ;;  %v2758_v27 = vmul.f32 0.00390625, %v2711_v31  ;;  %2952 = vadd.xlane.f32.xlu1 %v2951_v13  ;;  %2955 = vadd.xlane.f32.xlu0 %v2954_v48  ;;  %v2714_v34 = vpop.xlane.xlu1 %2713  ;;  %v2874_v53 = vmul.f32 %v5261_v62, %v5261_v62  ;;  %v2875_v23 = vmul.f32 %v5264_v60, %v5264_v60  ;;  %v5831_v13 = vld [vmem:[#allocation33_spill] sm:$0xff]  ;;  %v5834_v31 = vld [vmem:[#allocation35_spill] sm:$0xff] }
 0x3a3   : > { %5828 = vst [vmem:[#allocation30_spill] sm:$0xff] %v5267_v14  ;;  %v2759_v8 = vmul.f32 0.00390625, %v2714_v34  ;;  %v2876_v33 = vmul.f32 %v5267_v14, %v5267_v14  ;;  %v2877_v59 = vmul.f32 %v5270_v17, %v5270_v17 }
 0x3a4   : > { %v5281_v49 = vsub.f32 %v5830_v39, %v2758_v27  ;;  %v5284_v48 = vsub.f32 %v5831_v13, %v2758_v27  ;;  %v2960_v12 = vadd.f32 %v2875_v23, %v2874_v53 }
 0x3a5   : > { %v5287_v2 = vsub.f32 %v5832_v15, %v2759_v8  ;;  %v5290_v62 = vsub.f32 %v5834_v31, %v2759_v8  ;;  %v2717_v34 = vpop.xlane.xlu0 %2716  ;;  %v2963_v26 = vadd.f32 %v2877_v59, %v2876_v33 }
 0x3a6   : > { %v2760_v60 = vmul.f32 0.00390625, %v2717_v34  ;;  %2958 = vadd.xlane.f32.xlu1 %v2957_v9  ;;  %2961 = vadd.xlane.f32.xlu0 %v2960_v12  ;;  %v2720_v14 = vpop.xlane.xlu1 %2719  ;;  %v2878_v39 = vmul.f32 %v5281_v49, %v5281_v49  ;;  %v2879_v27 = vmul.f32 %v5284_v48, %v5284_v48  ;;  %v5835_v9 = vld [vmem:[#allocation36_spill] sm:$0xff] }
 0x3a7   : > { %5833 = vst [vmem:[#allocation31_spill] sm:$0xff] %v5287_v2  ;;  %v2761_v13 = vmul.f32 0.00390625, %v2720_v14  ;;  %v2880_v53 = vmul.f32 %v5287_v2, %v5287_v2  ;;  %v2881_v23 = vmul.f32 %v5290_v62, %v5290_v62 }
 0x3a8   : > { %v5301_v8 = vsub.f32 %v4994_v28, %v2760_v60  ;;  %v5304_v12 = vsub.f32 %v5835_v9, %v2760_v60  ;;  %v2966_v33 = vadd.f32 %v2879_v27, %v2878_v39 }
 0x3a9   : > { %v5307_v59 = vsub.f32 %v5002_v63, %v2761_v13  ;;  %v5310_v15 = vsub.f32 %v5004_v30, %v2761_v13  ;;  %v2723_v14 = vpop.xlane.xlu0 %2722  ;;  %v2969_v2 = vadd.f32 %v2881_v23, %v2880_v53 }
 0x3aa   : > { %v2762_v31 = vmul.f32 0.00390625, %v2723_v14  ;;  %2964 = vadd.xlane.f32.xlu1 %v2963_v26  ;;  %2967 = vadd.xlane.f32.xlu0 %v2966_v33  ;;  %v2726_v34 = vpop.xlane.xlu1 %2725  ;;  %v2882_v28 = vmul.f32 %v5301_v8, %v5301_v8  ;;  %v2883_v60 = vmul.f32 %v5304_v12, %v5304_v12 }
 0x3ab   : > { %v2763_v9 = vmul.f32 0.00390625, %v2726_v34  ;;  %v2884_v63 = vmul.f32 %v5307_v59, %v5307_v59  ;;  %v2885_v30 = vmul.f32 %v5310_v15, %v5310_v15 }
 0x3ac   : > { %v5321_v39 = vsub.f32 %v5010_v5, %v2762_v31  ;;  %v5324_v26 = vsub.f32 %v5012_v43, %v2762_v31  ;;  %v2972_v27 = vadd.f32 %v2883_v60, %v2882_v28 }
 0x3ad   : > { %v5327_v13 = vsub.f32 %v5018_v35, %v2763_v9  ;;  %v5330_v53 = vsub.f32 %v5020_v56, %v2763_v9  ;;  %v2729_v23 = vpop.xlane.xlu0 %2728  ;;  %v2975_v34 = vadd.f32 %v2885_v30, %v2884_v63 }
 0x3ae   : > { %v2764_v33 = vmul.f32 0.00390625, %v2729_v23  ;;  %2970 = vadd.xlane.f32.xlu1 %v2969_v2  ;;  %2973 = vadd.xlane.f32.xlu0 %v2972_v27  ;;  %v2732_v14 = vpop.xlane.xlu1 %2731  ;;  %v2886_v5 = vmul.f32 %v5321_v39, %v5321_v39  ;;  %v2887_v43 = vmul.f32 %v5324_v26, %v5324_v26 }
 0x3af   : > { %5836 = vst [vmem:[#allocation32_spill] sm:$0xff] %v5330_v53  ;;  %v2765_v31 = vmul.f32 0.00390625, %v2732_v14  ;;  %v2888_v35 = vmul.f32 %v5327_v13, %v5327_v13  ;;  %v2889_v56 = vmul.f32 %v5330_v53, %v5330_v53 }
 0x3b0   : > { %v5341_v28 = vsub.f32 %v5026_v41, %v2764_v33  ;;  %v5344_v2 = vsub.f32 %v5028_v46, %v2764_v33  ;;  %v2978_v60 = vadd.f32 %v2887_v43, %v2886_v5  ;;  %v3151_v5 = vlaneseq }
 0x3b1   : > { %v5347_v9 = vsub.f32 %v5032_v47, %v2765_v31  ;;  %v5350_v63 = vsub.f32 %v5034_v0, %v2765_v31  ;;  %v2981_v30 = vadd.f32 %v2889_v56, %v2888_v35 }
 0x3b2   : > { %5837 = vst [vmem:[#allocation33_spill] sm:$0xff] %v5341_v28  ;;  %5838 = vst [vmem:[#allocation34_spill] sm:$0xff] %v5344_v2  ;;  %2976 = vadd.xlane.f32.xlu1 %v2975_v34  ;;  %2979 = vadd.xlane.f32.xlu0 %v2978_v60  ;;  %v2890_v27 = vmul.f32 %v5341_v28, %v5341_v28  ;;  %v2891_v41 = vmul.f32 %v5344_v2, %v5344_v2 }
 0x3b3   : > { %5839 = vst [vmem:[#allocation35_spill] sm:$0xff] %v5347_v9  ;;  %5840 = vst [vmem:[#allocation36_spill] sm:$0xff] %v5350_v63  ;;  %v2892_v46 = vmul.f32 %v5347_v9, %v5347_v9  ;;  %v2893_v23 = vmul.f32 %v5350_v63, %v5350_v63  ;;  %v3152_v9 = vshrl.u32 %v3151_v5, 7 }
 0x3b4   : > { %v2984_v47 = vadd.f32 %v2891_v41, %v2890_v27 }
 0x3b5   : > { %v2987_v0 = vadd.f32 %v2893_v23, %v2892_v46  ;;  %v3153_v23 = vsub.s32 0, %v3152_v9 }
 0x3b6   : > { %2982 = vadd.xlane.f32.xlu1 %v2981_v30  ;;  %2985 = vadd.xlane.f32.xlu0 %v2984_v47 }
 0x3ba   : > { %2988 = vadd.xlane.f32.xlu1 %v2987_v0 }
 0x403   : > { %v2896_v33 = vpop.xlane.xlu0 %2895 }
 0x404   : > { %v2990_v14 = vmul.f32 0.00390625, %v2896_v33  ;;  %v2635_v33 = vld [vmem:[%s5711_s3] sm:$0x3] }
 0x405   : > { %v5366_v5 = vrot.slane %v2635_v33, %v3153_v23 }
 0x406   : > { %v3022_v34 = vadd.f32 1e-05, %v2990_v14  ;;  %v3157_v14 = vsub.s32 1, %v3152_v9 }
 0x407   : > { %v2899_v43 = vpop.xlane.xlu1 %2898  ;;  %v2902_v31 = vpop.xlane.xlu0 %2901 }
 0x408   : > { %3988 = vrsqrt.f32 %v3022_v34  ;;  %v2991_v35 = vmul.f32 0.00390625, %v2899_v43  ;;  %v2992_v56 = vmul.f32 0.00390625, %v2902_v31 }
 0x40a   : > { %v3023_v60 = vadd.f32 1e-05, %v2991_v35  ;;  %v3024_v2 = vadd.f32 1e-05, %v2992_v56  ;;  %v5368_v56 = vrot.slane %v2635_v33, %v3157_v14 }
 0x40b   : > { %v2905_v28 = vpop.xlane.xlu1 %2904  ;;  %v2908_v53 = vpop.xlane.xlu0 %2907 }
 0x40c   : > { %3990 = vrsqrt.f32 %v3023_v60  ;;  %v2993_v27 = vmul.f32 0.00390625, %v2905_v28  ;;  %v2994_v30 = vmul.f32 0.00390625, %v2908_v53  ;;  %v2636_v28 = vld [vmem:[%s5841_s12] sm:$0x3] }
 0x40d   : > { %3992 = vrsqrt.f32 %v3024_v2 }
 0x40e   : > { %v3025_v41 = vadd.f32 1e-05, %v2993_v27  ;;  %v3026_v46 = vadd.f32 1e-05, %v2994_v30  ;;  %v5370_v30 = vrot.slane %v2636_v28, %v3153_v23 }
 0x40f   : > { %v2911_v47 = vpop.xlane.xlu1 %2910  ;;  %v2914_v0 = vpop.xlane.xlu0 %2913 }
 0x410   : > { %3994 = vrsqrt.f32 %v3025_v41  ;;  %v2995_v34 = vmul.f32 0.00390625, %v2911_v47  ;;  %v2996_v43 = vmul.f32 0.00390625, %v2914_v0  ;;  %v5372_v41 = vrot.slane %v2636_v28, %v3157_v14 }
 0x411   : > { %3996 = vrsqrt.f32 %v3026_v46 }
 0x412   : > { %v3027_v53 = vadd.f32 1e-05, %v2995_v34  ;;  %v3028_v2 = vadd.f32 1e-05, %v2996_v43 }
 0x413   : > { %v2917_v31 = vpop.xlane.xlu1 %2916  ;;  %v2920_v35 = vpop.xlane.xlu0 %2919 }
 0x414   : > { %3998 = vrsqrt.f32 %v3027_v53  ;;  %v2997_v60 = vmul.f32 0.00390625, %v2917_v31  ;;  %v2998_v27 = vmul.f32 0.00390625, %v2920_v35 }
 0x415   : > { %v3989_v9 = vpop.eup %3988  ;;  %4000 = vrsqrt.f32 %v3028_v2 }
 0x416   : > { %v3086_v46 = vmul.f32 %v3989_v9, %v5041_v42  ;;  %v3087_v47 = vmul.f32 %v3989_v9, %v5044_v21  ;;  %v3029_v0 = vadd.f32 1e-05, %v2997_v60  ;;  %v3030_v34 = vadd.f32 1e-05, %v2998_v27  ;;  %v5842_v27 = vld [vmem:[#allocation37_spill] sm:$0xff] }
 0x417   : > { %v2923_v43 = vpop.xlane.xlu1 %2922  ;;  %v2926_v63 = vpop.xlane.xlu0 %2925 }
 0x418   : > { %v3161_v33 = vmul.f32 %v5366_v5, %v3086_v46  ;;  %v3162_v53 = vmul.f32 %v5368_v56, %v3087_v47  ;;  %4002 = vrsqrt.f32 %v3029_v0  ;;  %v2999_v23 = vmul.f32 0.00390625, %v2923_v43 }
 0x419   : > { %v3991_v31 = vpop.eup %3990  ;;  %4004 = vrsqrt.f32 %v3030_v34  ;;  %v3000_v14 = vmul.f32 0.00390625, %v2926_v63 }
 0x41a   : > { %v3993_v28 = vpop.eup %3992  ;;  %v3236_v42 = vadd.f32 %v5370_v30, %v3161_v33  ;;  %v3237_v21 = vadd.f32 %v5372_v41, %v3162_v53  ;;  %v3088_v2 = vmul.f32 %v3991_v31, %v5061_v3  ;;  %v3089_v35 = vmul.f32 %v3991_v31, %v5064_v45 }
 0x41b   : > { %v3090_v60 = vmul.f32 %v3993_v28, %v5047_v24  ;;  %v3091_v9 = vmul.f32 %v3993_v28, %v5842_v27  ;;  %v3031_v46 = vadd.f32 1e-05, %v2999_v23  ;;  %v2929_v47 = vpop.xlane.xlu1 %2928  ;;  %v2932_v0 = vpop.xlane.xlu0 %2931  ;;  %v3032_v43 = vadd.f32 1e-05, %v3000_v14 }
 0x41c   : > { %3300 = vst [vmem:[%s4524_s18] sm:$0xff] %v3236_v42  ;;  %3301 = vst [vmem:[%s4524_s18 + $0x8] sm:$0xff] %v3237_v21  ;;  %v3163_v63 = vmul.f32 %v5366_v5, %v3088_v2  ;;  %v3164_v34 = vmul.f32 %v5368_v56, %v3089_v35  ;;  %v3001_v33 = vmul.f32 0.00390625, %v2929_v47  ;;  %v3002_v45 = vmul.f32 0.00390625, %v2932_v0 }
 0x41d   : > { %v3995_v53 = vpop.eup %3994  ;;  %v3165_v3 = vmul.f32 %v5366_v5, %v3090_v60  ;;  %v3166_v24 = vmul.f32 %v5368_v56, %v3091_v9  ;;  %4006 = vrsqrt.f32 %v3031_v46 }
 0x41e   : > { %v3997_v23 = vpop.eup %3996  ;;  %v3238_v31 = vadd.f32 %v5370_v30, %v3163_v63  ;;  %v3239_v28 = vadd.f32 %v5372_v41, %v3164_v34  ;;  %v3092_v42 = vmul.f32 %v3995_v53, %v5067_v54  ;;  %v3093_v14 = vmul.f32 %v3995_v53, %v5070_v10 }
 0x41f   : > { %v3240_v21 = vadd.f32 %v5370_v30, %v3165_v3  ;;  %v3241_v2 = vadd.f32 %v5372_v41, %v3166_v24  ;;  %v3094_v35 = vmul.f32 %v3997_v23, %v5081_v61  ;;  %v3095_v60 = vmul.f32 %v3997_v23, %v5084_v29  ;;  %v2935_v27 = vpop.xlane.xlu1 %2934  ;;  %v2938_v9 = vpop.xlane.xlu0 %2937 }
 0x420   : > { %3302 = vst [vmem:[%s4524_s18 + $0x10] sm:$0xff] %v3238_v31  ;;  %3303 = vst [vmem:[%s4524_s18 + $0x18] sm:$0xff] %v3239_v28  ;;  %v3167_v46 = vmul.f32 %v5366_v5, %v3092_v42  ;;  %v3168_v47 = vmul.f32 %v5368_v56, %v3093_v14  ;;  %4008 = vrsqrt.f32 %v3032_v43  ;;  %v3033_v54 = vadd.f32 1e-05, %v3001_v33 }
 0x421   : > { %v3999_v0 = vpop.eup %3998  ;;  %3304 = vst [vmem:[%s4524_s18 + $0x20] sm:$0xff] %v3240_v21  ;;  %3305 = vst [vmem:[%s4524_s18 + $0x28] sm:$0xff] %v3241_v2  ;;  %v3169_v10 = vmul.f32 %v5366_v5, %v3094_v35  ;;  %v3170_v61 = vmul.f32 %v5368_v56, %v3095_v60  ;;  %v3034_v29 = vadd.f32 1e-05, %v3002_v45  ;;  %v3003_v63 = vmul.f32 0.00390625, %v2935_v27 }
 0x422   : > { %v4001_v34 = vpop.eup %4000  ;;  %v3242_v53 = vadd.f32 %v5370_v30, %v3167_v46  ;;  %v3243_v3 = vadd.f32 %v5372_v41, %v3168_v47  ;;  %v3096_v43 = vmul.f32 %v3999_v0, %v5087_v37  ;;  %v3097_v33 = vmul.f32 %v3999_v0, %v5090_v40 }
 0x423   : > { %v3244_v24 = vadd.f32 %v5370_v30, %v3169_v10  ;;  %v3245_v23 = vadd.f32 %v5372_v41, %v3170_v61  ;;  %v3098_v31 = vmul.f32 %v4001_v34, %v5101_v19  ;;  %v3099_v45 = vmul.f32 %v4001_v34, %v5104_v36  ;;  %v2941_v28 = vpop.xlane.xlu1 %2940  ;;  %v2944_v42 = vpop.xlane.xlu0 %2943 }
 0x424   : > { %3306 = vst [vmem:[%s4524_s18 + $0x30] sm:$0xff] %v3242_v53  ;;  %3307 = vst [vmem:[%s4524_s18 + $0x38] sm:$0xff] %v3243_v3  ;;  %v3171_v14 = vmul.f32 %v5366_v5, %v3096_v43  ;;  %v3172_v21 = vmul.f32 %v5368_v56, %v3097_v33  ;;  %4010 = vrsqrt.f32 %v3033_v54  ;;  %v3035_v37 = vadd.f32 1e-05, %v3003_v63 }
 0x425   : > { %v4003_v2 = vpop.eup %4002  ;;  %3308 = vst [vmem:[%s4524_s18 + $0x40] sm:$0xff] %v3244_v24  ;;  %3309 = vst [vmem:[%s4524_s18 + $0x48] sm:$0xff] %v3245_v23  ;;  %v3173_v40 = vmul.f32 %v5366_v5, %v3098_v31  ;;  %v3174_v19 = vmul.f32 %v5368_v56, %v3099_v45  ;;  %4012 = vrsqrt.f32 %v3034_v29  ;;  %v3004_v36 = vmul.f32 0.00390625, %v2938_v9 }
 0x426   : > { %v4005_v35 = vpop.eup %4004  ;;  %v3246_v60 = vadd.f32 %v5370_v30, %v3171_v14  ;;  %v3247_v27 = vadd.f32 %v5372_v41, %v3172_v21  ;;  %v3100_v46 = vmul.f32 %v4003_v2, %v5107_v51  ;;  %v3101_v47 = vmul.f32 %v4003_v2, %v5110_v20 }
 0x427   : > { %v3248_v54 = vadd.f32 %v5370_v30, %v3173_v40  ;;  %v3249_v0 = vadd.f32 %v5372_v41, %v3174_v19  ;;  %v3102_v10 = vmul.f32 %v4005_v35, %v5121_v1  ;;  %v3103_v61 = vmul.f32 %v4005_v35, %v5124_v25  ;;  %v2947_v9 = vpop.xlane.xlu1 %2946  ;;  %v2950_v29 = vpop.xlane.xlu0 %2949 }
 0x428   : > { %3310 = vst [vmem:[%s4524_s18 + $0x50] sm:$0xff] %v3246_v60  ;;  %3311 = vst [vmem:[%s4524_s18 + $0x58] sm:$0xff] %v3247_v27  ;;  %v3175_v63 = vmul.f32 %v5366_v5, %v3100_v46  ;;  %v3176_v34 = vmul.f32 %v5368_v56, %v3101_v47  ;;  %4014 = vrsqrt.f32 %v3035_v37  ;;  %v3036_v51 = vadd.f32 1e-05, %v3004_v36 }
 0x429   : > { %3312 = vst [vmem:[%s4524_s18 + $0x60] sm:$0xff] %v3248_v54  ;;  %3313 = vst [vmem:[%s4524_s18 + $0x68] sm:$0xff] %v3249_v0  ;;  %v3177_v20 = vmul.f32 %v5366_v5, %v3102_v10  ;;  %v3178_v1 = vmul.f32 %v5368_v56, %v3103_v61  ;;  %v3005_v53 = vmul.f32 0.00390625, %v2941_v28  ;;  %v3006_v25 = vmul.f32 0.00390625, %v2944_v42 }
 0x42a   : > { %v4007_v3 = vpop.eup %4006  ;;  %v3250_v43 = vadd.f32 %v5370_v30, %v3175_v63  ;;  %v3251_v33 = vadd.f32 %v5372_v41, %v3176_v34  ;;  %4016 = vrsqrt.f32 %v3036_v51  ;;  %v3007_v24 = vmul.f32 0.00390625, %v2947_v9 }
 0x42b   : > { %v3252_v23 = vadd.f32 %v5370_v30, %v3177_v20  ;;  %v3253_v31 = vadd.f32 %v5372_v41, %v3178_v1  ;;  %v3104_v45 = vmul.f32 %v4007_v3, %v5127_v11  ;;  %v3105_v14 = vmul.f32 %v4007_v3, %v5130_v7  ;;  %v2953_v21 = vpop.xlane.xlu1 %2952  ;;  %v2956_v28 = vpop.xlane.xlu0 %2955 }
 0x42c   : > { %3314 = vst [vmem:[%s4524_s18 + $0x70] sm:$0xff] %v3250_v43  ;;  %3315 = vst [vmem:[%s4524_s18 + $0x78] sm:$0xff] %v3251_v33  ;;  %v3037_v42 = vadd.f32 1e-05, %v3005_v53  ;;  %v3038_v37 = vadd.f32 1e-05, %v3006_v25 }
 0x42d   : > { %v3039_v2 = vadd.f32 1e-05, %v3007_v24  ;;  %v4009_v40 = vpop.eup %4008  ;;  %3316 = vst [vmem:[%s4524_s18 + $0x80] sm:$0xff] %v3252_v23  ;;  %3317 = vst [vmem:[%s4524_s18 + $0x88] sm:$0xff] %v3253_v31  ;;  %v3179_v19 = vmul.f32 %v5366_v5, %v3104_v45  ;;  %v3180_v36 = vmul.f32 %v5368_v56, %v3105_v14  ;;  %v3008_v35 = vmul.f32 0.00390625, %v2950_v29 }
 0x42e   : > { %v3009_v60 = vmul.f32 0.00390625, %v2953_v21  ;;  %v3106_v11 = vmul.f32 %v4009_v40, %v5141_v16  ;;  %v3107_v7 = vmul.f32 %v4009_v40, %v5144_v4  ;;  %4018 = vrsqrt.f32 %v3037_v42 }
 0x42f   : > { %v3010_v27 = vmul.f32 0.00390625, %v2956_v28  ;;  %v3254_v46 = vadd.f32 %v5370_v30, %v3179_v19  ;;  %v3255_v47 = vadd.f32 %v5372_v41, %v3180_v36  ;;  %4020 = vrsqrt.f32 %v3038_v37  ;;  %v2959_v0 = vpop.xlane.xlu1 %2958  ;;  %v2962_v10 = vpop.xlane.xlu0 %2961 }
 0x430   : > { %v3040_v54 = vadd.f32 1e-05, %v3008_v35  ;;  %v3181_v61 = vmul.f32 %v5366_v5, %v3106_v11  ;;  %v3182_v9 = vmul.f32 %v5368_v56, %v3107_v7  ;;  %4022 = vrsqrt.f32 %v3039_v2 }
 0x431   : > { %v3041_v29 = vadd.f32 1e-05, %v3009_v60  ;;  %v4011_v16 = vpop.eup %4010  ;;  %3318 = vst [vmem:[%s4524_s18 + $0x90] sm:$0xff] %v3254_v46  ;;  %3319 = vst [vmem:[%s4524_s18 + $0x98] sm:$0xff] %v3255_v47  ;;  %v3042_v4 = vadd.f32 1e-05, %v3010_v27 }
 0x432   : > { %4024 = vrsqrt.f32 %v3040_v54  ;;  %v3011_v63 = vmul.f32 0.00390625, %v2959_v0  ;;  %v3012_v34 = vmul.f32 0.00390625, %v2962_v10  ;;  %v4013_v51 = vpop.eup %4012  ;;  %v3256_v20 = vadd.f32 %v5370_v30, %v3181_v61 }
 0x433   : > { %v3257_v1 = vadd.f32 %v5372_v41, %v3182_v9  ;;  %v3108_v53 = vmul.f32 %v4011_v16, %v5147_v55  ;;  %v3109_v25 = vmul.f32 %v4011_v16, %v5150_v22  ;;  %v3110_v3 = vmul.f32 %v4013_v51, %v5161_v32  ;;  %v2965_v24 = vpop.xlane.xlu1 %2964  ;;  %v2968_v23 = vpop.xlane.xlu0 %2967 }
 0x434   : > { %v3111_v43 = vmul.f32 %v4013_v51, %v5164_v44  ;;  %4026 = vrsqrt.f32 %v3041_v29  ;;  %v3043_v33 = vadd.f32 1e-05, %v3011_v63  ;;  %3320 = vst [vmem:[%s4524_s18 + $0xa0] sm:$0xff] %v3256_v20  ;;  %v3044_v14 = vadd.f32 1e-05, %v3012_v34 }
 0x435   : > { %3321 = vst [vmem:[%s4524_s18 + $0xa8] sm:$0xff] %v3257_v1  ;;  %v3183_v31 = vmul.f32 %v5366_v5, %v3108_v53  ;;  %v3184_v45 = vmul.f32 %v5368_v56, %v3109_v25  ;;  %4028 = vrsqrt.f32 %v3042_v4  ;;  %v4015_v21 = vpop.eup %4014  ;;  %v3185_v55 = vmul.f32 %v5366_v5, %v3110_v3  ;;  %v5843_v25 = vld [vmem:[#allocation38_spill] sm:$0xff] }
 0x436   : > { %v3186_v22 = vmul.f32 %v5368_v56, %v3111_v43  ;;  %4030 = vrsqrt.f32 %v3043_v33  ;;  %v3013_v32 = vmul.f32 0.00390625, %v2965_v24  ;;  %v3112_v42 = vmul.f32 %v4015_v21, %v5167_v18 }
 0x437   : > { %v3258_v44 = vadd.f32 %v5370_v30, %v3183_v31  ;;  %v3259_v28 = vadd.f32 %v5372_v41, %v3184_v45  ;;  %v3113_v37 = vmul.f32 %v4015_v21, %v5170_v38  ;;  %v4017_v2 = vpop.eup %4016  ;;  %v3260_v40 = vadd.f32 %v5370_v30, %v3185_v55  ;;  %v2971_v35 = vpop.xlane.xlu1 %2970  ;;  %v5844_v31 = vld [vmem:[#allocation39_spill] sm:$0xff]  ;;  %v5846_v21 = vld [vmem:[#allocation41_spill] sm:$0xff] }
 0x438   : > { %v3261_v19 = vadd.f32 %v5372_v41, %v3186_v22  ;;  %4032 = vrsqrt.f32 %v3044_v14  ;;  %v3045_v36 = vadd.f32 1e-05, %v3013_v32  ;;  %v2974_v60 = vpop.xlane.xlu0 %2973  ;;  %v3187_v11 = vmul.f32 %v5366_v5, %v3112_v42  ;;  %v5847_v22 = vld [vmem:[#allocation42_spill] sm:$0xff] }
 0x439   : > { %3322 = vst [vmem:[%s4524_s18 + $0xb0] sm:$0xff] %v3258_v44  ;;  %3323 = vst [vmem:[%s4524_s18 + $0xb8] sm:$0xff] %v3259_v28  ;;  %v3188_v7 = vmul.f32 %v5368_v56, %v3113_v37  ;;  %v3114_v18 = vmul.f32 %v4017_v2, %v5181_v52  ;;  %v3115_v27 = vmul.f32 %v4017_v2, %v5184_v57  ;;  %v3014_v38 = vmul.f32 0.00390625, %v2968_v23 }
 0x43a   : > { %3324 = vst [vmem:[%s4524_s18 + $0xc0] sm:$0xff] %v3260_v40  ;;  %3325 = vst [vmem:[%s4524_s18 + $0xc8] sm:$0xff] %v3261_v19  ;;  %4034 = vrsqrt.f32 %v3045_v36  ;;  %v3015_v46 = vmul.f32 0.00390625, %v2971_v35  ;;  %v3016_v47 = vmul.f32 0.00390625, %v2974_v60  ;;  %v3262_v54 = vadd.f32 %v5370_v30, %v3187_v11 }
 0x43b   : > { %v3263_v0 = vadd.f32 %v5372_v41, %v3188_v7  ;;  %v3189_v10 = vmul.f32 %v5366_v5, %v3114_v18  ;;  %v3190_v61 = vmul.f32 %v5368_v56, %v3115_v27  ;;  %v4019_v9 = vpop.eup %4018  ;;  %v3046_v52 = vadd.f32 1e-05, %v3014_v38  ;;  %v2977_v16 = vpop.xlane.xlu1 %2976  ;;  %v5848_v27 = vld [vmem:[#allocation22_spill] sm:$0xff] }
 0x43c   : > { %v5488_v29 = vadd.f32 1e-05, %v3015_v46  ;;  %v5490_v57 = vadd.f32 1e-05, %v3016_v47  ;;  %v4021_v4 = vpop.eup %4020  ;;  %3326 = vst [vmem:[%s4524_s18 + $0xd0] sm:$0xff] %v3262_v54  ;;  %v3116_v51 = vmul.f32 %v4019_v9, %v5187_v50  ;;  %v3117_v20 = vmul.f32 %v4019_v9, %v5190_v58  ;;  %v5845_v50 = vld [vmem:[#allocation40_spill] sm:$0xff] }
 0x43d   : > { %3327 = vst [vmem:[%s4524_s18 + $0xd8] sm:$0xff] %v3263_v0  ;;  %v3264_v63 = vadd.f32 %v5370_v30, %v3189_v10  ;;  %v3265_v34 = vadd.f32 %v5372_v41, %v3190_v61  ;;  %v4023_v1 = vpop.eup %4022  ;;  %v3118_v53 = vmul.f32 %v4021_v4, %v5201_v6  ;;  %v3119_v3 = vmul.f32 %v4021_v4, %v5843_v25  ;;  %v5849_v46 = vld [vmem:[#allocation23_spill] sm:$0xff]  ;;  %v5850_v10 = vld [vmem:[#allocation24_spill] sm:$0xff]  ;;  %v5851_v9 = vld [vmem:[#allocation25_spill] sm:$0xff] }
 0x43e   : > { %4036 = vrsqrt.f32 %v3046_v52  ;;  %v5500_v43 = vmul.f32 0.00390625, %v2977_v16  ;;  %v3191_v24 = vmul.f32 %v5366_v5, %v3116_v51  ;;  %v3192_v23 = vmul.f32 %v5368_v56, %v3117_v20  ;;  %v2980_v16 = vpop.xlane.xlu0 %2979  ;;  %v5852_v51 = vld [vmem:[#allocation26_spill] sm:$0xff] }
 0x43f   : > { %v4025_v33 = vpop.eup %4024  ;;  %3328 = vst [vmem:[%s4524_s18 + $0xe0] sm:$0xff] %v3264_v63  ;;  %3329 = vst [vmem:[%s4524_s18 + $0xe8] sm:$0xff] %v3265_v34  ;;  %v3120_v45 = vmul.f32 %v4023_v1, %v5844_v31  ;;  %v3121_v14 = vmul.f32 %v4023_v1, %v5845_v50  ;;  %v3193_v58 = vmul.f32 %v5366_v5, %v3118_v53  ;;  %v5853_v1 = vld [vmem:[#allocation27_spill] sm:$0xff]  ;;  %v2983_v25 = vpop.xlane.xlu1 %2982  ;;  %v5855_v31 = vld [vmem:[#allocation29_spill] sm:$0xff]  ;;  %4038 = vrsqrt.f32 %v5488_v29 }
 0x440   : > { %v3194_v6 = vmul.f32 %v5368_v56, %v3119_v3  ;;  %v3122_v55 = vmul.f32 %v4025_v33, %v5846_v21  ;;  %v3123_v32 = vmul.f32 %v4025_v33, %v5847_v22  ;;  %v3266_v28 = vadd.f32 %v5370_v30, %v3191_v24  ;;  %v5854_v24 = vld [vmem:[#allocation28_spill] sm:$0xff] }
 0x441   : > { %v4027_v44 = vpop.eup %4026  ;;  %v3267_v42 = vadd.f32 %v5372_v41, %v3192_v23  ;;  %v3195_v37 = vmul.f32 %v5366_v5, %v3120_v45  ;;  %v3196_v2 = vmul.f32 %v5368_v56, %v3121_v14  ;;  %v3268_v19 = vadd.f32 %v5370_v30, %v3193_v58 }
 0x442   : > { %v4029_v40 = vpop.eup %4028  ;;  %v3269_v36 = vadd.f32 %v5372_v41, %v3194_v6  ;;  %v3197_v35 = vmul.f32 %v5366_v5, %v3122_v55  ;;  %v3198_v60 = vmul.f32 %v5368_v56, %v3123_v32  ;;  %3330 = vst [vmem:[%s4524_s18 + $0xf0] sm:$0xff] %v3266_v28  ;;  %v3124_v38 = vmul.f32 %v4027_v44, %v5848_v27 }
 0x443   : > { %v4031_v11 = vpop.eup %4030  ;;  %3331 = vst [vmem:[%s4524_s18 + $0xf8] sm:$0xff] %v3267_v42  ;;  %v3270_v7 = vadd.f32 %v5370_v30, %v3195_v37  ;;  %v3271_v18 = vadd.f32 %v5372_v41, %v3196_v2  ;;  %v3125_v47 = vmul.f32 %v4027_v44, %v5849_v46  ;;  %3332 = vst [vmem:[%s4524_s18 + $0x100] sm:$0xff] %v3268_v19  ;;  %v5856_v37 = vld [vmem:[#allocation30_spill] sm:$0xff]  ;;  %4040 = vrsqrt.f32 %v5490_v57  ;;  %v2989_v27 = vpop.xlane.xlu1 %2988 }
 0x444   : > { %3333 = vst [vmem:[%s4524_s18 + $0x108] sm:$0xff] %v3269_v36  ;;  %v3272_v54 = vadd.f32 %v5370_v30, %v3197_v35  ;;  %v3273_v0 = vadd.f32 %v5372_v41, %v3198_v60  ;;  %v3126_v61 = vmul.f32 %v4029_v40, %v5850_v10  ;;  %v3127_v52 = vmul.f32 %v4029_v40, %v5851_v9  ;;  %v2986_v60 = vpop.xlane.xlu0 %2985 }
 0x445   : > { %v4033_v4 = vpop.eup %4032  ;;  %3334 = vst [vmem:[%s4524_s18 + $0x110] sm:$0xff] %v3270_v7  ;;  %3335 = vst [vmem:[%s4524_s18 + $0x118] sm:$0xff] %v3271_v18  ;;  %v3199_v63 = vmul.f32 %v5366_v5, %v3124_v38  ;;  %v3200_v34 = vmul.f32 %v5368_v56, %v3125_v47  ;;  %v3128_v20 = vmul.f32 %v4031_v11, %v5852_v51  ;;  %v3049_v35 = vadd.f32 1e-05, %v5500_v43 }
 0x446   : > { %v3129_v53 = vmul.f32 %v4031_v11, %v5853_v1  ;;  %3336 = vst [vmem:[%s4524_s18 + $0x120] sm:$0xff] %v3272_v54  ;;  %3337 = vst [vmem:[%s4524_s18 + $0x128] sm:$0xff] %v3273_v0  ;;  %v3201_v3 = vmul.f32 %v5366_v5, %v3126_v61  ;;  %v3202_v33 = vmul.f32 %v5368_v56, %v3127_v52  ;;  %v3018_v18 = vmul.f32 0.00390625, %v2980_v16 }
 0x447   : > { %v3130_v23 = vmul.f32 %v4033_v4, %v5854_v24  ;;  %v3131_v45 = vmul.f32 %v4033_v4, %v5855_v31  ;;  %v4035_v50 = vpop.eup %4034  ;;  %v3274_v14 = vadd.f32 %v5370_v30, %v3199_v63  ;;  %v3275_v58 = vadd.f32 %v5372_v41, %v3200_v34  ;;  %v5857_v34 = vld [vmem:[#allocation31_spill] sm:$0xff] }
 0x448   : > { %v3203_v6 = vmul.f32 %v5366_v5, %v3128_v20  ;;  %v3204_v21 = vmul.f32 %v5368_v56, %v3129_v53  ;;  %v3276_v55 = vadd.f32 %v5370_v30, %v3201_v3  ;;  %v3277_v22 = vadd.f32 %v5372_v41, %v3202_v33 }
 0x449   : > { %v3205_v32 = vmul.f32 %v5366_v5, %v3130_v23  ;;  %v3206_v44 = vmul.f32 %v5368_v56, %v3131_v45  ;;  %3338 = vst [vmem:[%s4524_s18 + $0x130] sm:$0xff] %v3274_v14  ;;  %3339 = vst [vmem:[%s4524_s18 + $0x138] sm:$0xff] %v3275_v58  ;;  %v3132_v2 = vmul.f32 %v4035_v50, %v5856_v37  ;;  %4042 = vrsqrt.f32 %v3049_v35 }
 0x44a   : > { %v3278_v28 = vadd.f32 %v5370_v30, %v3203_v6  ;;  %v3279_v42 = vadd.f32 %v5372_v41, %v3204_v21  ;;  %v3133_v40 = vmul.f32 %v4035_v50, %v5270_v17  ;;  %3340 = vst [vmem:[%s4524_s18 + $0x140] sm:$0xff] %v3276_v55  ;;  %3341 = vst [vmem:[%s4524_s18 + $0x148] sm:$0xff] %v3277_v22  ;;  %v3019_v38 = vmul.f32 0.00390625, %v2983_v25 }
 0x44b   : > { %v3280_v19 = vadd.f32 %v5370_v30, %v3205_v32  ;;  %v3281_v36 = vadd.f32 %v5372_v41, %v3206_v44  ;;  %v4037_v11 = vpop.eup %4036  ;;  %v3207_v7 = vmul.f32 %v5366_v5, %v3132_v2  ;;  %v3050_v54 = vadd.f32 1e-05, %v3018_v18 }
 0x44c   : > { %3342 = vst [vmem:[%s4524_s18 + $0x150] sm:$0xff] %v3278_v28  ;;  %3343 = vst [vmem:[%s4524_s18 + $0x158] sm:$0xff] %v3279_v42  ;;  %v3208_v17 = vmul.f32 %v5368_v56, %v3133_v40  ;;  %v3134_v29 = vmul.f32 %v4037_v11, %v5281_v49  ;;  %v3135_v43 = vmul.f32 %v4037_v11, %v5284_v48  ;;  %v3020_v57 = vmul.f32 0.00390625, %v2986_v60  ;;  %v4039_v4 = vpop.eup %4038  ;;  %v5858_v28 = vld [vmem:[#allocation32_spill] sm:$0xff]  ;;  %v5861_v60 = vld [vmem:[#allocation35_spill] sm:$0xff] }
 0x44d   : > { %3344 = vst [vmem:[%s4524_s18 + $0x160] sm:$0xff] %v3280_v19  ;;  %3345 = vst [vmem:[%s4524_s18 + $0x168] sm:$0xff] %v3281_v36  ;;  %v3282_v46 = vadd.f32 %v5370_v30, %v3207_v7  ;;  %v3051_v61 = vadd.f32 1e-05, %v3019_v38  ;;  %v3021_v9 = vmul.f32 0.00390625, %v2989_v27  ;;  %4044 = vrsqrt.f32 %v3050_v54  ;;  %v5860_v19 = vld [vmem:[#allocation34_spill] sm:$0xff] }
 0x44e   : > { %v3283_v47 = vadd.f32 %v5372_v41, %v3208_v17  ;;  %v3209_v0 = vmul.f32 %v5366_v5, %v3134_v29  ;;  %v3210_v10 = vmul.f32 %v5368_v56, %v3135_v43  ;;  %v3052_v49 = vadd.f32 1e-05, %v3020_v57  ;;  %v5862_v7 = vld [vmem:[#allocation36_spill] sm:$0xff] }
 0x44f   : > { %3346 = vst [vmem:[%s4524_s18 + $0x170] sm:$0xff] %v3282_v46  ;;  %4046 = vrsqrt.f32 %v3051_v61  ;;  %v3053_v16 = vadd.f32 1e-05, %v3021_v9  ;;  %v3136_v51 = vmul.f32 %v4039_v4, %v5857_v34  ;;  %v3137_v20 = vmul.f32 %v4039_v4, %v5290_v62 }
 0x450   : > { %3347 = vst [vmem:[%s4524_s18 + $0x178] sm:$0xff] %v3283_v47  ;;  %v3284_v48 = vadd.f32 %v5370_v30, %v3209_v0  ;;  %v3285_v52 = vadd.f32 %v5372_v41, %v3210_v10  ;;  %4048 = vrsqrt.f32 %v3052_v49  ;;  %v4041_v63 = vpop.eup %4040 }
 0x451   : > { %4050 = vrsqrt.f32 %v3053_v16  ;;  %v3138_v53 = vmul.f32 %v4041_v63, %v5301_v8  ;;  %v3139_v25 = vmul.f32 %v4041_v63, %v5304_v12  ;;  %v3211_v3 = vmul.f32 %v5366_v5, %v3136_v51 }
 0x452   : > { %3348 = vst [vmem:[%s4524_s18 + $0x180] sm:$0xff] %v3284_v48  ;;  %3349 = vst [vmem:[%s4524_s18 + $0x188] sm:$0xff] %v3285_v52  ;;  %v3212_v33 = vmul.f32 %v5368_v56, %v3137_v20 }
 0x453   : > { %v3213_v31 = vmul.f32 %v5366_v5, %v3138_v53  ;;  %v3214_v45 = vmul.f32 %v5368_v56, %v3139_v25  ;;  %v3286_v50 = vadd.f32 %v5370_v30, %v3211_v3 }
 0x454   : > { %v3287_v8 = vadd.f32 %v5372_v41, %v3212_v33 }
 0x455   : > { %3350 = vst [vmem:[%s4524_s18 + $0x190] sm:$0xff] %v3286_v50 }
 0x456   : > { %v4043_v1 = vpop.eup %4042  ;;  %3351 = vst [vmem:[%s4524_s18 + $0x198] sm:$0xff] %v3287_v8 }
 0x457   : > { %v3140_v24 = vmul.f32 %v4043_v1, %v5307_v59  ;;  %v3141_v23 = vmul.f32 %v4043_v1, %v5310_v15  ;;  %v3288_v59 = vadd.f32 %v5370_v30, %v3213_v31  ;;  %v3289_v15 = vadd.f32 %v5372_v41, %v3214_v45 }
 0x459   : > { %v3215_v12 = vmul.f32 %v5366_v5, %v3140_v24  ;;  %v3216_v14 = vmul.f32 %v5368_v56, %v3141_v23  ;;  %3352 = vst [vmem:[%s4524_s18 + $0x1a0] sm:$0xff] %v3288_v59  ;;  %3353 = vst [vmem:[%s4524_s18 + $0x1a8] sm:$0xff] %v3289_v15 }
 0x45a   : > { %v4045_v62 = vpop.eup %4044 }
 0x45b   : > { %v3142_v6 = vmul.f32 %v4045_v62, %v5321_v39  ;;  %v3143_v21 = vmul.f32 %v4045_v62, %v5324_v26  ;;  %v3290_v22 = vadd.f32 %v5370_v30, %v3215_v12  ;;  %v3291_v32 = vadd.f32 %v5372_v41, %v3216_v14  ;;  %v5859_v26 = vld [vmem:[#allocation33_spill] sm:$0xff] }
 0x45c   : > { %v4047_v58 = vpop.eup %4046 }
 0x45d   : > { %v4049_v55 = vpop.eup %4048  ;;  %v3144_v44 = vmul.f32 %v4047_v58, %v5327_v13  ;;  %v3145_v42 = vmul.f32 %v4047_v58, %v5858_v28  ;;  %v3217_v39 = vmul.f32 %v5366_v5, %v3142_v6  ;;  %v3218_v2 = vmul.f32 %v5368_v56, %v3143_v21  ;;  %3354 = vst [vmem:[%s4524_s18 + $0x1b0] sm:$0xff] %v3290_v22 }
 0x45e   : > { %v4051_v37 = vpop.eup %4050  ;;  %v3146_v40 = vmul.f32 %v4049_v55, %v5859_v26  ;;  %v3147_v36 = vmul.f32 %v4049_v55, %v5860_v19  ;;  %3355 = vst [vmem:[%s4524_s18 + $0x1b8] sm:$0xff] %v3291_v32 }
 0x45f   : > { %v3219_v35 = vmul.f32 %v5366_v5, %v3144_v44  ;;  %v3220_v13 = vmul.f32 %v5368_v56, %v3145_v42  ;;  %v3148_v11 = vmul.f32 %v4051_v37, %v5861_v60  ;;  %v3149_v17 = vmul.f32 %v4051_v37, %v5862_v7 }
 0x460   : > { %v3292_v18 = vadd.f32 %v5370_v30, %v3217_v39  ;;  %v3293_v27 = vadd.f32 %v5372_v41, %v3218_v2  ;;  %v3221_v29 = vmul.f32 %v5366_v5, %v3146_v40  ;;  %v3222_v43 = vmul.f32 %v5368_v56, %v3147_v36 }
 0x461   : > { %v3294_v38 = vadd.f32 %v5370_v30, %v3219_v35  ;;  %v3295_v46 = vadd.f32 %v5372_v41, %v3220_v13  ;;  %v3223_v47 = vmul.f32 %v5366_v5, %v3148_v11  ;;  %v3224_v54 = vmul.f32 %v5368_v56, %v3149_v17 }
 0x462   : > { %3356 = vst [vmem:[%s4524_s18 + $0x1c0] sm:$0xff] %v3292_v18  ;;  %3357 = vst [vmem:[%s4524_s18 + $0x1c8] sm:$0xff] %v3293_v27  ;;  %v3296_v57 = vadd.f32 %v5370_v30, %v3221_v29  ;;  %v3297_v0 = vadd.f32 %v5372_v41, %v3222_v43 }
 0x463   : > { %3358 = vst [vmem:[%s4524_s18 + $0x1d0] sm:$0xff] %v3294_v38  ;;  %3359 = vst [vmem:[%s4524_s18 + $0x1d8] sm:$0xff] %v3295_v46  ;;  %v3298_v10 = vadd.f32 %v5370_v30, %v3223_v47  ;;  %v3299_v61 = vadd.f32 %v5372_v41, %v3224_v54 }
 0x464   : > { %3360 = vst [vmem:[%s4524_s18 + $0x1e0] sm:$0xff] %v3296_v57  ;;  %3361 = vst [vmem:[%s4524_s18 + $0x1e8] sm:$0xff] %v3297_v0 }
 0x465   : > { %3362 = vst [vmem:[%s4524_s18 + $0x1f0] sm:$0xff] %v3298_v10  ;;  %3363 = vst [vmem:[%s4524_s18 + $0x1f8] sm:$0xff] %v3299_v61 }
 0x466 PF: > { %s5863_s9 = sld [smem:[#allocation15_spill]]  ;;  %s3381_s1 = sshll.u32 %s4524_s18, 4  ;;  %s5646_s1 = int_to_ptr.vmem [resolvable:$true] %s3381_s1 }
 0x467   : > { %s5865_s11 = sld [smem:[#allocation46_spill]]  ;;  %s3365_s23 = scalar_lea.sflag [#allocation5], %s4504_s13 }
 0x468   : > { %s4136_s14 = scalar_lea.vmem %s5646_s1, 8192  ;;  %s4271_s5 = smov [#allocation9]  }
 0x469   : > { %p4137_p1 = scmp.ne.s32.totalorder %s5646_s1, %s4136_s14  ;;  %s4140_s6 = sshll.u32 %s4271_s5, 4  ;;  %s4141_s6 = int_to_ptr.vmem [resolvable:$false] %s4140_s6 }
 0x46a   : > { %s4142_s7 = scalar_lea.vmem %s4141_s6, 16384  ;;  %p4143_p5 = scmp.lt.s32.totalorder %s5646_s1, %s4141_s6 }
 0x46b   : > { %p4138_p10 = pnand %p4137_p1, %p4456_p0  ;;  %p4144_p8 = scmp.lt.s32.totalorder %s4142_s7, %s4136_s14 }
 0x46c   : > { %s3675_s27 = sshll.u32 %s5863_s9, 13 }
 0x46d   : > { %s5643_s0 = scalar_lea.hbm %s5865_s11, %s3675_s27  ;;  %p4139_p3 = pneg %p4138_p10 }
 0x46e   : > { %p4145_p9 = por %p4144_p8, %p4143_p5 }
 0x470   : > { %p4146_p13 = pnand %p4145_p9, %p4139_p3 }
 0x472   : > { %4149 = shalt.err (!%p4146_p13)
}
 0x473   : > { %s4150_s29 = scalar_lea.hbm %s5643_s0, 8192  ;;  %s4154_s18 = scalar_lea.hbm %s5865_s11, 16384 }
 0x474   : > { %p4151_p2 = scmp.ne.s32.totalorder %s5643_s0, %s4150_s29  ;;  %p4155_p4 = scmp.lt.s32.totalorder %s5643_s0, %s5865_s11 }
 0x475   : > { %p4156_p7 = scmp.lt.s32.totalorder %s4154_s18, %s4150_s29 }
 0x476   : > { %p4152_p12 = pnand %p4151_p2, %p4456_p0 }
 0x477   : > { %p4157_p11 = por %p4156_p7, %p4155_p4 }
 0x478   : > { %p4153_p6 = pneg %p4152_p12 }
 0x47a   : > { %p4158_p1 = pnand %p4157_p11, %p4153_p6 }
 0x47c   : > { %4161 = shalt.err (!%p4158_p1)
}
 0x47d   : > { %s4272_s30 = smov 256   ;;  %s4273_s17 = smov 16  }
 0x47e   : > { %3682 = dma.vmem_to_hbm [thread:$0]  (%p4456_p0), %s5646_s1, 8192, %s5643_s0, %s3365_s23, %s4272_s30, %s4272_s30, %s4273_s17  }
 0x47f PF: > { %p3699_p10 = scmp.ge.s32.totalorder %s4260_s28, 2  ;;  %s3396_s12 = sand.u32 1, %s4232_s21  }
 0x480   : > { %p5866_p3 = scmp.ne.s32.totalorder %s5783_s20, 0  ;;  %s3397_s9 = scalar_lea.sflag [#allocation5], %s3396_s12 }
 0x482   : > { %p3695_p5 = pnand %p3699_p10, %p5866_p3 }
 0x484   : > { %p3696_p8 = pneg %p3695_p5 }
 0x486   : > { %4215 = dma.done.wait (%p3696_p8), %s3397_s9, 8192  }
 0x487   : > { %4217 = vsyncadd (%p3696_p8), %s3397_s9, 4294959104  ;;  %s24_s28 = sadd.s32 1, %s4260_s28   ;;  %s5867_s27 = sld [smem:[#allocation13_spill]] }
 0x488   : > { %p21_p9 = scmp.ge.s32.totalorder %s24_s28, 6   ;;  %s5868_s20 = sld [smem:[#allocation18_spill]] }
 0x489   : > { %s5869_s13 = sld [smem:[#allocation14_spill]]  ;;  %s5874_s18 = smov %s4224_s19 }
 0x48a   : > { %s5870_s23 = sld [smem:[#allocation21_spill]]  ;;  %s5876_s21 = smov %s4236_s22 }
 0x48b   : > { %s5871_s25 = sld [smem:[#allocation16_spill]]  ;;  %s5878_s24 = smov %s4252_s26 }
 0x48c   : > { %s5872_s4 = sld [smem:[#allocation17_spill]] }
 0x48d   : > { %s5873_s8 = sld [smem:[#allocation19_spill]]  ;;  %s5875_s19 = smov %s5867_s27 }
 0x48f   : > { %s5877_s22 = smov %s5869_s13  ;;  %23 = sbr.rel (!%p21_p9) target bundleno = 16 (0x10), region = 117 }
 0x492   : > { %s5879_s26 = smov %s5872_s4 }
 0x493   : > { %s5880_s27 = smov %s5873_s8 }
 0x494   :  { %3402 = vsyncpa [#allocation4], 1 }
 0x495   :  { %3404 = vsyncpa [#allocation4 + $0x1], 1 }
 0x496   :  { %3405 = vsyncpa [#allocation7], 1 }
 0x497   :  { %3407 = vsyncpa [#allocation7 + $0x1], 1 }
 0x498   :  { %3408 = vsyncpa [#allocation5], 1 }
 0x499   :  { %3410 = vsyncpa [#allocation5 + $0x1], 1 }

</bundles_post_ra>
